<compile_context>
chip_gen: v6e
topology: v6e:2x2x1
jax: 0.10.0
libtpu: 0.0.40
codegen_flags: <defaults>
</compile_context>

<pallas_src>
import functools
import math

import jax
import jax.numpy as jnp
from jax.experimental import pallas as pl
from jax.experimental.pallas import tpu as pltpu


# ---------------------------------------------------------------------------
# VMEM budgeting / tiling helpers
# ---------------------------------------------------------------------------
def _vmem_budget_bytes():
    """Per-call VMEM byte budget for block sizing (generation-aware, safe)."""
    try:
        cap = pltpu.get_tpu_info().vmem_capacity_bytes   # v5e/v6e 128MiB, v7x 64MiB
    except Exception:
        cap = 64 << 20
    # Stay under every generation's scoped limit (we also raise it to 32 MiB
    # via CompilerParams) and leave headroom for compiler scratch / spills.
    return int(min(max(cap // 6, 8 << 20), 20 << 20))


def _pick_window_tile(batch, nwin, pp, c_in, c_out, heads, hid, itemsize):
    """Windows per grid step, bounded by a full VMEM accounting."""
    hh = heads * hid
    budget = _vmem_budget_bytes()
    # resident (single-buffered): qkv weight, per-head out weight, bias, posenc
    resident = (c_in * 3 * hh + hh * c_out + c_out + heads * pp * pp) * 4
    # per-window: double-buffered input & output blocks ...
    per_win = (2 * pp * c_in + 2 * pp * c_out) * itemsize
    # ... plus f32 intermediates (qkv, score/exp copies, per-head PV, out acc)
    per_win += (pp * 3 * hh + 3 * pp * pp + pp * hid + pp * c_out) * 4
    avail = max(budget - resident, per_win)
    max_tile = max(1, int(avail // per_win))
    max_tile = min(max_tile, nwin)
    if batch == 1 and nwin >= 2:
        # keep >= 2 parallel grid steps so both v7x TensorCores get work
        max_tile = min(max_tile, max(1, nwin // 2))
    for t in range(max_tile, 0, -1):             # largest divisor of nwin
        if nwin % t == 0:
            return t
    return 1


# ---------------------------------------------------------------------------
# Fused Pallas kernel: qkv-proj + windowed MHA + out-proj, per window tile
# ---------------------------------------------------------------------------
def _fused_local_attn_kernel(num_heads, hid, x_ref, wp_ref, wo_ref, b_ref,
                             pe_ref, o_ref):
    """One grid step: TILE_W windows, all heads.

    x_ref : (1, TILE_W, P*P, Cin)   folded input windows (channels on lanes)
    wp_ref: (Cin, 3*heads*hid)      qkv projection, 1/sqrt(hid) folded into q
    wo_ref: (heads, hid, Cout)      output projection, pre-split per head
    b_ref : (1, Cout)               output projection bias
    pe_ref: (heads, P*P, P*P)       relative positional bias
    o_ref : (1, TILE_W, P*P, Cout)
    """
    hh = num_heads * hid
    tile_w, pp, c_in = x_ref.shape[1], x_ref.shape[2], x_ref.shape[3]
    c_out = o_ref.shape[3]
    m = tile_w * pp

    xb = x_ref[0]                                   # (TILE_W, PP, Cin)
    cdt = xb.dtype                                  # MXU operand dtype
    x2d = xb.reshape(m, c_in)

    # fused qkv projection (1x1 conv, bias=False), f32 accumulation on the MXU
    qkv = jnp.dot(x2d, wp_ref[...].astype(cdt),
                  preferred_element_type=jnp.float32).astype(cdt)   # (M, 3hh)

    acc = jnp.zeros((m, c_out), jnp.float32)
    for h in range(num_heads):                      # static unroll, heads small
        q = qkv[:, h * hid:(h + 1) * hid].reshape(tile_w, pp, hid)
        k = qkv[:, hh + h * hid:hh + (h + 1) * hid].reshape(tile_w, pp, hid)
        v = qkv[:, 2 * hh + h * hid:2 * hh + (h + 1) * hid].reshape(tile_w, pp, hid)

        # scores (scale already folded into the q columns of wp_ref)
        s = jnp.einsum('wqc,wkc->wqk', q, k,
                       preferred_element_type=jnp.float32)          # (W, PP, PP)
        s = s + pe_ref[h][None].astype(jnp.float32)

        mx = jnp.max(s, axis=-1, keepdims=True)
        e = jnp.exp(s - mx)
        denom = jnp.sum(e, axis=-1, keepdims=True)

        # un-normalized PV matmul first; normalize the (W, PP, hid) result
        # (fewer VPU multiplies than scaling the (W, PP, PP) probabilities),
        # using an EXACT reciprocal on the tiny denominator for correctness.
        o_h = jnp.einsum('wqk,wkc->wqc', e.astype(cdt), v,
                         preferred_element_type=jnp.float32)        # (W, PP, hid)
        o_h = o_h * (1.0 / denom)

        # fused per-head slice of the output 1x1 conv: acc += o_h @ W_out[h]
        acc = acc + jnp.dot(o_h.reshape(m, hid).astype(cdt),
                            wo_ref[h].astype(cdt),
                            preferred_element_type=jnp.float32)

    acc = acc + b_ref[...].astype(jnp.float32)      # (1, Cout) broadcast
    o_ref[0] = acc.reshape(tile_w, pp, c_out).astype(o_ref.dtype)   # full-width store


def fused_local_attention(x_win, w_proj, w_out, b_out, posenc, num_heads, hid):
    """x_win: (B, nwin, P*P, Cin) -> (B, nwin, P*P, Cout) in one pallas_call."""
    b, nwin, pp, c_in = x_win.shape
    c_out = w_out.shape[-1]
    hh = num_heads * hid
    itemsize = jnp.dtype(x_win.dtype).itemsize
    tile_w = _pick_window_tile(b, nwin, pp, c_in, c_out, num_heads, hid, itemsize)
    grid = (b, nwin // tile_w)

    kernel = functools.partial(_fused_local_attn_kernel, num_heads, hid)
    flops = (2 * b * nwin * pp * (c_in * 3 * hh + hh * c_out)
             + 4 * b * nwin * num_heads * pp * pp * hid)
    bytes_accessed = ((x_win.size + b * nwin * pp * c_out) * itemsize
                      + (w_proj.size + w_out.size + b_out.size + posenc.size) * 4)

    return pl.pallas_call(
        kernel,
        out_shape=jax.ShapeDtypeStruct((b, nwin, pp, c_out), x_win.dtype),
        grid_spec=pltpu.PrefetchScalarGridSpec(
            num_scalar_prefetch=0,
            grid=grid,
            in_specs=[
                pl.BlockSpec((1, tile_w, pp, c_in),
                             lambda bi, wi: (bi, wi, 0, 0)),
                pl.BlockSpec(w_proj.shape, lambda bi, wi: (0, 0)),
                pl.BlockSpec(w_out.shape, lambda bi, wi: (0, 0, 0)),
                pl.BlockSpec(b_out.shape, lambda bi, wi: (0, 0)),
                pl.BlockSpec(posenc.shape, lambda bi, wi: (0, 0, 0)),
            ],
            out_specs=pl.BlockSpec((1, tile_w, pp, c_out),
                                   lambda bi, wi: (bi, wi, 0, 0)),
        ),
        compiler_params=pltpu.CompilerParams(
            dimension_semantics=("parallel", "parallel"),
            vmem_limit_bytes=32 << 20),
        cost_estimate=pl.CostEstimate(
            flops=int(flops),
            transcendentals=int(b * nwin * num_heads * pp * pp),
            bytes_accessed=int(bytes_accessed)),
    )(x_win, w_proj, w_out, b_out, posenc)


# ---------------------------------------------------------------------------
# Module glue (plain JAX): parameters, one-time weight prep, window relayout
# ---------------------------------------------------------------------------
def unfolded_posenc(position, kernel_size):
    """position: (heads, 2P, 2P) -> relative bias (heads, P*P, P*P)."""
    p = kernel_size
    coords = jnp.stack(
        jnp.meshgrid(jnp.arange(p), jnp.arange(p), indexing='ij'), axis=-1
    ).reshape(p * p, 2)
    rel = coords[None, :, :] - coords[:, None, :] + p   # rel[i, j] = pos_j - pos_i + P
    return position[:, rel[:, :, 0], rel[:, :, 1]]


def init_params(key, in_channels, num_heads, kernel_size, hidden_channels):
    k1, k2, k3 = jax.random.split(key, 3)
    hid = hidden_channels
    w_proj_t = jax.random.normal(k1, (in_channels, 3 * num_heads * hid),
                                 jnp.float32) * math.sqrt(2.0 / in_channels)
    # nn.Parameter(torch.zeros(...)) in __init__; small random values so the
    # positional-bias path is actually exercised.
    position = 0.1 * jax.random.normal(
        k2, (num_heads, 2 * kernel_size, 2 * kernel_size), jnp.float32)
    w_out_t = jax.random.normal(k3, (num_heads * hid, in_channels),
                                jnp.float32) * math.sqrt(2.0 / (num_heads * hid))
    b_out = jnp.zeros((in_channels,), jnp.float32)
    return dict(w_proj_t=w_proj_t, position=position, w_out_t=w_out_t,
                b_out=b_out)


def prepare_params(params, num_heads, kernel_size):
    """One-time weight-sized prep (not per-activation work):
       * fold 1/sqrt(hid) into the q columns of the qkv projection,
       * split the output projection per head (heads, hid, C),
       * unfold the relative positional bias."""
    hid = params['w_proj_t'].shape[1] // (3 * num_heads)
    hh = num_heads * hid
    scale = 1.0 / math.sqrt(hid)
    col_scale = jnp.concatenate([jnp.full((hh,), scale, jnp.float32),
                                 jnp.ones((2 * hh,), jnp.float32)])
    w_proj = params['w_proj_t'] * col_scale[None, :]
    w_out = params['w_out_t'].reshape(num_heads, hid, -1)
    b_out = params['b_out'].reshape(1, -1)
    posenc = unfolded_posenc(params['position'], kernel_size)
    return dict(w_proj=w_proj, w_out=w_out, b_out=b_out, posenc=posenc, hid=hid)


def _attn_ref_core(x_win, prep, num_heads):
    """Pure-jnp reference of the fused core (for correctness checking)."""
    b, nwin, pp, _ = x_win.shape
    hid = prep['hid']
    hh = num_heads * hid
    qkv = jnp.einsum('bwpc,cd->bwpd', x_win, prep['w_proj'])
    q = qkv[..., :hh].reshape(b, nwin, pp, num_heads, hid)
    k = qkv[..., hh:2 * hh].reshape(b, nwin, pp, num_heads, hid)
    v = qkv[..., 2 * hh:].reshape(b, nwin, pp, num_heads, hid)
    s = jnp.einsum('bwqhc,bwkhc->bwhqk', q, k)        # scale folded into w_proj
    s = s + prep['posenc'][None, None]
    a = jax.nn.softmax(s, axis=-1)
    o = jnp.einsum('bwhqk,bwkhc->bwqhc', a, v).reshape(b, nwin, pp, hh)
    return o @ prep['w_out'].reshape(hh, -1) + prep['b_out']


def local_self_attention_2d(x, prep, num_heads, kernel_size,
                            padding_mode='none', use_pallas=True):
    b, c, h, w = x.shape
    p = kernel_size
    pad_w = -(w % -p)
    pad_h = -(h % -p)
    assert padding_mode == 'auto' or (pad_w, pad_h) == (0, 0), (
        f'kernel_size {p} does not divide size {w}x{h} and padding_mode="none"')
    pad = (pad_w // 2, pad_w - pad_w // 2, pad_h // 2, pad_h - pad_h // 2)
    if pad != (0, 0, 0, 0):
        x = jnp.pad(x, ((0, 0), (0, 0), (pad[2], pad[3]), (pad[0], pad[1])))
    hp, wp = x.shape[2], x.shape[3]
    nh, nw = hp // p, wp // p
    nwin = nh * nw

    # NCHW -> windowed channels-last in ONE relayout pass: (B, nwin, P*P, C).
    # Subsumes the interface transpose AND the window fold, so no XLA pass over
    # the (3*heads*hid)-wide qkv or the attention output ever happens.
    xw = x.reshape(b, c, nh, p, nw, p)
    xw = jnp.transpose(xw, (0, 2, 4, 3, 5, 1)).reshape(b, nwin, p * p, c)

    if use_pallas:
        yw = fused_local_attention(xw, prep['w_proj'], prep['w_out'],
                                   prep['b_out'], prep['posenc'],
                                   num_heads, prep['hid'])
    else:
        yw = _attn_ref_core(xw, prep, num_heads)

    # windowed channels-last -> NCHW in one relayout pass
    y = yw.reshape(b, nh, nw, p, p, c)
    y = jnp.transpose(y, (0, 5, 1, 3, 2, 4)).reshape(b, c, hp, wp)

    if pad != (0, 0, 0, 0):
        # the out projection is pointwise, so cropping after it is identical to
        # the module's crop-before-out-conv
        y = y[:, :, pad[2]:h + pad[2], pad[0]:w + pad[0]]
    return y

# TODO(synk): attn_hook is an identity pass-through in the reference module
# (and the attention-probability tensor is only consumed by it); intentionally
# omitted -- no effect on the forward value.


if __name__ == "__main__":
    B, C, H, W = 2, 16, 16, 16
    num_heads, kernel_size, hidden = 2, 4, 8

    key = jax.random.PRNGKey(0)
    kx, kp = jax.random.split(key)
    params = init_params(kp, C, num_heads, kernel_size, hidden)
    prep = prepare_params(params, num_heads, kernel_size)   # one-time weight prep
    x = jax.random.normal(kx, (B, C, H, W), jnp.float32)

    fwd = jax.jit(lambda xx: local_self_attention_2d(
        xx, prep, num_heads, kernel_size, padding_mode='none'))
    y = fwd(x)
    jax.block_until_ready(y)

    y_ref = local_self_attention_2d(x, prep, num_heads, kernel_size,
                                    padding_mode='none', use_pallas=False)
    assert y.shape == (B, C, H, W)
    err = float(jnp.max(jnp.abs(y - y_ref)))
    assert jnp.allclose(y, y_ref, atol=2e-3, rtol=2e-3), err
    print("KERNEL_OK")
</pallas_src>

<mosaic_0001>
module attributes {stable_mosaic.version = 11 : i64} {
  func.func @_fused_local_attn_kernel(%arg0: i32, %arg1: i32, %arg2: memref<1x16x16x16xf32, #tpu.memory_space<vmem>>, %arg3: memref<16x48xf32, #tpu.memory_space<vmem>>, %arg4: memref<2x8x16xf32, #tpu.memory_space<vmem>>, %arg5: memref<1x16xf32, #tpu.memory_space<vmem>>, %arg6: memref<2x16x16xf32, #tpu.memory_space<vmem>>, %arg7: memref<1x16x16x16xf32, #tpu.memory_space<vmem>>) attributes {dimension_semantics = [#tpu.dimension_semantics<parallel>, #tpu.dimension_semantics<parallel>], iteration_bounds = array<i64: 2, 1>, scalar_prefetch = 0 : i64, scratch_operands = 0 : i64, tpu.core_type = #tpu.core_type<tc>, window_params = [{transform_indices = @transform_0, window_bounds = array<i64: 1, 16, 16, 16>}, {pipeline_mode = #tpu.pipeline_mode<synchronous>, transform_indices = @transform_1, window_bounds = array<i64: 16, 48>}, {pipeline_mode = #tpu.pipeline_mode<synchronous>, transform_indices = @transform_2, window_bounds = array<i64: 2, 8, 16>}, {pipeline_mode = #tpu.pipeline_mode<synchronous>, transform_indices = @transform_3, window_bounds = array<i64: 1, 16>}, {pipeline_mode = #tpu.pipeline_mode<synchronous>, transform_indices = @transform_4, window_bounds = array<i64: 2, 16, 16>}, {transform_indices = @transform_5, window_bounds = array<i64: 1, 16, 16, 16>}]} {
    %c0 = arith.constant 0 : index
    %c0_0 = arith.constant 0 : index
    %c0_1 = arith.constant 0 : index
    %c0_2 = arith.constant 0 : index
    %0 = vector.load %arg2[%c0, %c0_0, %c0_1, %c0_2] : memref<1x16x16x16xf32, #tpu.memory_space<vmem>>, vector<1x16x16x16xf32>
    %1 = vector.shape_cast %0 : vector<1x16x16x16xf32> to vector<16x16x16xf32>
    %2 = vector.shape_cast %1 : vector<16x16x16xf32> to vector<256x16xf32>
    %c0_3 = arith.constant 0 : index
    %c0_4 = arith.constant 0 : index
    %3 = vector.load %arg3[%c0_3, %c0_4] : memref<16x48xf32, #tpu.memory_space<vmem>>, vector<16x48xf32>
    %cst = arith.constant dense<0.000000e+00> : vector<256x48xf32>
    %4 = tpu.matmul %2, %3, %cst {dimension_numbers = #tpu.dot_dimension_numbers<[1], [0], [0], [1], [0, 0, 1, 1], [], []>} : vector<256x16xf32>, vector<16x48xf32>, vector<256x48xf32> -> vector<256x48xf32>
    %cst_5 = arith.constant 0.000000e+00 : f32
    %5 = vector.broadcast %cst_5 : f32 to vector<256x16xf32>
    %6 = vector.extract_strided_slice %4 {offsets = [0, 0], sizes = [256, 8], strides = [1, 1]} : vector<256x48xf32> to vector<256x8xf32>
    %7 = vector.shape_cast %6 : vector<256x8xf32> to vector<16x16x8xf32>
    %8 = vector.extract_strided_slice %4 {offsets = [0, 16], sizes = [256, 8], strides = [1, 1]} : vector<256x48xf32> to vector<256x8xf32>
    %9 = vector.shape_cast %8 : vector<256x8xf32> to vector<16x16x8xf32>
    %10 = vector.extract_strided_slice %4 {offsets = [0, 32], sizes = [256, 8], strides = [1, 1]} : vector<256x48xf32> to vector<256x8xf32>
    %11 = vector.shape_cast %10 : vector<256x8xf32> to vector<16x16x8xf32>
    "tpu.trace_start"() <{level = 10 : i32, message = "wqc,wkc->wqk"}> : () -> ()
    %cst_6 = arith.constant dense<0.000000e+00> : vector<16x16x16xf32>
    %12 = tpu.matmul %7, %9, %cst_6 {dimension_numbers = #tpu.dot_dimension_numbers<[2], [2], [1], [1], [0, 0, 0, 1, 1, 1], [0], [0]>} : vector<16x16x8xf32>, vector<16x16x8xf32>, vector<16x16x16xf32> -> vector<16x16x16xf32>
    "tpu.trace_stop"() : () -> ()
    %c0_7 = arith.constant 0 : index
    %c0_8 = arith.constant 0 : index
    %c0_9 = arith.constant 0 : index
    %13 = vector.load %arg6[%c0_7, %c0_8, %c0_9] : memref<2x16x16xf32, #tpu.memory_space<vmem>>, vector<1x16x16xf32>
    %14 = vector.shape_cast %13 : vector<1x16x16xf32> to vector<16x16xf32>
    %15 = vector.shape_cast %14 : vector<16x16xf32> to vector<1x16x16xf32>
    %16 = vector.broadcast %15 : vector<1x16x16xf32> to vector<16x16x16xf32>
    %17 = arith.addf %12, %16 : vector<16x16x16xf32>
    %cst_10 = arith.constant dense<0xFF800000> : vector<16x16xf32>
    %18 = vector.multi_reduction <maximumf>, %17, %cst_10 [2] : vector<16x16x16xf32> to vector<16x16xf32>
    %19 = vector.shape_cast %18 : vector<16x16xf32> to vector<16x16x1xf32>
    %20 = vector.broadcast %19 : vector<16x16x1xf32> to vector<16x16x16xf32>
    %21 = arith.subf %17, %20 : vector<16x16x16xf32>
    %22 = math.exp %21 : vector<16x16x16xf32>
    %cst_11 = arith.constant dense<0.000000e+00> : vector<16x16xf32>
    %23 = vector.multi_reduction <add>, %22, %cst_11 [2] : vector<16x16x16xf32> to vector<16x16xf32>
    %24 = vector.shape_cast %23 : vector<16x16xf32> to vector<16x16x1xf32>
    "tpu.trace_start"() <{level = 10 : i32, message = "wqk,wkc->wqc"}> : () -> ()
    %cst_12 = arith.constant dense<0.000000e+00> : vector<16x16x8xf32>
    %25 = tpu.matmul %22, %11, %cst_12 {dimension_numbers = #tpu.dot_dimension_numbers<[2], [1], [1], [2], [0, 0, 0, 1, 1, 2], [0], [0]>} : vector<16x16x16xf32>, vector<16x16x8xf32>, vector<16x16x8xf32> -> vector<16x16x8xf32>
    "tpu.trace_stop"() : () -> ()
    %cst_13 = arith.constant 1.000000e+00 : f32
    %26 = vector.broadcast %cst_13 : f32 to vector<16x16x1xf32>
    %27 = arith.divf %26, %24 : vector<16x16x1xf32>
    %28 = vector.broadcast %27 : vector<16x16x1xf32> to vector<16x16x8xf32>
    %29 = arith.mulf %25, %28 : vector<16x16x8xf32>
    %30 = vector.shape_cast %29 : vector<16x16x8xf32> to vector<256x8xf32>
    %c0_14 = arith.constant 0 : index
    %c0_15 = arith.constant 0 : index
    %c0_16 = arith.constant 0 : index
    %31 = vector.load %arg4[%c0_14, %c0_15, %c0_16] : memref<2x8x16xf32, #tpu.memory_space<vmem>>, vector<1x8x16xf32>
    %32 = vector.shape_cast %31 : vector<1x8x16xf32> to vector<8x16xf32>
    %cst_17 = arith.constant dense<0.000000e+00> : vector<256x16xf32>
    %33 = tpu.matmul %30, %32, %cst_17 {dimension_numbers = #tpu.dot_dimension_numbers<[1], [0], [0], [1], [0, 0, 1, 1], [], []>} : vector<256x8xf32>, vector<8x16xf32>, vector<256x16xf32> -> vector<256x16xf32>
    %34 = arith.addf %5, %33 : vector<256x16xf32>
    %35 = vector.extract_strided_slice %4 {offsets = [0, 8], sizes = [256, 8], strides = [1, 1]} : vector<256x48xf32> to vector<256x8xf32>
    %36 = vector.shape_cast %35 : vector<256x8xf32> to vector<16x16x8xf32>
    %37 = vector.extract_strided_slice %4 {offsets = [0, 24], sizes = [256, 8], strides = [1, 1]} : vector<256x48xf32> to vector<256x8xf32>
    %38 = vector.shape_cast %37 : vector<256x8xf32> to vector<16x16x8xf32>
    %39 = vector.extract_strided_slice %4 {offsets = [0, 40], sizes = [256, 8], strides = [1, 1]} : vector<256x48xf32> to vector<256x8xf32>
    %40 = vector.shape_cast %39 : vector<256x8xf32> to vector<16x16x8xf32>
    "tpu.trace_start"() <{level = 10 : i32, message = "wqc,wkc->wqk"}> : () -> ()
    %cst_18 = arith.constant dense<0.000000e+00> : vector<16x16x16xf32>
    %41 = tpu.matmul %36, %38, %cst_18 {dimension_numbers = #tpu.dot_dimension_numbers<[2], [2], [1], [1], [0, 0, 0, 1, 1, 1], [0], [0]>} : vector<16x16x8xf32>, vector<16x16x8xf32>, vector<16x16x16xf32> -> vector<16x16x16xf32>
    "tpu.trace_stop"() : () -> ()
    %c1 = arith.constant 1 : index
    %c0_19 = arith.constant 0 : index
    %c0_20 = arith.constant 0 : index
    %42 = vector.load %arg6[%c1, %c0_19, %c0_20] : memref<2x16x16xf32, #tpu.memory_space<vmem>>, vector<1x16x16xf32>
    %43 = vector.shape_cast %42 : vector<1x16x16xf32> to vector<16x16xf32>
    %44 = vector.shape_cast %43 : vector<16x16xf32> to vector<1x16x16xf32>
    %45 = vector.broadcast %44 : vector<1x16x16xf32> to vector<16x16x16xf32>
    %46 = arith.addf %41, %45 : vector<16x16x16xf32>
    %cst_21 = arith.constant dense<0xFF800000> : vector<16x16xf32>
    %47 = vector.multi_reduction <maximumf>, %46, %cst_21 [2] : vector<16x16x16xf32> to vector<16x16xf32>
    %48 = vector.shape_cast %47 : vector<16x16xf32> to vector<16x16x1xf32>
    %49 = vector.broadcast %48 : vector<16x16x1xf32> to vector<16x16x16xf32>
    %50 = arith.subf %46, %49 : vector<16x16x16xf32>
    %51 = math.exp %50 : vector<16x16x16xf32>
    %cst_22 = arith.constant dense<0.000000e+00> : vector<16x16xf32>
    %52 = vector.multi_reduction <add>, %51, %cst_22 [2] : vector<16x16x16xf32> to vector<16x16xf32>
    %53 = vector.shape_cast %52 : vector<16x16xf32> to vector<16x16x1xf32>
    "tpu.trace_start"() <{level = 10 : i32, message = "wqk,wkc->wqc"}> : () -> ()
    %cst_23 = arith.constant dense<0.000000e+00> : vector<16x16x8xf32>
    %54 = tpu.matmul %51, %40, %cst_23 {dimension_numbers = #tpu.dot_dimension_numbers<[2], [1], [1], [2], [0, 0, 0, 1, 1, 2], [0], [0]>} : vector<16x16x16xf32>, vector<16x16x8xf32>, vector<16x16x8xf32> -> vector<16x16x8xf32>
    "tpu.trace_stop"() : () -> ()
    %cst_24 = arith.constant 1.000000e+00 : f32
    %55 = vector.broadcast %cst_24 : f32 to vector<16x16x1xf32>
    %56 = arith.divf %55, %53 : vector<16x16x1xf32>
    %57 = vector.broadcast %56 : vector<16x16x1xf32> to vector<16x16x8xf32>
    %58 = arith.mulf %54, %57 : vector<16x16x8xf32>
    %59 = vector.shape_cast %58 : vector<16x16x8xf32> to vector<256x8xf32>
    %c1_25 = arith.constant 1 : index
    %c0_26 = arith.constant 0 : index
    %c0_27 = arith.constant 0 : index
    %60 = vector.load %arg4[%c1_25, %c0_26, %c0_27] : memref<2x8x16xf32, #tpu.memory_space<vmem>>, vector<1x8x16xf32>
    %61 = vector.shape_cast %60 : vector<1x8x16xf32> to vector<8x16xf32>
    %cst_28 = arith.constant dense<0.000000e+00> : vector<256x16xf32>
    %62 = tpu.matmul %59, %61, %cst_28 {dimension_numbers = #tpu.dot_dimension_numbers<[1], [0], [0], [1], [0, 0, 1, 1], [], []>} : vector<256x8xf32>, vector<8x16xf32>, vector<256x16xf32> -> vector<256x16xf32>
    %63 = arith.addf %34, %62 : vector<256x16xf32>
    %c0_29 = arith.constant 0 : index
    %c0_30 = arith.constant 0 : index
    %64 = vector.load %arg5[%c0_29, %c0_30] : memref<1x16xf32, #tpu.memory_space<vmem>>, vector<1x16xf32>
    %65 = vector.broadcast %64 : vector<1x16xf32> to vector<256x16xf32>
    %66 = arith.addf %63, %65 : vector<256x16xf32>
    %67 = vector.shape_cast %66 : vector<256x16xf32> to vector<16x16x16xf32>
    %c0_31 = arith.constant 0 : index
    %c0_32 = arith.constant 0 : index
    %c0_33 = arith.constant 0 : index
    %c0_34 = arith.constant 0 : index
    %68 = vector.load %arg7[%c0_31, %c0_32, %c0_33, %c0_34] : memref<1x16x16x16xf32, #tpu.memory_space<vmem>>, vector<1x16x16x16xf32>
    %69 = vector.shape_cast %68 : vector<1x16x16x16xf32> to vector<16x16x16xf32>
    %70 = vector.shape_cast %67 : vector<16x16x16xf32> to vector<1x16x16x16xf32>
    tpu.vector_store %arg7[%c0_31, %c0_32, %c0_33, %c0_34], %70 {strides = array<i32>} : memref<1x16x16x16xf32, #tpu.memory_space<vmem>>, vector<1x16x16x16xf32>,
    return
  }
  func.func @transform_0(%arg0: i32, %arg1: i32) -> (i32, i32, i32, i32) {
    %c0_i32 = arith.constant 0 : i32
    %c0_i32_0 = arith.constant 0 : i32
    %c0_i32_1 = arith.constant 0 : i32
    return %arg0, %arg1, %c0_i32, %c0_i32_0 : i32, i32, i32, i32
  }
  func.func @transform_1(%arg0: i32, %arg1: i32) -> (i32, i32) {
    %c0_i32 = arith.constant 0 : i32
    %c0_i32_0 = arith.constant 0 : i32
    %c0_i32_1 = arith.constant 0 : i32
    return %c0_i32, %c0_i32_0 : i32, i32
  }
  func.func @transform_2(%arg0: i32, %arg1: i32) -> (i32, i32, i32) {
    %c0_i32 = arith.constant 0 : i32
    %c0_i32_0 = arith.constant 0 : i32
    %c0_i32_1 = arith.constant 0 : i32
    %c0_i32_2 = arith.constant 0 : i32
    return %c0_i32, %c0_i32_0, %c0_i32_1 : i32, i32, i32
  }
  func.func @transform_3(%arg0: i32, %arg1: i32) -> (i32, i32) {
    %c0_i32 = arith.constant 0 : i32
    %c0_i32_0 = arith.constant 0 : i32
    %c0_i32_1 = arith.constant 0 : i32
    return %c0_i32, %c0_i32_0 : i32, i32
  }
  func.func @transform_4(%arg0: i32, %arg1: i32) -> (i32, i32, i32) {
    %c0_i32 = arith.constant 0 : i32
    %c0_i32_0 = arith.constant 0 : i32
    %c0_i32_1 = arith.constant 0 : i32
    %c0_i32_2 = arith.constant 0 : i32
    return %c0_i32, %c0_i32_0, %c0_i32_1 : i32, i32, i32
  }
  func.func @transform_5(%arg0: i32, %arg1: i32) -> (i32, i32, i32, i32) {
    %c0_i32 = arith.constant 0 : i32
    %c0_i32_0 = arith.constant 0 : i32
    %c0_i32_1 = arith.constant 0 : i32
    return %arg0, %arg1, %c0_i32, %c0_i32_0 : i32, i32, i32, i32
  }
}

</mosaic_0001>

<bundles_post_ra>
// kernel: _lambda_.1
= control target key start
LH: loop header
LB: loop body
LE: loop exit
PB: predicated region body
PF: predicated region fallthrough
CT: control target
= control target key end

     0   :  { %s9480_s18 = smov 0   ;;  %s9482_s19 = smov 0   ;;  %s11668_s0 = inlined_call_operand.vmem [shape: f32[2,16,16,16], index: 0, kind: input, shape index: {}]   ;;  %s11669_s1 = inlined_call_operand.vmem [shape: f32[16,48], index: 1, kind: input, shape index: {}]   ;;  %s11670_s2 = inlined_call_operand.vmem [shape: f32[2,8,16], index: 2, kind: input, shape index: {}]   ;;  %s11671_s3 = inlined_call_operand.vmem [shape: f32[1,16], index: 3, kind: input, shape index: {}]   ;;  %s11672_s4 = inlined_call_operand.vmem [shape: f32[2,16,16], index: 4, kind: input, shape index: {}]   ;;  %s11673_s5 = inlined_call_operand.vmem [shape: f32[2,16,16,16], index: 5, kind: output, shape index: {}]  }
   0x1   :  { %s9484_s20 = smov 0  }
   0x2 LB: > { %s27_s21 = sadd.s32 1, %s9439_s19  ;;  %p7879_p0 = scmp.ge.s32.totalorder %s9443_s20, 1  ;;  %s9443_s20 = sphi %s9484_s20, %s15_s20   ;;  %s9439_s19 = sphi %s9482_s19, %s12044_s19   ;;  %s9435_s18 = sphi %s9480_s18, %s12043_s18  }
   0x3   : > { %p29_p1 = scmp.ge.s32.totalorder %s27_s21, 2  ;;  %p209_p2 = scmp.lt.s32.totalorder %s9443_s20, 3 }
   0x5   : > { %s12046_s21 = smov (%p29_p1, %s27_s21), 0  ;;  %p210_p3 = pnand %p7879_p0, %p209_p2 }
   0x7   : > { %213 = sbr.rel (%p210_p3) target bundleno = 1689 (0x699), region = 40 }
   0xc   : > { %v302_v0 = vld [vmem:[%s11669_s1 + $0x8] sm:$0xff]  ;;  %v301_v1 = vld [vmem:[%s11669_s1] sm:$0xff]  ;;  %p248_p4 = scmp.lt.s32.totalorder %s9435_s18, 1  ;;  %vm303_vm0 = vcmask 130048   ;;  %vm633_vm1 = vcmask 64512   ;;  %s9445_s30 = smov 112  }
   0xd   : > { %8536 = vmatprep.subr.mxu0 %v302_v0  ;;  %s9446_s6 = smov 96   ;;  %s9447_s7 = smov 104  }
   0xe   : > { %8537 = vmatpush3.msra.mxu0 %v302_v0  ;;  %s12048_s18 = smov (!%p248_p4, %s9435_s18), 1  ;;  %s9448_s8 = smov 120  }
   0xf   : > { %8538 = vmatprep.subr.mxu0 %v301_v1  ;;  %s8178_s26 = sshll.u32 %s12048_s18, 8  ;;  %s9449_s13 = smov 88  }
  0x10   : > { %8539 = vmatpush3.msra.mxu0 %v301_v1  ;;  %s9512_s29 = scalar_lea.vmem %s11668_s0, %s8178_s26 }
  0x11   : > { %v269_v2 = vld [vmem:[%s9512_s29] sm:$0xff]  ;;  %v270_v3 = vld [vmem:[%s9512_s29 + $0x8] sm:$0xff]  ;;  %v271_v4 = vld [vmem:[%s9512_s29 + $0x10] sm:$0xff] }
  0x12   : > { %8540 = vmatprep.mubr.msk.f32.mxu0 %vm303_vm0, %v269_v2  ;;  %v272_v5 = vld [vmem:[%s9512_s29 + $0x18] sm:$0xff]  ;;  %v273_v6 = vld [vmem:[%s9512_s29 + $0x20] sm:$0xff]  ;;  %v274_v7 = vld [vmem:[%s9512_s29 + $0x28] sm:$0xff] }
  0x13   : > { %8541 = vmatmul.mubr.msk.f32.vlgmr.msra.gmra.mxu0 %vm303_vm0, %v270_v3  ;;  %v275_v8 = vld [vmem:[%s9512_s29 + $0x30] sm:$0xff]  ;;  %v276_v9 = vld [vmem:[%s9512_s29 + $0x38] sm:$0xff]  ;;  %v277_v10 = vld [vmem:[%s9512_s29 + $0x40] sm:$0xff] }
  0x14   : > { %8543 = vmatprep.mubr.msk.f32.mxu0 %vm303_vm0, %v271_v4  ;;  %v278_v11 = vld [vmem:[%s9512_s29 + $0x48] sm:$0xff]  ;;  %v279_v12 = vld [vmem:[%s9512_s29 + $0x50] sm:$0xff]  ;;  %v280_v13 = vld [vmem:[%s9512_s29 + $0x58] sm:$0xff] }
  0x15   : > { %v281_v14 = vld [vmem:[%s9512_s29 + $0x60] sm:$0xff]  ;;  %v282_v15 = vld [vmem:[%s9512_s29 + $0x68] sm:$0xff]  ;;  %v283_v16 = vld [vmem:[%s9512_s29 + $0x70] sm:$0xff] }
  0x16   : > { %v284_v17 = vld [vmem:[%s9512_s29 + $0x78] sm:$0xff]  ;;  %v285_v18 = vld [vmem:[%s9512_s29 + $0x80] sm:$0xff]  ;;  %v286_v19 = vld [vmem:[%s9512_s29 + $0x88] sm:$0xff] }
  0x17   : > { %8544 = vmatmul.mubr.msk.f32.gmra.mxu0 %vm303_vm0, %v272_v5  ;;  %v287_v20 = vld [vmem:[%s9512_s29 + $0x90] sm:$0xff]  ;;  %v288_v21 = vld [vmem:[%s9512_s29 + $0x98] sm:$0xff]  ;;  %v289_v22 = vld [vmem:[%s9512_s29 + $0xa0] sm:$0xff] }
  0x18   : > { %8546 = vmatprep.mubr.msk.f32.mxu0 %vm303_vm0, %v273_v6  ;;  %v290_v23 = vld [vmem:[%s9512_s29 + $0xa8] sm:$0xff]  ;;  %v291_v24 = vld [vmem:[%s9512_s29 + $0xb0] sm:$0xff]  ;;  %v292_v25 = vld [vmem:[%s9512_s29 + $0xb8] sm:$0xff] }
  0x19   : > { %v293_v26 = vld [vmem:[%s9512_s29 + $0xc0] sm:$0xff]  ;;  %v294_v27 = vld [vmem:[%s9512_s29 + $0xc8] sm:$0xff]  ;;  %v295_v28 = vld [vmem:[%s9512_s29 + $0xd0] sm:$0xff] }
  0x1a   : > { %v296_v29 = vld [vmem:[%s9512_s29 + $0xd8] sm:$0xff]  ;;  %v297_v30 = vld [vmem:[%s9512_s29 + $0xe0] sm:$0xff]  ;;  %v298_v31 = vld [vmem:[%s9512_s29 + $0xe8] sm:$0xff] }
  0x1b   : > { %8547 = vmatmul.mubr.msk.f32.gmra.mxu0 %vm303_vm0, %v274_v7  ;;  %v299_v32 = vld [vmem:[%s9512_s29 + $0xf0] sm:$0xff]  ;;  %v300_v33 = vld [vmem:[%s9512_s29 + $0xf8] sm:$0xff] }
  0x1c   : > { %8549 = vmatprep.mubr.msk.f32.mxu0 %vm303_vm0, %v275_v8 }
  0x1f   : > { %8550 = vmatmul.mubr.msk.f32.gmra.mxu0 %vm303_vm0, %v276_v9 }
  0x20   : > { %8552 = vmatprep.mubr.msk.f32.mxu0 %vm303_vm0, %v277_v10 }
  0x23   : > { %8553 = vmatmul.mubr.msk.f32.gmra.mxu0 %vm303_vm0, %v278_v11 }
  0x24   : > { %8555 = vmatprep.mubr.msk.f32.mxu0 %vm303_vm0, %v279_v12 }
  0x27   : > { %8556 = vmatmul.mubr.msk.f32.gmra.mxu0 %vm303_vm0, %v280_v13 }
  0x28   : > { %8558 = vmatprep.mubr.msk.f32.mxu0 %vm303_vm0, %v281_v14 }
  0x2b   : > { %8559 = vmatmul.mubr.msk.f32.gmra.mxu0 %vm303_vm0, %v282_v15 }
  0x2c   : > { %8561 = vmatprep.mubr.msk.f32.mxu0 %vm303_vm0, %v283_v16 }
  0x2f   : > { %8562 = vmatmul.mubr.msk.f32.gmra.mxu0 %vm303_vm0, %v284_v17 }
  0x30   : > { %8564 = vmatprep.mubr.msk.f32.mxu0 %vm303_vm0, %v285_v18 }
  0x33   : > { %8565 = vmatmul.mubr.msk.f32.gmra.mxu0 %vm303_vm0, %v286_v19 }
  0x34   : > { %8567 = vmatprep.mubr.msk.f32.mxu0 %vm303_vm0, %v287_v20 }
  0x37   : > { %8568 = vmatmul.mubr.msk.f32.gmra.mxu0 %vm303_vm0, %v288_v21 }
  0x38   : > { %8570 = vmatprep.mubr.msk.f32.mxu0 %vm303_vm0, %v289_v22 }
  0x3b   : > { %8571 = vmatmul.mubr.msk.f32.gmra.mxu0 %vm303_vm0, %v290_v23 }
  0x3c   : > { %8573 = vmatprep.mubr.msk.f32.mxu0 %vm303_vm0, %v291_v24 }
  0x3f   : > { %8574 = vmatmul.mubr.msk.f32.gmra.mxu0 %vm303_vm0, %v292_v25 }
  0x40   : > { %8576 = vmatprep.mubr.msk.f32.mxu0 %vm303_vm0, %v293_v26 }
  0x43   : > { %8577 = vmatmul.mubr.msk.f32.gmra.mxu0 %vm303_vm0, %v294_v27 }
  0x44   : > { %8579 = vmatprep.mubr.msk.f32.mxu0 %vm303_vm0, %v295_v28 }
  0x47   : > { %8580 = vmatmul.mubr.msk.f32.gmra.mxu0 %vm303_vm0, %v296_v29 }
  0x48   : > { %8582 = vmatprep.mubr.msk.f32.mxu0 %vm303_vm0, %v297_v30 }
  0x4b   : > { %8583 = vmatmul.mubr.msk.f32.gmra.mxu0 %vm303_vm0, %v298_v31 }
  0x4c   : > { %8585 = vmatprep.mubr.msk.f32.mxu0 %vm303_vm0, %v299_v32 }
  0x4f   : > { %8586 = vmatmul.mubr.msk.f32.gmra.mxu0 %vm303_vm0, %v300_v33 }
  0xd3   : > { %v9578_v34 = vpop.f32.mrf.mxu0 }
  0xd4   : > { %11767 = vst [vmem:[#allocation2_spill] sm:$0xff] %v9578_v34  ;;  %631 = vrot.lane.b32.xlu0 %v9578_v34, %s9445_s30 }
  0xd5   : > { %v9582_v35 = vpop.f32.mrf.mxu0 }
  0xd6   : > { %8592 = vmatprep.mubr.msk.f32.mxu1 %vm633_vm1, %v9582_v35 }
  0xd7   : > { %v9586_v36 = vpop.f32.mrf.mxu0 }
  0xd8   : > { %11768 = vst [vmem:[#allocation3_spill] sm:$0xff] %v9586_v36  ;;  %629 = vrot.lane.b32.xlu0 %v9582_v35, %s9445_s30  ;;  %721 = vrot.lane.b32.xlu1 %v9586_v36, %s9445_s30 }
  0xd9   : > { %v9592_v37 = vpop.f32.mrf.mxu0 }
  0xda   : > { %11769 = vst [vmem:[#allocation4_spill] sm:$0xff] %v9592_v37 }
  0xdb   : > { %v9594_v38 = vpop.f32.mrf.mxu0 }
  0xdc   : > { %719 = vrot.lane.b32.xlu1 %v9592_v37, %s9445_s30  ;;  %810 = vrot.lane.b32.xlu0 %v9594_v38, %s9445_s30 }
  0xdd   : > { %v9600_v39 = vpop.f32.mrf.mxu0 }
  0xde   : > { %11770 = vst [vmem:[#allocation5_spill] sm:$0xff] %v9600_v39 }
  0xdf   : > { %v9602_v40 = vpop.f32.mrf.mxu0 }
  0xe0   : > { %808 = vrot.lane.b32.xlu1 %v9600_v39, %s9445_s30  ;;  %899 = vrot.lane.b32.xlu0 %v9602_v40, %s9445_s30 }
  0xe1   : > { %v9608_v41 = vpop.f32.mrf.mxu0 }
  0xe2   : > { %11771 = vst [vmem:[#allocation6_spill] sm:$0xff] %v9608_v41 }
  0xe3   : > { %v9610_v42 = vpop.f32.mrf.mxu0 }
  0xe4   : > { %897 = vrot.lane.b32.xlu1 %v9608_v41, %s9445_s30  ;;  %988 = vrot.lane.b32.xlu0 %v9610_v42, %s9445_s30 }
  0xe5   : > { %v9616_v43 = vpop.f32.mrf.mxu0 }
  0xe6   : > { %11772 = vst [vmem:[#allocation7_spill] sm:$0xff] %v9616_v43 }
  0xe7   : > { %v9618_v44 = vpop.f32.mrf.mxu0 }
  0xe8   : > { %986 = vrot.lane.b32.xlu1 %v9616_v43, %s9445_s30  ;;  %1077 = vrot.lane.b32.xlu0 %v9618_v44, %s9445_s30 }
  0xe9   : > { %v9624_v45 = vpop.f32.mrf.mxu0 }
  0xea   : > { %11773 = vst [vmem:[#allocation8_spill] sm:$0xff] %v9624_v45 }
  0xeb   : > { %v9626_v46 = vpop.f32.mrf.mxu0 }
  0xec   : > { %11774 = vst [vmem:[#allocation9_spill] sm:$0xff] %v9626_v46  ;;  %1075 = vrot.lane.b32.xlu1 %v9624_v45, %s9445_s30  ;;  %1166 = vrot.lane.b32.xlu0 %v9626_v46, %s9445_s30 }
  0xed   : > { %v9632_v47 = vpop.f32.mrf.mxu0 }
  0xee   : > { %11775 = vst [vmem:[#allocation10_spill] sm:$0xff] %v9632_v47 }
  0xef   : > { %v9634_v48 = vpop.f32.mrf.mxu0 }
  0xf0   : > { %1164 = vrot.lane.b32.xlu1 %v9632_v47, %s9445_s30  ;;  %1255 = vrot.lane.b32.xlu0 %v9634_v48, %s9445_s30 }
  0xf1   : > { %v9640_v49 = vpop.f32.mrf.mxu0 }
  0xf3   : > { %v9642_v50 = vpop.f32.mrf.mxu0 }
  0xf4   : > { %1253 = vrot.lane.b32.xlu1 %v9640_v49, %s9445_s30  ;;  %1344 = vrot.lane.b32.xlu0 %v9642_v50, %s9445_s30 }
  0xf5   : > { %v9648_v51 = vpop.f32.mrf.mxu0 }
  0xf6   : > { %8648 = vmatprep.mubr.msk.f32.mxu0 %vm633_vm1, %v9648_v51 }
  0xf7   : > { %v9652_v52 = vpop.f32.mrf.mxu0 }
  0xf8   : > { %1342 = vrot.lane.b32.xlu1 %v9648_v51, %s9445_s30  ;;  %1433 = vrot.lane.b32.xlu0 %v9652_v52, %s9445_s30 }
  0xf9   : > { %v9658_v53 = vpop.f32.mrf.mxu0 }
  0xfb   : > { %v9660_v54 = vpop.f32.mrf.mxu0 }
  0xfc   : > { %11776 = vst [vmem:[#allocation11_spill] sm:$0xff] %v9660_v54  ;;  %1431 = vrot.lane.b32.xlu1 %v9658_v53, %s9445_s30  ;;  %1522 = vrot.lane.b32.xlu0 %v9660_v54, %s9445_s30 }
  0xfd   : > { %v9666_v55 = vpop.f32.mrf.mxu0 }
  0xff   : > { %v9668_v56 = vpop.f32.mrf.mxu0 }
 0x100   : > { %1520 = vrot.lane.b32.xlu1 %v9666_v55, %s9445_s30  ;;  %1611 = vrot.lane.b32.xlu0 %v9668_v56, %s9445_s30 }
 0x101   : > { %v9674_v57 = vpop.f32.mrf.mxu0 }
 0x103   : > { %v9676_v58 = vpop.f32.mrf.mxu0 }
 0x104   : > { %1609 = vrot.lane.b32.xlu1 %v9674_v57, %s9445_s30  ;;  %1700 = vrot.lane.b32.xlu0 %v9676_v58, %s9445_s30 }
 0x105   : > { %v9682_v59 = vpop.f32.mrf.mxu0 }
 0x107   : > { %v9684_v60 = vpop.f32.mrf.mxu0 }
 0x108   : > { %1698 = vrot.lane.b32.xlu1 %v9682_v59, %s9445_s30  ;;  %1789 = vrot.lane.b32.xlu0 %v9684_v60, %s9445_s30 }
 0x109   : > { %v9690_v61 = vpop.f32.mrf.mxu0 }
 0x10b   : > { %v9692_v62 = vpop.f32.mrf.mxu0 }
 0x10c   : > { %1787 = vrot.lane.b32.xlu1 %v9690_v61, %s9445_s30  ;;  %1878 = vrot.lane.b32.xlu0 %v9692_v62, %s9445_s30 }
 0x10d   : > { %v9698_v63 = vpop.f32.mrf.mxu0 }
 0x10f   : > { %v9700_v0 = vpop.f32.mrf.mxu0 }
 0x110   : > { %1876 = vrot.lane.b32.xlu1 %v9698_v63, %s9445_s30  ;;  %1967 = vrot.lane.b32.xlu0 %v9700_v0, %s9445_s30 }
 0x111   : > { %v9706_v1 = vpop.f32.mrf.mxu0 }
 0x114   : > { %2340 = vrot.lane.b32.xlu0 %v9582_v35, %s9446_s6  ;;  %1965 = vrot.lane.b32.xlu1 %v9706_v1, %s9445_s30 }
 0x118   : > { %2516 = vrot.lane.b32.xlu0 %v9594_v38, %s9446_s6  ;;  %2342 = vrot.lane.b32.xlu1 %v9578_v34, %s9446_s6 }
 0x11c   : > { %2427 = vrot.lane.b32.xlu0 %v9592_v37, %s9446_s6  ;;  %2429 = vrot.lane.b32.xlu1 %v9586_v36, %s9446_s6 }
 0x120   : > { %2514 = vrot.lane.b32.xlu0 %v9600_v39, %s9446_s6  ;;  %2603 = vrot.lane.b32.xlu1 %v9602_v40, %s9446_s6 }
 0x124   : > { %2601 = vrot.lane.b32.xlu0 %v9608_v41, %s9446_s6  ;;  %2690 = vrot.lane.b32.xlu1 %v9610_v42, %s9446_s6 }
 0x128   : > { %2951 = vrot.lane.b32.xlu0 %v9634_v48, %s9446_s6  ;;  %2688 = vrot.lane.b32.xlu1 %v9616_v43, %s9446_s6 }
 0x12c   : > { %2949 = vrot.lane.b32.xlu0 %v9640_v49, %s9446_s6  ;;  %2777 = vrot.lane.b32.xlu1 %v9618_v44, %s9446_s6 }
 0x130   : > { %3125 = vrot.lane.b32.xlu0 %v9652_v52, %s9446_s6  ;;  %2864 = vrot.lane.b32.xlu1 %v9626_v46, %s9446_s6 }
 0x134   : > { %3123 = vrot.lane.b32.xlu0 %v9658_v53, %s9446_s6  ;;  %2775 = vrot.lane.b32.xlu1 %v9624_v45, %s9446_s6 }
 0x138   : > { %3299 = vrot.lane.b32.xlu0 %v9668_v56, %s9446_s6  ;;  %2862 = vrot.lane.b32.xlu1 %v9632_v47, %s9446_s6 }
 0x13c   : > { %3297 = vrot.lane.b32.xlu0 %v9674_v57, %s9446_s6  ;;  %3038 = vrot.lane.b32.xlu1 %v9642_v50, %s9446_s6 }
 0x140   : > { %3473 = vrot.lane.b32.xlu0 %v9684_v60, %s9446_s6  ;;  %3036 = vrot.lane.b32.xlu1 %v9648_v51, %s9446_s6 }
 0x144   : > { %3471 = vrot.lane.b32.xlu0 %v9690_v61, %s9446_s6  ;;  %3212 = vrot.lane.b32.xlu1 %v9660_v54, %s9446_s6 }
 0x146   : > { %v632_v2 = vpop.permute.xlu0 %631 }
 0x147   : > { %8588 = vmatprep.subr.msk.mxu1 %vm633_vm1, %v632_v2 }
 0x148   : > { %8589 = vmatpush3.xpose.msk.msra.mxu1 %vm633_vm1, %v632_v2  ;;  %3647 = vrot.lane.b32.xlu0 %v9700_v0, %s9446_s6 }
 0x149   : > { %3210 = vrot.lane.b32.xlu1 %v9666_v55, %s9446_s6 }
 0x14a   : > { %v630_v3 = vpop.permute.xlu0 %629  ;;  %v722_v4 = vpop.permute.xlu1 %721 }
 0x14b   : > { %8590 = vmatprep.subr.msk.mxu1 %vm633_vm1, %v630_v3 }
 0x14c   : > { %8591 = vmatpush3.xpose.msk.msra.mxu1 %vm633_vm1, %v630_v3  ;;  %3929 = vrot.lane.b32.xlu0 %v9586_v36, %s9447_s7 }
 0x14d   : > { %3386 = vrot.lane.b32.xlu1 %v9676_v58, %s9446_s6  ;;  %8595 = vmatprep.subr.msk.mxu1 %vm633_vm1, %v722_v4 }
 0x14e   : > { %v720_v5 = vpop.permute.xlu1 %719  ;;  %v811_v6 = vpop.permute.xlu0 %810 }
 0x14f   : > { %8593 = vmatmul.mubr.msk.f32.vlgmr.msra.gmra.mxu1 %vm633_vm1, %v9578_v34 }
 0x150   : > { %8596 = vmatpush3.xpose.msk.msra.mxu1 %vm633_vm1, %v722_v4  ;;  %8599 = vmatprep.mubr.msk.f32.mxu1 %vm633_vm1, %v9592_v37 }
 0x151   : > { %3834 = vrot.lane.b32.xlu0 %v9578_v34, %s9448_s8  ;;  %3384 = vrot.lane.b32.xlu1 %v9682_v59, %s9446_s6 }
 0x152   : > { %8597 = vmatprep.subr.msk.mxu1 %vm633_vm1, %v720_v5  ;;  %v809_v7 = vpop.permute.xlu1 %808  ;;  %v900_v8 = vpop.permute.xlu0 %899 }
 0x154   : > { %8598 = vmatpush3.xpose.msk.msra.mxu1 %vm633_vm1, %v720_v5 }
 0x155   : > { %4020 = vrot.lane.b32.xlu0 %v9594_v38, %s9447_s7  ;;  %3560 = vrot.lane.b32.xlu1 %v9692_v62, %s9446_s6 }
 0x156   : > { %8602 = vmatprep.subr.msk.mxu1 %vm633_vm1, %v811_v6  ;;  %v898_v9 = vpop.permute.xlu1 %897  ;;  %v989_v10 = vpop.permute.xlu0 %988 }
 0x157   : > { %8600 = vmatmul.mubr.msk.f32.vlgmr.msra.gmra.mxu1 %vm633_vm1, %v9586_v36 }
 0x158   : > { %8603 = vmatpush3.xpose.msk.msra.mxu1 %vm633_vm1, %v811_v6  ;;  %8606 = vmatprep.mubr.msk.f32.mxu1 %vm633_vm1, %v9600_v39 }
 0x159   : > { %3925 = vrot.lane.b32.xlu0 %v9586_v36, %s9448_s8  ;;  %3558 = vrot.lane.b32.xlu1 %v9698_v63, %s9446_s6 }
 0x15a   : > { %8604 = vmatprep.subr.msk.mxu1 %vm633_vm1, %v809_v7  ;;  %v987_v11 = vpop.permute.xlu1 %986  ;;  %v1078_v12 = vpop.permute.xlu0 %1077 }
 0x15c   : > { %8605 = vmatpush3.xpose.msk.msra.mxu1 %vm633_vm1, %v809_v7 }
 0x15d   : > { %4111 = vrot.lane.b32.xlu0 %v9602_v40, %s9447_s7  ;;  %3838 = vrot.lane.b32.xlu1 %v9578_v34, %s9447_s7 }
 0x15e   : > { %8609 = vmatprep.subr.msk.mxu1 %vm633_vm1, %v900_v8  ;;  %v1076_v13 = vpop.permute.xlu1 %1075  ;;  %v1167_v14 = vpop.permute.xlu0 %1166 }
 0x15f   : > { %8607 = vmatmul.mubr.msk.f32.vlgmr.msra.gmra.mxu1 %vm633_vm1, %v9594_v38 }
 0x160   : > { %8610 = vmatpush3.xpose.msk.msra.mxu1 %vm633_vm1, %v900_v8  ;;  %8613 = vmatprep.mubr.msk.f32.mxu1 %vm633_vm1, %v9608_v41 }
 0x161   : > { %4016 = vrot.lane.b32.xlu0 %v9594_v38, %s9448_s8  ;;  %3836 = vrot.lane.b32.xlu1 %v9582_v35, %s9447_s7 }
 0x162   : > { %8611 = vmatprep.subr.msk.mxu1 %vm633_vm1, %v898_v9  ;;  %v1165_v15 = vpop.permute.xlu1 %1164  ;;  %v9815_v16 = vpop.permute.xlu0 %1255 }
 0x164   : > { %8612 = vmatpush3.xpose.msk.msra.mxu1 %vm633_vm1, %v898_v9 }
 0x165   : > { %4202 = vrot.lane.b32.xlu0 %v9610_v42, %s9447_s7  ;;  %3832 = vrot.lane.b32.xlu1 %v9582_v35, %s9448_s8 }
 0x166   : > { %8616 = vmatprep.subr.msk.mxu1 %vm633_vm1, %v989_v10  ;;  %v9823_v17 = vpop.permute.xlu1 %1253  ;;  %v1345_v18 = vpop.permute.xlu0 %1344 }
 0x167   : > { %8614 = vmatmul.mubr.msk.f32.vlgmr.msra.gmra.mxu1 %vm633_vm1, %v9602_v40  ;;  %8644 = vmatprep.subr.msk.mxu0 %vm633_vm1, %v1345_v18 }
 0x168   : > { %8617 = vmatpush3.xpose.msk.msra.mxu1 %vm633_vm1, %v989_v10  ;;  %8620 = vmatprep.mubr.msk.f32.mxu1 %vm633_vm1, %v9616_v43 }
 0x169   : > { %8645 = vmatpush3.xpose.msk.msra.mxu0 %vm633_vm1, %v1345_v18  ;;  %4107 = vrot.lane.b32.xlu0 %v9602_v40, %s9448_s8 }
 0x16a   : > { %3927 = vrot.lane.b32.xlu1 %v9592_v37, %s9447_s7  ;;  %8618 = vmatprep.subr.msk.mxu1 %vm633_vm1, %v987_v11  ;;  %v1343_v19 = vpop.permute.xlu1 %1342  ;;  %v9837_v20 = vpop.permute.xlu0 %1433 }
 0x16b   : > { %8646 = vmatprep.subr.msk.mxu0 %vm633_vm1, %v1343_v19 }
 0x16c   : > { %8619 = vmatpush3.xpose.msk.msra.mxu1 %vm633_vm1, %v987_v11 }
 0x16d   : > { %8647 = vmatpush3.xpose.msk.msra.mxu0 %vm633_vm1, %v1343_v19  ;;  %4293 = vrot.lane.b32.xlu0 %v9618_v44, %s9447_s7  ;;  %v10014_v19 = vld [vmem:[%s11672_s4] sm:$0xff] }
 0x16e   : > { %3923 = vrot.lane.b32.xlu1 %v9592_v37, %s9448_s8  ;;  %8623 = vmatprep.subr.msk.mxu1 %vm633_vm1, %v1078_v12  ;;  %v9847_v21 = vpop.permute.xlu1 %1431  ;;  %v1523_v22 = vpop.permute.xlu0 %1522 }
 0x16f   : > { %8621 = vmatmul.mubr.msk.f32.vlgmr.msra.gmra.mxu1 %vm633_vm1, %v9610_v42  ;;  %8658 = vmatprep.subr.msk.mxu0 %vm633_vm1, %v1523_v22 }
 0x170   : > { %8649 = vmatmul.mubr.msk.f32.vlgmr.msra.gmra.mxu0 %vm633_vm1, %v9642_v50  ;;  %8624 = vmatpush3.xpose.msk.msra.mxu1 %vm633_vm1, %v1078_v12 }
 0x171   : > { %8627 = vmatprep.mubr.msk.f32.mxu1 %vm633_vm1, %v9624_v45  ;;  %8659 = vmatpush3.xpose.msk.msra.mxu0 %vm633_vm1, %v1523_v22 }
 0x172   : > { %8662 = vmatprep.mubr.msk.f32.mxu0 %vm633_vm1, %v9666_v55  ;;  %4198 = vrot.lane.b32.xlu0 %v9610_v42, %s9448_s8  ;;  %v1521_v23 = vpop.permute.xlu1 %1520  ;;  %v9862_v24 = vpop.permute.xlu0 %1611 }
 0x173   : > { %4018 = vrot.lane.b32.xlu1 %v9600_v39, %s9447_s7  ;;  %8625 = vmatprep.subr.msk.mxu1 %vm633_vm1, %v1076_v13 }
 0x174   : > { %8660 = vmatprep.subr.msk.mxu0 %vm633_vm1, %v1521_v23  ;;  %8626 = vmatpush3.xpose.msk.msra.mxu1 %vm633_vm1, %v1076_v13 }
 0x175   : > { %8661 = vmatpush3.xpose.msk.msra.mxu0 %vm633_vm1, %v1521_v23  ;;  %8630 = vmatprep.subr.msk.mxu1 %vm633_vm1, %v1167_v14 }
 0x176   : > { %4384 = vrot.lane.b32.xlu0 %v9626_v46, %s9447_s7  ;;  %v9873_v25 = vpop.permute.xlu1 %1609  ;;  %v1701_v26 = vpop.permute.xlu0 %1700 }
 0x177   : > { %4014 = vrot.lane.b32.xlu1 %v9600_v39, %s9448_s8  ;;  %8628 = vmatmul.mubr.msk.f32.vlgmr.msra.gmra.mxu1 %vm633_vm1, %v9618_v44 }
 0x178   : > { %8663 = vmatmul.mubr.msk.f32.vlgmr.msra.gmra.mxu0 %vm633_vm1, %v9660_v54  ;;  %8672 = vmatprep.subr.msk.mxu0 %vm633_vm1, %v1701_v26 }
 0x179   : > { %8631 = vmatpush3.xpose.msk.msra.mxu1 %vm633_vm1, %v1167_v14  ;;  %8634 = vmatprep.mubr.msk.f32.mxu1 %vm633_vm1, %v9632_v47 }
 0x17a   : > { %8673 = vmatpush3.xpose.msk.msra.mxu0 %vm633_vm1, %v1701_v26  ;;  %8676 = vmatprep.mubr.msk.f32.mxu0 %vm633_vm1, %v9682_v59  ;;  %v1699_v27 = vpop.permute.xlu1 %1698  ;;  %v1790_v28 = vpop.permute.xlu0 %1789 }
 0x17b   : > { %4289 = vrot.lane.b32.xlu0 %v9618_v44, %s9448_s8  ;;  %4109 = vrot.lane.b32.xlu1 %v9608_v41, %s9447_s7 }
 0x17c   : > { %8632 = vmatprep.subr.msk.mxu1 %vm633_vm1, %v1165_v15  ;;  %8674 = vmatprep.subr.msk.mxu0 %vm633_vm1, %v1699_v27 }
 0x17d   : > { %8633 = vmatpush3.xpose.msk.msra.mxu1 %vm633_vm1, %v1165_v15 }
 0x17e   : > { %8675 = vmatpush3.xpose.msk.msra.mxu0 %vm633_vm1, %v1699_v27  ;;  %8637 = vmatprep.subr.msk.mxu1 %vm633_vm1, %v9815_v16  ;;  %v1788_v29 = vpop.permute.xlu1 %1787  ;;  %v1879_v30 = vpop.permute.xlu0 %1878 }
 0x17f   : > { %4475 = vrot.lane.b32.xlu0 %v9634_v48, %s9447_s7  ;;  %4105 = vrot.lane.b32.xlu1 %v9608_v41, %s9448_s8 }
 0x180   : > { %8635 = vmatmul.mubr.msk.f32.vlgmr.msra.gmra.mxu1 %vm633_vm1, %v9626_v46  ;;  %8686 = vmatprep.subr.msk.mxu0 %vm633_vm1, %v1879_v30 }
 0x181   : > { %8677 = vmatmul.mubr.msk.f32.vlgmr.msra.gmra.mxu0 %vm633_vm1, %v9676_v58  ;;  %8638 = vmatpush3.xpose.msk.msra.mxu1 %vm633_vm1, %v9815_v16  ;;  %v10007_v16 = vld [vmem:[%s11672_s4 + $0x8] sm:$0xff] }
 0x182   : > { %8641 = vmatprep.mubr.msk.f32.mxu1 %vm633_vm1, %v9640_v49  ;;  %8687 = vmatpush3.xpose.msk.msra.mxu0 %vm633_vm1, %v1879_v30  ;;  %v1877_v31 = vpop.permute.xlu1 %1876  ;;  %v1968_v32 = vpop.permute.xlu0 %1967 }
 0x183   : > { %8690 = vmatprep.mubr.msk.f32.mxu0 %vm633_vm1, %v9698_v63  ;;  %4380 = vrot.lane.b32.xlu0 %v9626_v46, %s9448_s8 }
 0x184   : > { %4200 = vrot.lane.b32.xlu1 %v9616_v43, %s9447_s7  ;;  %8639 = vmatprep.subr.msk.mxu1 %vm633_vm1, %v9823_v17 }
 0x185   : > { %8688 = vmatprep.subr.msk.mxu0 %vm633_vm1, %v1877_v31  ;;  %8640 = vmatpush3.xpose.msk.msra.mxu1 %vm633_vm1, %v9823_v17 }
 0x186   : > { %8689 = vmatpush3.xpose.msk.msra.mxu0 %vm633_vm1, %v1877_v31  ;;  %v1966_v33 = vpop.permute.xlu1 %1965  ;;  %8651 = vmatprep.subr.msk.mxu1 %vm633_vm1, %v9837_v20  ;;  %v2341_v3 = vpop.permute.xlu0 %2340 }
 0x187   : > { %3645 = vrot.lane.b32.xlu0 %v9706_v1, %s9446_s6  ;;  %s11561_s6 = scalar_lea.vmem %s11673_s5, %s8178_s26 }
 0x188   : > { %4196 = vrot.lane.b32.xlu1 %v9616_v43, %s9448_s8  ;;  %8642 = vmatmul.mubr.msk.f32.vlgmr.msra.gmra.mxu1 %vm633_vm1, %v9634_v48 }
 0x189   : > { %8691 = vmatmul.mubr.msk.f32.vlgmr.msra.gmra.mxu0 %vm633_vm1, %v9692_v62  ;;  %8652 = vmatpush3.xpose.msk.msra.mxu1 %vm633_vm1, %v9837_v20 }
 0x18a   : > { %8655 = vmatprep.mubr.msk.f32.mxu1 %vm633_vm1, %v9658_v53  ;;  %v2343_v2 = vpop.permute.xlu1 %2342  ;;  %8653 = vmatprep.subr.msk.mxu1 %vm633_vm1, %v9847_v21  ;;  %v2517_v5 = vpop.permute.xlu0 %2516 }
 0x18b   : > { %8700 = vmatprep.subr.mxu0 %v2343_v2 }
 0x18c   : > { %4291 = vrot.lane.b32.xlu1 %v9624_v45, %s9447_s7  ;;  %8701 = vmatpush3.msra.mxu0 %v2343_v2 }
 0x18d   : > { %8654 = vmatpush3.xpose.msk.msra.mxu1 %vm633_vm1, %v9847_v21  ;;  %8702 = vmatprep.subr.mxu0 %v2341_v3 }
 0x18e   : > { %8703 = vmatpush3.msra.mxu0 %v2341_v3  ;;  %v9944_v4 = vpop.permute.xlu1 %2429  ;;  %8665 = vmatprep.subr.msk.mxu1 %vm633_vm1, %v9862_v24  ;;  %v9982_v6 = vpop.permute.xlu0 %2427 }
 0x18f   : > { %8707 = vmatprep.subr.mxu0 %v9944_v4 }
 0x190   : > { %4287 = vrot.lane.b32.xlu1 %v9624_v45, %s9448_s8  ;;  %8656 = vmatmul.mubr.msk.f32.vlgmr.msra.gmra.mxu1 %vm633_vm1, %v9652_v52 }
 0x191   : > { %8666 = vmatpush3.xpose.msk.msra.mxu1 %vm633_vm1, %v9862_v24  ;;  %8669 = vmatprep.mubr.msk.f32.mxu1 %vm633_vm1, %v9674_v57 }
 0x192   : > { %8667 = vmatprep.subr.msk.mxu1 %vm633_vm1, %v9873_v25  ;;  %v9984_v7 = vpop.permute.xlu1 %2603  ;;  %v2515_v8 = vpop.permute.xlu0 %2514 }
 0x194   : > { %4382 = vrot.lane.b32.xlu1 %v9632_v47, %s9447_s7 }
 0x195   : > { %8668 = vmatpush3.xpose.msk.msra.mxu1 %vm633_vm1, %v9873_v25 }
 0x196   : > { %8679 = vmatprep.subr.msk.mxu1 %vm633_vm1, %v1790_v28  ;;  %v9989_v9 = vpop.permute.xlu1 %2690  ;;  %v10002_v15 = vpop.permute.xlu0 %2601 }
 0x198   : > { %4378 = vrot.lane.b32.xlu1 %v9632_v47, %s9448_s8  ;;  %8670 = vmatmul.mubr.msk.f32.vlgmr.msra.gmra.mxu1 %vm633_vm1, %v9668_v56 }
 0x199   : > { %8680 = vmatpush3.xpose.msk.msra.mxu1 %vm633_vm1, %v1790_v28  ;;  %8683 = vmatprep.mubr.msk.f32.mxu1 %vm633_vm1, %v9690_v61 }
 0x19a   : > { %8681 = vmatprep.subr.msk.mxu1 %vm633_vm1, %v1788_v29  ;;  %v9992_v10 = vpop.permute.xlu1 %2688  ;;  %v10016_v20 = vpop.permute.xlu0 %2951 }
 0x19c   : > { %4473 = vrot.lane.b32.xlu1 %v9640_v49, %s9447_s7 }
 0x19d   : > { %8682 = vmatpush3.xpose.msk.msra.mxu1 %vm633_vm1, %v1788_v29 }
 0x19e   : > { %8693 = vmatprep.subr.msk.mxu1 %vm633_vm1, %v1968_v32  ;;  %v9994_v11 = vpop.permute.xlu1 %2777  ;;  %v10030_v27 = vpop.permute.xlu0 %2949 }
 0x19f   : > { %11779 = vst [vmem:[#allocation14_spill] sm:$0xff] %v10030_v27 }
 0x1a0   : > { %8684 = vmatmul.mubr.msk.f32.vlgmr.msra.gmra.mxu1 %vm633_vm1, %v9684_v60 }
 0x1a1   : > { %8694 = vmatpush3.xpose.msk.msra.mxu1 %vm633_vm1, %v1968_v32  ;;  %8697 = vmatprep.mubr.msk.f32.mxu1 %vm633_vm1, %v9706_v1 }
 0x1a2   : > { %8695 = vmatprep.subr.msk.mxu1 %vm633_vm1, %v1966_v33  ;;  %v9996_v12 = vpop.permute.xlu1 %2864  ;;  %v10042_v2 = vpop.permute.xlu0 %3125 }
 0x1a3   : > { %11781 = vst [vmem:[#allocation16_spill] sm:$0xff] %v10042_v2 }
 0x1a5   : > { %8696 = vmatpush3.xpose.msk.msra.mxu1 %vm633_vm1, %v1966_v33 }
 0x1a6   : > { %8714 = vmatprep.subr.mxu1 %v2517_v5  ;;  %v9998_v13 = vpop.permute.xlu1 %2775 }
 0x1a8   : > { %8698 = vmatmul.mubr.msk.f32.vlgmr.msra.gmra.mxu1 %vm633_vm1, %v9700_v0 }
 0x1a9   : > { %8715 = vmatpush3.msra.mxu1 %v2517_v5 }
 0x1aa   : > { %8716 = vmatprep.subr.mxu1 %v2515_v8  ;;  %v10000_v14 = vpop.permute.xlu1 %2862 }
 0x1ab   : > { %8717 = vmatpush3.msra.mxu1 %v2515_v8 }
 0x1ac   : > { %8728 = vmatprep.subr.mxu1 %v9989_v9 }
 0x1ae   : > { %v10009_v17 = vpop.permute.xlu1 %3038 }
 0x1af   : > { %11777 = vst [vmem:[#allocation12_spill] sm:$0xff] %v10009_v17 }
 0x1b2   : > { %v10026_v25 = vpop.permute.xlu1 %3036 }
 0x1b3   : > { %11778 = vst [vmem:[#allocation13_spill] sm:$0xff] %v10026_v25 }
 0x1b6   : > { %v10035_v31 = vpop.permute.xlu1 %3212 }
 0x1b7   : > { %11780 = vst [vmem:[#allocation15_spill] sm:$0xff] %v10035_v31 }
 0x1bb   : > { %v10046_v8 = vpop.permute.xlu1 %3210 }
 0x1bc   : > { %11782 = vst [vmem:[#allocation17_spill] sm:$0xff] %v10046_v8 }
 0x20f   : > { %v8594_v18 = vpop.f32.mrf.mxu1 }
 0x210   : > { %v10019_v21 = vadd.f32 %v8594_v18, %v10007_v16 }
 0x211   : > { %v708_v22 = vpop.f32.mrf.mxu1 }
 0x212   : > { %v10022_v23 = vadd.f32 %v708_v22, %v10014_v19  ;;  %v2055_v24 = vsel %vm303_vm0, %v10019_v21, -inf }
 0x213   : > { %2056 = vmax.xlane.f32.xlu1 %v2055_v24  ;;  %v10051_v24 = vpop.permute.xlu0 %3123 }
 0x214   : > { %v2052_v26 = vsel %vm303_vm0, %v10022_v23, -inf  ;;  %11783 = vst [vmem:[#allocation18_spill] sm:$0xff] %v10051_v24 }
 0x215   : > { %2053 = vmax.xlane.f32.xlu0 %v2052_v26 }
 0x217   : > { %v8601_v28 = vpop.f32.mrf.mxu1  ;;  %v10062_v47 = vpop.permute.xlu0 %3299 }
 0x218   : > { %v10033_v29 = vadd.f32 %v8601_v28, %v10007_v16  ;;  %11785 = vst [vmem:[#allocation20_spill] sm:$0xff] %v10062_v47 }
 0x219   : > { %v797_v30 = vpop.f32.mrf.mxu1 }
 0x21a   : > { %v10038_v32 = vadd.f32 %v797_v30, %v10014_v19  ;;  %v2061_v33 = vsel %vm303_vm0, %v10033_v29, -inf  ;;  %v10058_v30 = vpop.permute.xlu1 %3386 }
 0x21b   : > { %2062 = vmax.xlane.f32.xlu1 %v2061_v33  ;;  %11784 = vst [vmem:[#allocation19_spill] sm:$0xff] %v10058_v30  ;;  %v10074_v41 = vpop.permute.xlu0 %3297 }
 0x21c   : > { %v2058_v3 = vsel %vm303_vm0, %v10038_v32, -inf  ;;  %11787 = vst [vmem:[#allocation22_spill] sm:$0xff] %v10074_v41 }
 0x21d   : > { %2059 = vmax.xlane.f32.xlu0 %v2058_v3 }
 0x21f   : > { %v8608_v5 = vpop.f32.mrf.mxu1  ;;  %v10088_v41 = vpop.permute.xlu0 %3473 }
 0x220   : > { %v10049_v18 = vadd.f32 %v8608_v5, %v10007_v16  ;;  %11790 = vst [vmem:[#allocation25_spill] sm:$0xff] %v10088_v41 }
 0x221   : > { %v886_v22 = vpop.f32.mrf.mxu1 }
 0x222   : > { %v10054_v26 = vadd.f32 %v886_v22, %v10014_v19  ;;  %v2067_v28 = vsel %vm303_vm0, %v10049_v18, -inf }
 0x223   : > { %2068 = vmax.xlane.f32.xlu0 %v2067_v28  ;;  %v10072_v28 = vpop.permute.xlu1 %3384  ;;  %v10100_v47 = vpop.permute.xlu0 %3471 }
 0x224   : > { %v2064_v33 = vsel %vm303_vm0, %v10054_v26, -inf  ;;  %11786 = vst [vmem:[#allocation21_spill] sm:$0xff] %v10072_v28  ;;  %11792 = vst [vmem:[#allocation27_spill] sm:$0xff] %v10100_v47 }
 0x227   : > { %v8615_v3 = vpop.f32.mrf.mxu1  ;;  %2065 = vmax.xlane.f32.xlu0 %v2064_v33  ;;  %v10081_v39 = vpop.permute.xlu1 %3560 }
 0x228   : > { %v10065_v5 = vadd.f32 %v8615_v3, %v10007_v16  ;;  %11788 = vst [vmem:[#allocation23_spill] sm:$0xff] %v10081_v39  ;;  %v10121_v36 = vpop.permute.xlu0 %3647 }
 0x229   : > { %v975_v45 = vpop.f32.mrf.mxu1  ;;  %11796 = vst [vmem:[#allocation31_spill] sm:$0xff] %v10121_v36 }
 0x22a   : > { %v10068_v22 = vadd.f32 %v975_v45, %v10014_v19  ;;  %v2073_v43 = vsel %vm303_vm0, %v10065_v5, -inf }
 0x22b   : > { %2074 = vmax.xlane.f32.xlu1 %v2073_v43  ;;  %v10095_v39 = vpop.permute.xlu1 %3558 }
 0x22c   : > { %v2070_v33 = vsel %vm303_vm0, %v10068_v22, -inf  ;;  %11791 = vst [vmem:[#allocation26_spill] sm:$0xff] %v10095_v39 }
 0x22f   : > { %v8622_v30 = vpop.f32.mrf.mxu1  ;;  %2071 = vmax.xlane.f32.xlu1 %v2070_v33 }
 0x230   : > { %v10079_v3 = vadd.f32 %v8622_v30, %v10007_v16  ;;  %v8650_v8 = vpop.f32.mrf.mxu0 }
 0x231   : > { %v10084_v45 = vadd.f32 %v8650_v8, %v10007_v16  ;;  %v1064_v28 = vpop.f32.mrf.mxu1 }
 0x232   : > { %v2079_v43 = vsel %vm303_vm0, %v10079_v3, -inf  ;;  %v10091_v31 = vadd.f32 %v1064_v28, %v10014_v19  ;;  %v1420_v33 = vpop.f32.mrf.mxu0 }
 0x233   : > { %11789 = vst [vmem:[#allocation24_spill] sm:$0xff] %v10084_v45  ;;  %2080 = vmax.xlane.f32.xlu0 %v2079_v43  ;;  %v2103_v30 = vsel %vm303_vm0, %v10084_v45, -inf  ;;  %v10103_v43 = vadd.f32 %v1420_v33, %v10014_v19 }
 0x235   : > { %11793 = vst [vmem:[#allocation28_spill] sm:$0xff] %v10103_v43 }
 0x237   : > { %v8629_v25 = vpop.f32.mrf.mxu1  ;;  %2104 = vmax.xlane.f32.xlu0 %v2103_v30  ;;  %v2076_v30 = vsel %vm303_vm0, %v10091_v31, -inf }
 0x238   : > { %v10098_v8 = vadd.f32 %v8629_v25, %v10007_v16  ;;  %v8664_v24 = vpop.f32.mrf.mxu0  ;;  %v10112_v25 = vpop.permute.xlu1 %3838 }
 0x239   : > { %v1153_v37 = vpop.f32.mrf.mxu1  ;;  %11794 = vst [vmem:[#allocation29_spill] sm:$0xff] %v10112_v25  ;;  %v10115_v39 = vadd.f32 %v8664_v24, %v10007_v16  ;;  %v10130_v25 = vpop.permute.xlu0 %3929 }
 0x23a   : > { %v10106_v28 = vadd.f32 %v1153_v37, %v10014_v19  ;;  %v2085_v41 = vsel %vm303_vm0, %v10098_v8, -inf  ;;  %v2100_v37 = vsel %vm303_vm0, %v10103_v43, -inf  ;;  %v1598_v47 = vpop.f32.mrf.mxu0  ;;  %11799 = vst [vmem:[#allocation34_spill] sm:$0xff] %v10130_v25 }
 0x23b   : > { %2086 = vmax.xlane.f32.xlu1 %v2085_v41  ;;  %2077 = vmax.xlane.f32.xlu0 %v2076_v30  ;;  %11795 = vst [vmem:[#allocation30_spill] sm:$0xff] %v10115_v39  ;;  %v10124_v34 = vadd.f32 %v1598_v47, %v10014_v19  ;;  %v2115_v30 = vsel %vm303_vm0, %v10115_v39, -inf }
 0x23c   : > { %v2082_v33 = vsel %vm303_vm0, %v10106_v28, -inf  ;;  %v10128_v24 = vpop.permute.xlu1 %3836 }
 0x23d   : > { %11797 = vst [vmem:[#allocation32_spill] sm:$0xff] %v10124_v34  ;;  %11798 = vst [vmem:[#allocation33_spill] sm:$0xff] %v10128_v24 }
 0x23f   : > { %2083 = vmax.xlane.f32.xlu1 %v2082_v33  ;;  %2101 = vmax.xlane.f32.xlu0 %v2100_v37  ;;  %v2112_v33 = vsel %vm303_vm0, %v10124_v34, -inf }
 0x240   : > { %v8636_v41 = vpop.f32.mrf.mxu1  ;;  %v10140_v45 = vpop.permute.xlu1 %3832 }
 0x241   : > { %v10133_v2 = vadd.f32 %v8636_v41, %v10007_v16  ;;  %v8678_v37 = vpop.f32.mrf.mxu0  ;;  %11800 = vst [vmem:[#allocation35_spill] sm:$0xff] %v10140_v45 }
 0x242   : > { %v1242_v27 = vpop.f32.mrf.mxu1 }
 0x243   : > { %2116 = vmax.xlane.f32.xlu0 %v2115_v30  ;;  %v10143_v30 = vadd.f32 %v8678_v37, %v10007_v16  ;;  %v2091_v41 = vsel %vm303_vm0, %v10133_v2, -inf  ;;  %v1776_v45 = vpop.f32.mrf.mxu0 }
 0x245   : > { %11801 = vst [vmem:[#allocation36_spill] sm:$0xff] %v10143_v30  ;;  %v2127_v37 = vsel %vm303_vm0, %v10143_v30, -inf }
 0x247   : > { %2113 = vmax.xlane.f32.xlu0 %v2112_v33  ;;  %v10152_v33 = vpop.permute.xlu0 %3834 }
 0x248   : > { %v8643_v47 = vpop.f32.mrf.mxu1  ;;  %11802 = vst [vmem:[#allocation37_spill] sm:$0xff] %v10152_v33 }
 0x249   : > { %v10138_v36 = vadd.f32 %v8643_v47, %v10007_v16  ;;  %v10155_v47 = vadd.f32 %v1242_v27, %v10014_v19  ;;  %v8692_v43 = vpop.f32.mrf.mxu0 }
 0x24a   : > { %v1331_v24 = vpop.f32.mrf.mxu1 }
 0x24b   : > { %v10148_v25 = vadd.f32 %v1331_v24, %v10014_v19  ;;  %v2097_v39 = vsel %vm303_vm0, %v10138_v36, -inf  ;;  %2092 = vmax.xlane.f32.xlu0 %v2091_v41  ;;  %11803 = vst [vmem:[#allocation38_spill] sm:$0xff] %v10155_v47  ;;  %v10161_v24 = vpop.permute.xlu1 %3927  ;;  %v10166_v33 = vpop.permute.xlu0 %4020  ;;  %v2088_v30 = vsel %vm303_vm0, %v10155_v47, -inf }
 0x24c   : > { %2098 = vmax.xlane.f32.xlu1 %v2097_v39  ;;  %11804 = vst [vmem:[#allocation39_spill] sm:$0xff] %v10161_v24  ;;  %11805 = vst [vmem:[#allocation40_spill] sm:$0xff] %v10166_v33  ;;  %v10169_v39 = vadd.f32 %v1776_v45, %v10014_v19  ;;  %v1954_v24 = vpop.f32.mrf.mxu0 }
 0x24d   : > { %v2094_v34 = vsel %vm303_vm0, %v10148_v25, -inf }
 0x24e   : > { %11806 = vst [vmem:[#allocation41_spill] sm:$0xff] %v10169_v39  ;;  %v2124_v45 = vsel %vm303_vm0, %v10169_v39, -inf }
 0x24f   : > { %2128 = vmax.xlane.f32.xlu0 %v2127_v37 }
 0x250   : > { %v8657_v17 = vpop.f32.mrf.mxu1  ;;  %2095 = vmax.xlane.f32.xlu1 %v2094_v34  ;;  %v10178_v34 = vpop.permute.xlu1 %3923 }
 0x251   : > { %v10164_v41 = vadd.f32 %v8657_v17, %v10007_v16  ;;  %11808 = vst [vmem:[#allocation43_spill] sm:$0xff] %v10178_v34  ;;  %v10181_v17 = vadd.f32 %v8692_v43, %v10007_v16 }
 0x252   : > { %v1509_v27 = vpop.f32.mrf.mxu1 }
 0x253   : > { %v10174_v46 = vadd.f32 %v1509_v27, %v10014_v19  ;;  %v2109_v37 = vsel %vm303_vm0, %v10164_v41, -inf  ;;  %2089 = vmax.xlane.f32.xlu0 %v2088_v30  ;;  %11809 = vst [vmem:[#allocation44_spill] sm:$0xff] %v10181_v17  ;;  %v10187_v27 = vpop.permute.xlu0 %3925  ;;  %v2139_v34 = vsel %vm303_vm0, %v10181_v17, -inf }
 0x254   : > { %2110 = vmax.xlane.f32.xlu1 %v2109_v37  ;;  %11810 = vst [vmem:[#allocation45_spill] sm:$0xff] %v10187_v27  ;;  %v10193_v37 = vadd.f32 %v1954_v24, %v10014_v19  ;;  %v10202_v27 = vpop.permute.xlu1 %4018 }
 0x255   : > { %11807 = vst [vmem:[#allocation42_spill] sm:$0xff] %v10174_v46  ;;  %v2106_v33 = vsel %vm303_vm0, %v10174_v46, -inf  ;;  %11812 = vst [vmem:[#allocation47_spill] sm:$0xff] %v10202_v27 }
 0x256   : > { %11811 = vst [vmem:[#allocation46_spill] sm:$0xff] %v10193_v37 }
 0x257   : > { %2125 = vmax.xlane.f32.xlu0 %v2124_v45 }
 0x258   : > { %v8671_v47 = vpop.f32.mrf.mxu1  ;;  %2107 = vmax.xlane.f32.xlu1 %v2106_v33  ;;  %v10204_v33 = vpop.permute.xlu0 %4111 }
 0x259   : > { %v10190_v30 = vadd.f32 %v8671_v47, %v10007_v16  ;;  %11813 = vst [vmem:[#allocation48_spill] sm:$0xff] %v10204_v33  ;;  %v2136_v47 = vsel %vm303_vm0, %v10193_v37, -inf  ;;  %v10213_v46 = vpop.permute.xlu1 %4014 }
 0x25a   : > { %v1687_v43 = vpop.f32.mrf.mxu1  ;;  %11815 = vst [vmem:[#allocation50_spill] sm:$0xff] %v10213_v46 }
 0x25b   : > { %v10198_v39 = vadd.f32 %v1687_v43, %v10014_v19  ;;  %v2121_v45 = vsel %vm303_vm0, %v10190_v30, -inf  ;;  %2140 = vmax.xlane.f32.xlu0 %v2139_v34 }
 0x25c   : > { %2122 = vmax.xlane.f32.xlu1 %v2121_v45  ;;  %v10220_v33 = vpop.permute.xlu0 %4016 }
 0x25d   : > { %v2118_v24 = vsel %vm303_vm0, %v10198_v39, -inf  ;;  %11816 = vst [vmem:[#allocation51_spill] sm:$0xff] %v10220_v33 }
 0x25f   : > { %2137 = vmax.xlane.f32.xlu0 %v2136_v47 }
 0x260   : > { %v8685_v17 = vpop.f32.mrf.mxu1  ;;  %2119 = vmax.xlane.f32.xlu1 %v2118_v24  ;;  %v10224_v24 = vpop.permute.xlu1 %4109 }
 0x261   : > { %v10211_v43 = vadd.f32 %v8685_v17, %v10007_v16  ;;  %11817 = vst [vmem:[#allocation52_spill] sm:$0xff] %v10224_v24  ;;  %v10229_v46 = vpop.permute.xlu0 %4202 }
 0x262   : > { %v1865_v34 = vpop.f32.mrf.mxu1  ;;  %11819 = vst [vmem:[#allocation54_spill] sm:$0xff] %v10229_v46 }
 0x263   : > { %11814 = vst [vmem:[#allocation49_spill] sm:$0xff] %v10211_v43  ;;  %v10216_v27 = vadd.f32 %v1865_v34, %v10014_v19  ;;  %v2133_v45 = vsel %vm303_vm0, %v10211_v43, -inf }
 0x264   : > { %2134 = vmax.xlane.f32.xlu1 %v2133_v45  ;;  %v10233_v43 = vpop.permute.xlu1 %4105 }
 0x265   : > { %v2130_v47 = vsel %vm303_vm0, %v10216_v27, -inf  ;;  %11820 = vst [vmem:[#allocation55_spill] sm:$0xff] %v10233_v43  ;;  %v10235_v33 = vpop.permute.xlu0 %4107 }
 0x266   : > { %2131 = vmax.xlane.f32.xlu0 %v2130_v47  ;;  %11821 = vst [vmem:[#allocation56_spill] sm:$0xff] %v10235_v33 }
 0x268   : > { %v8699_v17 = vpop.f32.mrf.mxu1  ;;  %v10237_v45 = vpop.permute.xlu1 %4200 }
 0x269   : > { %v10227_v37 = vadd.f32 %v8699_v17, %v10007_v16  ;;  %11822 = vst [vmem:[#allocation57_spill] sm:$0xff] %v10237_v45  ;;  %v10241_v47 = vpop.permute.xlu0 %4293 }
 0x26a   : > { %11823 = vst [vmem:[#allocation58_spill] sm:$0xff] %v10241_v47 }
 0x26b   : > { %11818 = vst [vmem:[#allocation53_spill] sm:$0xff] %v10227_v37  ;;  %v2145_v34 = vsel %vm303_vm0, %v10227_v37, -inf }
 0x26c   : > { %2146 = vmax.xlane.f32.xlu0 %v2145_v34  ;;  %v10243_v24 = vpop.permute.xlu1 %4196 }
 0x26d   : > { %v10245_v16 = vpop.permute.xlu0 %4198 }
 0x26e   : > { %11824 = vst [vmem:[#allocation59_spill] sm:$0xff] %v10245_v16 }
 0x270   : > { %v10247_v17 = vpop.permute.xlu1 %4291 }
 0x271   : > { %11825 = vst [vmem:[#allocation60_spill] sm:$0xff] %v10247_v17  ;;  %v10249_v46 = vpop.permute.xlu0 %4384  ;;  %v2043_v17 = vpop.f32.mrf.mxu1 }
 0x272   : > { %11826 = vst [vmem:[#allocation61_spill] sm:$0xff] %v10249_v46 }
 0x274   : > { %v10253_v34 = vpop.permute.xlu1 %4287 }
 0x275   : > { %4469 = vrot.lane.b32.xlu1 %v9640_v49, %s9448_s8  ;;  %11827 = vst [vmem:[#allocation62_spill] sm:$0xff] %v10253_v34  ;;  %v10257_v33 = vpop.permute.xlu0 %4289 }
 0x276   : > { %11828 = vst [vmem:[#allocation63_spill] sm:$0xff] %v10257_v33  ;;  %v10274_v33 = vadd.f32 %v2043_v17, %v10014_v19 }
 0x278   : > { %v10261_v47 = vpop.permute.xlu1 %4382  ;;  %11833 = vst [vmem:[#allocation68_spill] sm:$0xff] %v10274_v33 }
 0x279   : > { %11829 = vst [vmem:[#allocation64_spill] sm:$0xff] %v10261_v47  ;;  %v10263_v43 = vpop.permute.xlu0 %4475 }
 0x27a   : > { %11830 = vst [vmem:[#allocation65_spill] sm:$0xff] %v10263_v43  ;;  %v2142_v43 = vsel %vm303_vm0, %v10274_v33, -inf }
 0x27c   : > { %v10267_v37 = vpop.permute.xlu1 %4378 }
 0x27d   : > { %11831 = vst [vmem:[#allocation66_spill] sm:$0xff] %v10267_v37  ;;  %v10271_v34 = vpop.permute.xlu0 %4380 }
 0x27e   : > { %11832 = vst [vmem:[#allocation67_spill] sm:$0xff] %v10271_v34 }
 0x280   : > { %v10278_v47 = vpop.permute.xlu1 %4473 }
 0x281   : > { %11834 = vst [vmem:[#allocation69_spill] sm:$0xff] %v10278_v47  ;;  %v10282_v16 = vpop.permute.xlu0 %3645 }
 0x282   : > { %4566 = vrot.lane.b32.xlu0 %v9642_v50, %s9447_s7 }
 0x286   : > { %4471 = vrot.lane.b32.xlu0 %v9634_v48, %s9448_s8 }
 0x28a   : > { %4657 = vrot.lane.b32.xlu0 %v9652_v52, %s9447_s7 }
 0x28e   : > { %4562 = vrot.lane.b32.xlu0 %v9642_v50, %s9448_s8 }
 0x292   : > { %4748 = vrot.lane.b32.xlu0 %v9660_v54, %s9447_s7 }
 0x296   : > { %4653 = vrot.lane.b32.xlu0 %v9652_v52, %s9448_s8 }
 0x299   : > { %2143 = vmax.xlane.f32.xlu1 %v2142_v43 }
 0x29a   : > { %4839 = vrot.lane.b32.xlu0 %v9668_v56, %s9447_s7 }
 0x29c   : > { %v2057_v37 = vpop.xlane.xlu1 %2056 }
 0x29d   : > { %v2149_v34 = vsub.f32 %v10019_v21, %v2057_v37 }
 0x29e   : > { %4744 = vrot.lane.b32.xlu0 %v9660_v54, %s9448_s8  ;;  %v2054_v19 = vpop.xlane.xlu0 %2053 }
 0x29f   : > { %v2148_v17 = vsub.f32 %v10022_v23, %v2054_v19  ;;  %v2182_v46 = vmul.f32 1.442695, %v2149_v34 }
 0x2a1   : > { %v2180_v47 = vmul.f32 1.442695, %v2148_v17 }
 0x2a2   : > { %4930 = vrot.lane.b32.xlu0 %v9676_v58, %s9447_s7 }
 0x2a3   : > { %9165 = vpow2.f32 %v2180_v47 }
 0x2a4   : > { %v2063_v43 = vpop.xlane.xlu1 %2062  ;;  %9167 = vpow2.f32 %v2182_v46 }
 0x2a5   : > { %v2151_v33 = vsub.f32 %v10033_v29, %v2063_v43 }
 0x2a6   : > { %4835 = vrot.lane.b32.xlu0 %v9668_v56, %s9448_s8  ;;  %v2060_v21 = vpop.xlane.xlu0 %2059 }
 0x2a7   : > { %v2150_v37 = vsub.f32 %v10038_v32, %v2060_v21  ;;  %v2186_v54 = vmul.f32 1.442695, %v2151_v33 }
 0x2a9   : > { %v2184_v45 = vmul.f32 1.442695, %v2150_v37 }
 0x2aa   : > { %4564 = vrot.lane.b32.xlu1 %v9648_v51, %s9447_s7  ;;  %5021 = vrot.lane.b32.xlu0 %v9684_v60, %s9447_s7 }
 0x2ab   : > { %9169 = vpow2.f32 %v2184_v45 }
 0x2ac   : > { %9171 = vpow2.f32 %v2186_v54  ;;  %v2069_v23 = vpop.xlane.xlu0 %2068 }
 0x2ad   : > { %v2153_v46 = vsub.f32 %v10049_v18, %v2069_v23 }
 0x2ae   : > { %4560 = vrot.lane.b32.xlu1 %v9648_v51, %s9448_s8  ;;  %4926 = vrot.lane.b32.xlu0 %v9676_v58, %s9448_s8 }
 0x2af   : > { %v2190_v54 = vmul.f32 1.442695, %v2153_v46 }
 0x2b0   : > { %v10305_v29 = vpop.eup %9165  ;;  %v2066_v32 = vpop.xlane.xlu0 %2065 }
 0x2b1   : > { %v2152_v33 = vsub.f32 %v10054_v26, %v2066_v32  ;;  %8704 = vmatprep.mubr.msk.f32.mxu0 %vm303_vm0, %v10305_v29  ;;  %v10310_v47 = vpop.eup %9167 }
 0x2b2   : > { %4655 = vrot.lane.b32.xlu1 %v9658_v53, %s9447_s7  ;;  %5112 = vrot.lane.b32.xlu0 %v9692_v62, %s9447_s7 }
 0x2b3   : > { %v2188_v18 = vmul.f32 1.442695, %v2152_v33  ;;  %8705 = vmatmul.mubr.msk.f32.vlgmr.msra.gmra.mxu0 %vm303_vm0, %v10310_v47 }
 0x2b4   : > { %8708 = vmatpush3.msra.mxu0 %v9944_v4  ;;  %v2075_v45 = vpop.xlane.xlu1 %2074 }
 0x2b5   : > { %9173 = vpow2.f32 %v2188_v18  ;;  %8709 = vmatprep.subr.mxu0 %v9982_v6  ;;  %v2155_v26 = vsub.f32 %v10065_v5, %v2075_v45 }
 0x2b6   : > { %9175 = vpow2.f32 %v2190_v54  ;;  %8710 = vmatpush3.msra.mxu0 %v9982_v6  ;;  %4651 = vrot.lane.b32.xlu1 %v9658_v53, %s9448_s8 }
 0x2b7   : > { %8721 = vmatprep.subr.mxu0 %v9984_v7  ;;  %5017 = vrot.lane.b32.xlu0 %v9684_v60, %s9448_s8  ;;  %v2194_v6 = vmul.f32 1.442695, %v2155_v26 }
 0x2b8   : > { %v10327_v34 = vpop.eup %9169  ;;  %v2072_v4 = vpop.xlane.xlu1 %2071 }
 0x2b9   : > { %v10329_v19 = vpop.eup %9171  ;;  %v2154_v17 = vsub.f32 %v10068_v22, %v2072_v4  ;;  %8711 = vmatprep.mubr.msk.f32.mxu0 %vm303_vm0, %v10327_v34 }
 0x2ba   : > { %4746 = vrot.lane.b32.xlu1 %v9666_v55, %s9447_s7  ;;  %8712 = vmatmul.mubr.msk.f32.vlgmr.msra.gmra.mxu0 %vm303_vm0, %v10329_v19 }
 0x2bb   : > { %v2192_v5 = vmul.f32 1.442695, %v2154_v17  ;;  %5203 = vrot.lane.b32.xlu0 %v9700_v0, %s9447_s7  ;;  %8722 = vmatpush3.msra.mxu0 %v9984_v7 }
 0x2bc   : > { %8723 = vmatprep.subr.mxu0 %v10002_v15  ;;  %v2081_v43 = vpop.xlane.xlu0 %2080 }
 0x2bd   : > { %9177 = vpow2.f32 %v2192_v5  ;;  %8724 = vmatpush3.msra.mxu0 %v10002_v15  ;;  %v2157_v15 = vsub.f32 %v10079_v3, %v2081_v43  ;;  %v11838_v5 = vld [vmem:[#allocation9_spill] sm:$0xff] }
 0x2be   : > { %9179 = vpow2.f32 %v2194_v6  ;;  %8735 = vmatprep.subr.mxu0 %v9994_v11  ;;  %4742 = vrot.lane.b32.xlu1 %v9666_v55, %s9448_s8 }
 0x2bf   : > { %5108 = vrot.lane.b32.xlu0 %v9692_v62, %s9448_s8  ;;  %v2198_v3 = vmul.f32 1.442695, %v2157_v15 }
 0x2c0   : > { %v10348_v22 = vpop.xlane.xlu0 %2104 }
 0x2c2   : > { %v10350_v21 = vpop.eup %9173  ;;  %4837 = vrot.lane.b32.xlu1 %v9674_v57, %s9447_s7 }
 0x2c3   : > { %v10354_v7 = vpop.eup %9175  ;;  %5197 = vrot.lane.b32.xlu0 %v9706_v1, %s9448_s8  ;;  %8718 = vmatprep.mubr.msk.f32.mxu1 %vm303_vm0, %v10350_v21 }
 0x2c4   : > { %v2087_v37 = vpop.xlane.xlu1 %2086  ;;  %8719 = vmatmul.mubr.msk.f32.vlgmr.msra.gmra.mxu1 %vm303_vm0, %v10354_v7  ;;  %v2078_v23 = vpop.xlane.xlu0 %2077 }
 0x2c5   : > { %8729 = vmatpush3.msra.mxu1 %v9989_v9  ;;  %v2156_v46 = vsub.f32 %v10091_v31, %v2078_v23  ;;  %v2159_v32 = vsub.f32 %v10098_v8, %v2087_v37  ;;  %v11841_v23 = vld [vmem:[#allocation12_spill] sm:$0xff] }
 0x2c6   : > { %8730 = vmatprep.subr.mxu1 %v9992_v10  ;;  %4833 = vrot.lane.b32.xlu1 %v9674_v57, %s9448_s8 }
 0x2c7   : > { %v2196_v33 = vmul.f32 1.442695, %v2156_v46  ;;  %5576 = vrot.lane.b32.xlu0 %v9582_v35, %s9449_s13  ;;  %8731 = vmatpush3.msra.mxu1 %v9992_v10  ;;  %v2202_v45 = vmul.f32 1.442695, %v2159_v32  ;;  %v11842_v46 = vld [vmem:[#allocation38_spill] sm:$0xff] }
 0x2c8   : > { %8742 = vmatprep.subr.mxu1 %v9996_v12  ;;  %v2084_v9 = vpop.xlane.xlu1 %2083  ;;  %v10373_v54 = vpop.xlane.xlu0 %2101 }
 0x2c9   : > { %v2158_v31 = vsub.f32 %v10106_v28, %v2084_v9  ;;  %9181 = vpow2.f32 %v2196_v33 }
 0x2ca   : > { %v10376_v18 = vpop.eup %9177  ;;  %4928 = vrot.lane.b32.xlu1 %v9682_v59, %s9447_s7  ;;  %9183 = vpow2.f32 %v2198_v3 }
 0x2cb   : > { %v10380_v8 = vpop.eup %9179  ;;  %v2200_v35 = vmul.f32 1.442695, %v2158_v31  ;;  %5752 = vrot.lane.b32.xlu0 %v9594_v38, %s9449_s13  ;;  %8725 = vmatprep.mubr.msk.f32.mxu0 %vm303_vm0, %v10376_v18 }
 0x2cc   : > { %8726 = vmatmul.mubr.msk.f32.vlgmr.msra.gmra.mxu0 %vm303_vm0, %v10380_v8  ;;  %v10388_v10 = vpop.xlane.xlu0 %2116 }
 0x2cd   : > { %9185 = vpow2.f32 %v2200_v35  ;;  %8736 = vmatpush3.msra.mxu0 %v9994_v11  ;;  %v11845_v35 = vld [vmem:[#allocation16_spill] sm:$0xff] }
 0x2ce   : > { %8737 = vmatprep.subr.mxu0 %v9998_v13  ;;  %4924 = vrot.lane.b32.xlu1 %v9682_v59, %s9448_s8  ;;  %9187 = vpow2.f32 %v2202_v45 }
 0x2cf   : > { %5839 = vrot.lane.b32.xlu0 %v9602_v40, %s9449_s13  ;;  %8738 = vmatpush3.msra.mxu0 %v9998_v13 }
 0x2d0   : > { %8749 = vmatprep.subr.mxu0 %v10016_v20  ;;  %v10398_v38 = vpop.xlane.xlu0 %2113 }
 0x2d2   : > { %5019 = vrot.lane.b32.xlu1 %v9690_v61, %s9447_s7 }
 0x2d3   : > { %5926 = vrot.lane.b32.xlu0 %v9610_v42, %s9449_s13 }
 0x2d4   : > { %v2093_v11 = vpop.xlane.xlu0 %2092 }
 0x2d5   : > { %v2099_v28 = vpop.xlane.xlu1 %2098 }
 0x2d6   : > { %5015 = vrot.lane.b32.xlu1 %v9690_v61, %s9448_s8  ;;  %v10406_v26 = vpop.eup %9181  ;;  %v2163_v40 = vsub.f32 %v10138_v36, %v2099_v28  ;;  %v11846_v28 = vld [vmem:[#allocation42_spill] sm:$0xff] }
 0x2d7   : > { %11835 = vst [vmem:[#allocation70_spill] sm:$0xff] %v10406_v26  ;;  %6013 = vrot.lane.b32.xlu0 %v9618_v44, %s9449_s13  ;;  %v10411_v13 = vpop.eup %9183  ;;  %8732 = vmatprep.mubr.msk.f32.mxu1 %vm303_vm0, %v10406_v26  ;;  %v2161_v44 = vsub.f32 %v10133_v2, %v2093_v11 }
 0x2d8   : > { %11836 = vst [vmem:[#allocation71_spill] sm:$0xff] %v10411_v13  ;;  %v10415_v4 = vpop.xlane.xlu0 %2128  ;;  %8733 = vmatmul.mubr.msk.f32.vlgmr.msra.gmra.mxu1 %vm303_vm0, %v10411_v13  ;;  %v2210_v36 = vmul.f32 1.442695, %v2163_v40 }
 0x2d9   : > { %v2096_v42 = vpop.xlane.xlu1 %2095  ;;  %8743 = vmatpush3.msra.mxu1 %v9996_v12  ;;  %v2206_v33 = vmul.f32 1.442695, %v2161_v44  ;;  %v11848_v44 = vld [vmem:[#allocation30_spill] sm:$0xff] }
 0x2da   : > { %v10419_v17 = vpop.eup %9185  ;;  %v2162_v6 = vsub.f32 %v10148_v25, %v2096_v42  ;;  %5110 = vrot.lane.b32.xlu1 %v9698_v63, %s9447_s7  ;;  %8744 = vmatprep.subr.mxu1 %v10000_v14  ;;  %v11840_v25 = vld [vmem:[#allocation28_spill] sm:$0xff] }
 0x2db   : > { %11837 = vst [vmem:[#allocation72_spill] sm:$0xff] %v10419_v17  ;;  %6100 = vrot.lane.b32.xlu0 %v11838_v5, %s9449_s13  ;;  %v10429_v43 = vpop.eup %9187  ;;  %8745 = vmatpush3.msra.mxu1 %v10000_v14  ;;  %v2164_v37 = vsub.f32 %v11840_v25, %v10373_v54  ;;  %v11843_v14 = vld [vmem:[#allocation24_spill] sm:$0xff]  ;;  %v11844_v54 = vld [vmem:[#allocation14_spill] sm:$0xff]  ;;  %v2169_v5 = vsub.f32 %v11848_v44, %v10388_v10  ;;  %v11849_v25 = vld [vmem:[#allocation41_spill] sm:$0xff] }
 0x2dc   : > { %11839 = vst [vmem:[#allocation9_spill] sm:$0xff] %v10429_v43  ;;  %v2208_v15 = vmul.f32 1.442695, %v2162_v6  ;;  %8739 = vmatprep.mubr.msk.f32.mxu0 %vm303_vm0, %v10419_v17  ;;  %v2090_v12 = vpop.xlane.xlu0 %2089  ;;  %8756 = vmatprep.subr.mxu1 %v11841_v23  ;;  %v2165_v32 = vsub.f32 %v11843_v14, %v10348_v22  ;;  %v11847_v42 = vld [vmem:[#allocation32_spill] sm:$0xff] }
 0x2dd   : > { %8740 = vmatmul.mubr.msk.f32.vlgmr.msra.gmra.mxu0 %vm303_vm0, %v10429_v43  ;;  %v2111_v2 = vpop.xlane.xlu1 %2110  ;;  %v2160_v3 = vsub.f32 %v11842_v46, %v2090_v12  ;;  %v2168_v6 = vsub.f32 %v11847_v42, %v10398_v38  ;;  %v11850_v46 = vld [vmem:[#allocation36_spill] sm:$0xff] }
 0x2de   : > { %9189 = vpow2.f32 %v2208_v15  ;;  %8750 = vmatpush3.msra.mxu0 %v10016_v20  ;;  %5106 = vrot.lane.b32.xlu1 %v9698_v63, %s9448_s8  ;;  %v2167_v31 = vsub.f32 %v10164_v41, %v2111_v2  ;;  %v2212_v20 = vmul.f32 1.442695, %v2164_v37  ;;  %v2214_v40 = vmul.f32 1.442695, %v2165_v32  ;;  %v11851_v32 = vld [vmem:[#allocation2_spill] sm:$0xff] }
 0x2df   : > { %9191 = vpow2.f32 %v2210_v36  ;;  %v2204_v9 = vmul.f32 1.442695, %v2160_v3  ;;  %8751 = vmatprep.subr.mxu0 %v11844_v54  ;;  %6187 = vrot.lane.b32.xlu0 %v9634_v48, %s9449_s13  ;;  %v2220_v12 = vmul.f32 1.442695, %v2168_v6  ;;  %v2173_v10 = vsub.f32 %v11850_v46, %v10415_v4 }
 0x2e0   : > { %8752 = vmatpush3.msra.mxu0 %v11844_v54  ;;  %v2126_v45 = vpop.xlane.xlu0 %2125  ;;  %v2218_v48 = vmul.f32 1.442695, %v2167_v31 }
 0x2e1   : > { %9193 = vpow2.f32 %v2204_v9  ;;  %8763 = vmatprep.subr.mxu0 %v11845_v35  ;;  %v2108_v11 = vpop.xlane.xlu1 %2107  ;;  %v2172_v38 = vsub.f32 %v11849_v25, %v2126_v45  ;;  %v2230_v45 = vmul.f32 1.442695, %v2173_v10  ;;  %v11872_v10 = vld [vmem:[#allocation17_spill] sm:$0xff] }
 0x2e2   : > { %v2166_v22 = vsub.f32 %v11846_v28, %v2108_v11  ;;  %5201 = vrot.lane.b32.xlu1 %v9706_v1, %s9447_s7  ;;  %9195 = vpow2.f32 %v2206_v33 }
 0x2e3   : > { %6274 = vrot.lane.b32.xlu0 %v9642_v50, %s9449_s13  ;;  %9197 = vpow2.f32 %v2212_v20  ;;  %v2222_v50 = vmul.f32 1.442695, %v2169_v5  ;;  %v2228_v9 = vmul.f32 1.442695, %v2172_v38  ;;  %v11857_v20 = vld [vmem:[#allocation18_spill] sm:$0xff]  ;;  %v11868_v38 = vld [vmem:[#allocation15_spill] sm:$0xff] }
 0x2e4   : > { %v2216_v41 = vmul.f32 1.442695, %v2166_v22  ;;  %v2141_v36 = vpop.xlane.xlu0 %2140  ;;  %v11859_v22 = vld [vmem:[#allocation44_spill] sm:$0xff] }
 0x2e5   : > { %v2123_v15 = vpop.xlane.xlu1 %2122 }
 0x2e6   : > { %9199 = vpow2.f32 %v2216_v41  ;;  %5199 = vrot.lane.b32.xlu1 %v9700_v0, %s9448_s8  ;;  %v2171_v37 = vsub.f32 %v10190_v30, %v2123_v15  ;;  %v11862_v41 = vld [vmem:[#allocation4_spill] sm:$0xff]  ;;  %v11865_v15 = vld [vmem:[#allocation13_spill] sm:$0xff] }
 0x2e7   : > { %9201 = vpow2.f32 %v2214_v40  ;;  %6361 = vrot.lane.b32.xlu0 %v9652_v52, %s9449_s13  ;;  %v2177_v40 = vsub.f32 %v11859_v22, %v2141_v36  ;;  %v11884_v22 = vld [vmem:[#allocation27_spill] sm:$0xff] }
 0x2e8   : > { %9203 = vpow2.f32 %v2218_v48  ;;  %v2138_v14 = vpop.xlane.xlu0 %2137  ;;  %v2226_v4 = vmul.f32 1.442695, %v2171_v37  ;;  %v11860_v48 = vld [vmem:[#allocation20_spill] sm:$0xff]  ;;  %v11870_v37 = vld [vmem:[#allocation22_spill] sm:$0xff] }
 0x2e9   : > { %v2120_v2 = vpop.xlane.xlu1 %2119  ;;  %9205 = vpow2.f32 %v2220_v12  ;;  %v2238_v25 = vmul.f32 1.442695, %v2177_v40  ;;  %v11885_v40 = vld [vmem:[#allocation7_spill] sm:$0xff] }
 0x2ea   : > { %v2170_v3 = vsub.f32 %v10198_v39, %v2120_v2  ;;  %5578 = vrot.lane.b32.xlu1 %v11851_v32, %s9449_s13  ;;  %9207 = vpow2.f32 %v2222_v50  ;;  %v11854_v39 = vld [vmem:[#allocation46_spill] sm:$0xff]  ;;  %v11871_v2 = vld [vmem:[#allocation5_spill] sm:$0xff]  ;;  %v11875_v32 = vld [vmem:[#allocation19_spill] sm:$0xff] }
 0x2eb   : > { %v10471_v33 = vpop.eup %9189  ;;  %6535 = vrot.lane.b32.xlu0 %v9668_v56, %s9449_s13  ;;  %v2176_v54 = vsub.f32 %v11854_v39, %v2138_v14  ;;  %v11856_v56 = vld [vmem:[#allocation3_spill] sm:$0xff] }
 0x2ec   : > { %11852 = vst [vmem:[#allocation28_spill] sm:$0xff] %v10471_v33  ;;  %v10475_v52 = vpop.eup %9191  ;;  %v2224_v30 = vmul.f32 1.442695, %v2170_v3  ;;  %8753 = vmatprep.mubr.msk.f32.mxu0 %vm303_vm0, %v10471_v33 }
 0x2ed   : > { %11853 = vst [vmem:[#allocation12_spill] sm:$0xff] %v10475_v52  ;;  %8754 = vmatmul.mubr.msk.f32.vlgmr.msra.gmra.mxu0 %vm303_vm0, %v10475_v52  ;;  %v2135_v42 = vpop.xlane.xlu1 %2134 }
 0x2ee   : > { %v10482_v31 = vpop.eup %9193  ;;  %9209 = vpow2.f32 %v2224_v30  ;;  %8764 = vmatpush3.msra.mxu0 %v11845_v35  ;;  %5665 = vrot.lane.b32.xlu1 %v11856_v56, %s9449_s13  ;;  %v2236_v35 = vmul.f32 1.442695, %v2176_v54  ;;  %v11880_v54 = vld [vmem:[#allocation21_spill] sm:$0xff] }
 0x2ef   : > { %11855 = vst [vmem:[#allocation38_spill] sm:$0xff] %v10482_v31  ;;  %9211 = vpow2.f32 %v2228_v9  ;;  %8765 = vmatprep.subr.mxu0 %v11857_v20  ;;  %6622 = vrot.lane.b32.xlu0 %v9676_v58, %s9449_s13  ;;  %v2132_v11 = vpop.xlane.xlu0 %2131  ;;  %v10490_v28 = vpop.eup %9195  ;;  %v11876_v9 = vld [vmem:[#allocation25_spill] sm:$0xff] }
 0x2f0   : > { %11858 = vst [vmem:[#allocation24_spill] sm:$0xff] %v10490_v28  ;;  %8766 = vmatpush3.msra.mxu0 %v11857_v20  ;;  %v2174_v6 = vsub.f32 %v10216_v27, %v2132_v11  ;;  %8746 = vmatprep.mubr.msk.f32.mxu1 %vm303_vm0, %v10482_v31  ;;  %9213 = vpow2.f32 %v2226_v4  ;;  %v10500_v58 = vpop.eup %9197  ;;  %v11864_v27 = vld [vmem:[#allocation49_spill] sm:$0xff]  ;;  %v11878_v4 = vld [vmem:[#allocation6_spill] sm:$0xff]  ;;  %v11882_v20 = vld [vmem:[#allocation23_spill] sm:$0xff] }
 0x2f1   : > { %8777 = vmatprep.subr.mxu0 %v11860_v48  ;;  %8747 = vmatmul.mubr.msk.f32.vlgmr.msra.gmra.mxu1 %vm303_vm0, %v10490_v28  ;;  %11861 = vst [vmem:[#allocation14_spill] sm:$0xff] %v10500_v58  ;;  %9215 = vpow2.f32 %v2230_v45  ;;  %v2175_v44 = vsub.f32 %v11864_v27, %v2135_v42  ;;  %v11886_v42 = vld [vmem:[#allocation26_spill] sm:$0xff]  ;;  %v11890_v27 = vld [vmem:[#allocation29_spill] sm:$0xff] }
 0x2f2   : > { %8757 = vmatpush3.msra.mxu1 %v11841_v23  ;;  %5663 = vrot.lane.b32.xlu1 %v11862_v41, %s9449_s13  ;;  %v2232_v5 = vmul.f32 1.442695, %v2174_v6  ;;  %9217 = vpow2.f32 %v2236_v35  ;;  %v11889_v41 = vld [vmem:[#allocation31_spill] sm:$0xff] }
 0x2f3   : > { %v10505_v36 = vpop.eup %9199  ;;  %6709 = vrot.lane.b32.xlu0 %v9684_v60, %s9449_s13  ;;  %8758 = vmatprep.subr.mxu1 %v11865_v15  ;;  %v2234_v60 = vmul.f32 1.442695, %v2175_v44  ;;  %v11891_v44 = vld [vmem:[#allocation8_spill] sm:$0xff] }
 0x2f4   : > { %11863 = vst [vmem:[#allocation16_spill] sm:$0xff] %v10505_v36  ;;  %v10511_v12 = vpop.eup %9201  ;;  %8760 = vmatprep.mubr.msk.f32.mxu1 %vm303_vm0, %v10500_v58  ;;  %8759 = vmatpush3.msra.mxu1 %v11865_v15  ;;  %9219 = vpow2.f32 %v2232_v5  ;;  %v11893_v15 = vld [vmem:[#allocation33_spill] sm:$0xff] }
 0x2f5   : > { %11866 = vst [vmem:[#allocation42_spill] sm:$0xff] %v10511_v12  ;;  %v10516_v23 = vpop.eup %9203  ;;  %8767 = vmatprep.mubr.msk.f32.mxu0 %vm303_vm0, %v10505_v36  ;;  %8770 = vmatprep.subr.mxu1 %v11868_v38  ;;  %9221 = vpow2.f32 %v2238_v25  ;;  %v10532_v46 = vpop.xlane.xlu0 %2146  ;;  %v11894_v25 = vld [vmem:[#allocation35_spill] sm:$0xff] }
 0x2f6   : > { %11867 = vst [vmem:[#allocation32_spill] sm:$0xff] %v10516_v23  ;;  %8761 = vmatmul.mubr.msk.f32.vlgmr.msra.gmra.mxu1 %vm303_vm0, %v10511_v12  ;;  %8768 = vmatmul.mubr.msk.f32.vlgmr.msra.gmra.mxu0 %vm303_vm0, %v10516_v23  ;;  %v10527_v50 = vpop.eup %9205  ;;  %9223 = vpow2.f32 %v2234_v60 }
 0x2f7   : > { %8771 = vmatpush3.msra.mxu1 %v11868_v38  ;;  %8778 = vmatpush3.msra.mxu0 %v11860_v48  ;;  %11869 = vst [vmem:[#allocation30_spill] sm:$0xff] %v10527_v50  ;;  %v10537_v3 = vpop.eup %9207  ;;  %v11895_v38 = vld [vmem:[#allocation10_spill] sm:$0xff] }
 0x2f8   : > { %8779 = vmatprep.subr.mxu0 %v11870_v37  ;;  %5750 = vrot.lane.b32.xlu1 %v11871_v2, %s9449_s13  ;;  %11873 = vst [vmem:[#allocation41_spill] sm:$0xff] %v10537_v3  ;;  %v11897_v2 = vld [vmem:[#allocation34_spill] sm:$0xff] }
 0x2f9   : > { %8772 = vmatprep.subr.mxu1 %v11872_v10  ;;  %8774 = vmatprep.mubr.msk.f32.mxu1 %vm303_vm0, %v10527_v50  ;;  %v10561_v56 = vpop.permute.xlu0 %4566 }
 0x2fa   : > { %8773 = vmatpush3.msra.mxu1 %v11872_v10  ;;  %8780 = vmatpush3.msra.mxu0 %v11870_v37  ;;  %v11896_v37 = vld [vmem:[#allocation40_spill] sm:$0xff]  ;;  %v11898_v10 = vld [vmem:[#allocation37_spill] sm:$0xff] }
 0x2fb   : > { %v10541_v14 = vpop.eup %9209  ;;  %8784 = vmatprep.subr.mxu1 %v11875_v32  ;;  %8791 = vmatprep.subr.mxu0 %v11876_v9 }
 0x2fc   : > { %11874 = vst [vmem:[#allocation36_spill] sm:$0xff] %v10541_v14  ;;  %v10545_v30 = vpop.eup %9211  ;;  %8775 = vmatmul.mubr.msk.f32.vlgmr.msra.gmra.mxu1 %vm303_vm0, %v10537_v3  ;;  %5837 = vrot.lane.b32.xlu1 %v11878_v4, %s9449_s13  ;;  %v11901_v4 = vld [vmem:[#allocation54_spill] sm:$0xff] }
 0x2fd   : > { %11877 = vst [vmem:[#allocation2_spill] sm:$0xff] %v10545_v30  ;;  %8785 = vmatpush3.msra.mxu1 %v11875_v32  ;;  %8788 = vmatprep.mubr.msk.f32.mxu1 %vm303_vm0, %v10545_v30  ;;  %v10554_v39 = vpop.eup %9213  ;;  %v10585_v48 = vpop.permute.xlu0 %4471  ;;  %v11899_v32 = vld [vmem:[#allocation50_spill] sm:$0xff] }
 0x2fe   : > { %11879 = vst [vmem:[#allocation46_spill] sm:$0xff] %v10554_v39  ;;  %8786 = vmatprep.subr.mxu1 %v11880_v54  ;;  %8781 = vmatprep.mubr.msk.f32.mxu0 %vm303_vm0, %v10541_v14  ;;  %v10559_v45 = vpop.eup %9215 }
 0x2ff   : > { %11881 = vst [vmem:[#allocation3_spill] sm:$0xff] %v10559_v45  ;;  %8787 = vmatpush3.msra.mxu1 %v11880_v54  ;;  %8782 = vmatmul.mubr.msk.f32.vlgmr.msra.gmra.mxu0 %vm303_vm0, %v10554_v39  ;;  %v10571_v11 = vpop.eup %9217 }
 0x300   : > { %8798 = vmatprep.subr.mxu1 %v11882_v20  ;;  %8789 = vmatmul.mubr.msk.f32.vlgmr.msra.gmra.mxu1 %vm303_vm0, %v10559_v45  ;;  %11883 = vst [vmem:[#allocation18_spill] sm:$0xff] %v10571_v11 }
 0x301   : > { %8792 = vmatpush3.msra.mxu0 %v11876_v9  ;;  %8799 = vmatpush3.msra.mxu1 %v11882_v20  ;;  %v10579_v6 = vpop.eup %9219  ;;  %v10609_v60 = vpop.permute.xlu0 %4657  ;;  %v11900_v9 = vld [vmem:[#allocation47_spill] sm:$0xff] }
 0x302   : > { %8793 = vmatprep.subr.mxu0 %v11884_v22  ;;  %5924 = vrot.lane.b32.xlu1 %v11885_v40, %s9449_s13  ;;  %11887 = vst [vmem:[#allocation44_spill] sm:$0xff] %v10579_v6  ;;  %v10583_v35 = vpop.eup %9221  ;;  %v11904_v20 = vld [vmem:[#allocation11_spill] sm:$0xff]  ;;  %v10653_v40 = vpop.permute.xlu1 %4469 }
 0x303   : > { %8800 = vmatprep.subr.mxu1 %v11886_v42  ;;  %8802 = vmatprep.mubr.msk.f32.mxu1 %vm303_vm0, %v10571_v11  ;;  %11888 = vst [vmem:[#allocation20_spill] sm:$0xff] %v10583_v35  ;;  %v10598_v5 = vpop.eup %9223 }
 0x304   : > { %8794 = vmatpush3.msra.mxu0 %v11884_v22  ;;  %8801 = vmatpush3.msra.mxu1 %v11886_v42  ;;  %11892 = vst [vmem:[#allocation4_spill] sm:$0xff] %v10598_v5  ;;  %v11905_v22 = vld [vmem:[#allocation61_spill] sm:$0xff]  ;;  %v11906_v42 = vld [vmem:[#allocation59_spill] sm:$0xff] }
 0x305   : > { %8805 = vmatprep.subr.mxu0 %v11889_v41  ;;  %8812 = vmatprep.subr.msk.mxu1 %vm633_vm1, %v11890_v27 }
 0x306   : > { %8803 = vmatmul.mubr.msk.f32.vlgmr.msra.gmra.mxu1 %vm303_vm0, %v10583_v35  ;;  %6011 = vrot.lane.b32.xlu1 %v11891_v44, %s9449_s13  ;;  %v11909_v44 = vld [vmem:[#allocation64_spill] sm:$0xff] }
 0x307   : > { %8813 = vmatpush3.xpose.msk.msra.mxu1 %vm633_vm1, %v11890_v27  ;;  %8795 = vmatprep.mubr.msk.f32.mxu0 %vm303_vm0, %v10579_v6 }
 0x308   : > { %8814 = vmatprep.subr.msk.mxu1 %vm633_vm1, %v11893_v15  ;;  %8816 = vmatprep.mubr.msk.f32.mxu1 %vm633_vm1, %v11894_v25 }
 0x309   : > { %8796 = vmatmul.mubr.msk.f32.vlgmr.msra.gmra.mxu0 %vm303_vm0, %v10598_v5 }
 0x30a   : > { %8806 = vmatpush3.msra.mxu0 %v11889_v41  ;;  %6098 = vrot.lane.b32.xlu1 %v11895_v38, %s9449_s13  ;;  %v11908_v41 = vld [vmem:[#allocation53_spill] sm:$0xff] }
 0x30b   : > { %8807 = vmatprep.subr.mxu0 %v10282_v16  ;;  %8815 = vmatpush3.xpose.msk.msra.mxu1 %vm633_vm1, %v11893_v15  ;;  %v2179_v27 = vsub.f32 %v11908_v41, %v10532_v46  ;;  %v11911_v46 = vld [vmem:[#allocation67_spill] sm:$0xff] }
 0x30c   : > { %8808 = vmatpush3.msra.mxu0 %v10282_v16  ;;  %8826 = vmatprep.subr.msk.mxu1 %vm633_vm1, %v11896_v37  ;;  %v4563_v16 = vpop.permute.xlu0 %4562 }
 0x30d   : > { %8819 = vmatprep.subr.msk.mxu0 %vm633_vm1, %v11897_v2 }
 0x30e   : > { %8817 = vmatmul.mubr.msk.f32.vlgmr.msra.gmra.mxu1 %vm633_vm1, %v11898_v10  ;;  %6185 = vrot.lane.b32.xlu1 %v9640_v49, %s9449_s13  ;;  %v11902_v49 = vld [vmem:[#allocation51_spill] sm:$0xff] }
 0x30f   : > { %8827 = vmatpush3.xpose.msk.msra.mxu1 %vm633_vm1, %v11896_v37  ;;  %8830 = vmatprep.mubr.msk.f32.mxu1 %vm633_vm1, %v11899_v32  ;;  %v2242_v37 = vmul.f32 1.442695, %v2179_v27  ;;  %v11918_v27 = vld [vmem:[#allocation55_spill] sm:$0xff] }
 0x310   : > { %8828 = vmatprep.subr.msk.mxu1 %vm633_vm1, %v11900_v9  ;;  %v4749_v54 = vpop.permute.xlu0 %4748 }
 0x312   : > { %6272 = vrot.lane.b32.xlu1 %v9648_v51, %s9449_s13  ;;  %v11903_v51 = vld [vmem:[#allocation57_spill] sm:$0xff] }
 0x313   : > { %8829 = vmatpush3.xpose.msk.msra.mxu1 %vm633_vm1, %v11900_v9 }
 0x314   : > { %8840 = vmatprep.subr.msk.mxu1 %vm633_vm1, %v11901_v4 }
 0x316   : > { %8831 = vmatmul.mubr.msk.f32.vlgmr.msra.gmra.mxu1 %vm633_vm1, %v11902_v49  ;;  %6359 = vrot.lane.b32.xlu1 %v9658_v53, %s9449_s13  ;;  %v10651_v53 = vpop.permute.xlu0 %4653 }
 0x317   : > { %8841 = vmatpush3.xpose.msk.msra.mxu1 %vm633_vm1, %v11901_v4  ;;  %8844 = vmatprep.mubr.msk.f32.mxu1 %vm633_vm1, %v10243_v24  ;;  %v11907_v24 = vld [vmem:[#allocation66_spill] sm:$0xff] }
 0x318   : > { %8842 = vmatprep.subr.msk.mxu1 %vm633_vm1, %v11903_v51 }
 0x31a   : > { %6448 = vrot.lane.b32.xlu1 %v11904_v20, %s9449_s13  ;;  %v10669_v25 = vpop.permute.xlu0 %4839 }
 0x31b   : > { %8843 = vmatpush3.xpose.msk.msra.mxu1 %vm633_vm1, %v11903_v51 }
 0x31c   : > { %8854 = vmatprep.subr.msk.mxu1 %vm633_vm1, %v11905_v22 }
 0x31e   : > { %8845 = vmatmul.mubr.msk.f32.vlgmr.msra.gmra.mxu1 %vm633_vm1, %v11906_v42  ;;  %6446 = vrot.lane.b32.xlu1 %v9666_v55, %s9449_s13  ;;  %v11910_v55 = vld [vmem:[#allocation68_spill] sm:$0xff]  ;;  %v4745_v32 = vpop.permute.xlu0 %4744 }
 0x31f   : > { %8855 = vmatpush3.xpose.msk.msra.mxu1 %vm633_vm1, %v11905_v22  ;;  %8858 = vmatprep.mubr.msk.f32.mxu1 %vm633_vm1, %v11907_v24  ;;  %v11917_v24 = vld [vmem:[#allocation45_spill] sm:$0xff] }
 0x320   : > { %8856 = vmatprep.subr.msk.mxu1 %vm633_vm1, %v11909_v44 }
 0x322   : > { %6533 = vrot.lane.b32.xlu1 %v9674_v57, %s9449_s13  ;;  %v2144_v15 = vpop.xlane.xlu1 %2143 }
 0x323   : > { %8857 = vmatpush3.xpose.msk.msra.mxu1 %vm633_vm1, %v11909_v44  ;;  %v2178_v38 = vsub.f32 %v11910_v55, %v2144_v15  ;;  %v11919_v44 = vld [vmem:[#allocation52_spill] sm:$0xff] }
 0x324   : > { %8868 = vmatprep.subr.msk.mxu1 %vm633_vm1, %v10561_v56 }
 0x325   : > { %v2240_v10 = vmul.f32 1.442695, %v2178_v38  ;;  %v11920_v38 = vld [vmem:[#allocation58_spill] sm:$0xff] }
 0x326   : > { %8859 = vmatmul.mubr.msk.f32.vlgmr.msra.gmra.mxu1 %vm633_vm1, %v11911_v46  ;;  %6620 = vrot.lane.b32.xlu1 %v9682_v59, %s9449_s13  ;;  %v4565_v57 = vpop.permute.xlu1 %4564 }
 0x327   : > { %8869 = vmatpush3.xpose.msk.msra.mxu1 %vm633_vm1, %v10561_v56  ;;  %9225 = vpow2.f32 %v2240_v10  ;;  %v4931_v56 = vpop.permute.xlu0 %4930 }
 0x328   : > { %9227 = vpow2.f32 %v2242_v37  ;;  %8870 = vmatprep.subr.msk.mxu1 %vm633_vm1, %v4565_v57  ;;  %v11921_v37 = vld [vmem:[#allocation56_spill] sm:$0xff] }
 0x32a   : > { %6707 = vrot.lane.b32.xlu1 %v9690_v61, %s9449_s13  ;;  %v4561_v9 = vpop.permute.xlu1 %4560 }
 0x32b   : > { %8871 = vmatpush3.xpose.msk.msra.mxu1 %vm633_vm1, %v4565_v57  ;;  %8872 = vmatprep.mubr.msk.f32.mxu1 %vm633_vm1, %v4561_v9  ;;  %v10696_v61 = vpop.permute.xlu0 %4835  ;;  %v11922_v57 = vld [vmem:[#allocation62_spill] sm:$0xff] }
 0x32c   : > { %8882 = vmatprep.subr.msk.mxu1 %vm633_vm1, %v4749_v54 }
 0x32e   : > { %8873 = vmatmul.mubr.msk.f32.vlgmr.msra.gmra.mxu1 %vm633_vm1, %v4563_v16  ;;  %v10689_v59 = vpop.permute.xlu1 %4655  ;;  %v11914_v16 = vld [vmem:[#allocation43_spill] sm:$0xff] }
 0x32f   : > { %8883 = vmatpush3.xpose.msk.msra.mxu1 %vm633_vm1, %v4749_v54  ;;  %v11915_v54 = vld [vmem:[#allocation39_spill] sm:$0xff]  ;;  %v10711_v42 = vpop.permute.xlu0 %5021 }
 0x332   : > { %v4652_v4 = vpop.permute.xlu1 %4651 }
 0x333   : > { %v4927_v15 = vpop.permute.xlu0 %4926 }
 0x334   : > { %v10692_v49 = vpop.eup %9225 }
 0x335   : > { %11912 = vst [vmem:[#allocation49_spill] sm:$0xff] %v10692_v49  ;;  %v10694_v51 = vpop.eup %9227  ;;  %8809 = vmatprep.mubr.msk.f32.mxu0 %vm303_vm0, %v10692_v49 }
 0x336   : > { %11913 = vst [vmem:[#allocation13_spill] sm:$0xff] %v10694_v51  ;;  %v4747_v20 = vpop.permute.xlu1 %4746  ;;  %8810 = vmatmul.mubr.msk.f32.vlgmr.msra.gmra.mxu0 %vm303_vm0, %v10694_v51 }
 0x337   : > { %8820 = vmatpush3.xpose.msk.msra.mxu0 %vm633_vm1, %v11897_v2  ;;  %8823 = vmatprep.mubr.msk.f32.mxu0 %vm633_vm1, %v11914_v16  ;;  %v11916_v2 = vld [vmem:[#allocation48_spill] sm:$0xff]  ;;  %v5113_v46 = vpop.permute.xlu0 %5112  ;;  %v11925_v16 = vld [vmem:[#allocation63_spill] sm:$0xff] }
 0x338   : > { %8821 = vmatprep.subr.msk.mxu0 %vm633_vm1, %v11915_v54  ;;  %8884 = vmatprep.subr.msk.mxu1 %vm633_vm1, %v4747_v20 }
 0x339   : > { %8885 = vmatpush3.xpose.msk.msra.mxu1 %vm633_vm1, %v4747_v20 }
 0x33a   : > { %8896 = vmatprep.subr.msk.mxu1 %vm633_vm1, %v4931_v56  ;;  %v4743_v22 = vpop.permute.xlu1 %4742 }
 0x33b   : > { %8822 = vmatpush3.xpose.msk.msra.mxu0 %vm633_vm1, %v11915_v54  ;;  %8886 = vmatprep.mubr.msk.f32.mxu1 %vm633_vm1, %v4743_v22  ;;  %v5018_v20 = vpop.permute.xlu0 %5017  ;;  %v11926_v22 = vld [vmem:[#allocation69_spill] sm:$0xff] }
 0x33c   : > { %8833 = vmatprep.subr.msk.mxu0 %vm633_vm1, %v11916_v2  ;;  %8887 = vmatmul.mubr.msk.f32.vlgmr.msra.gmra.mxu1 %vm633_vm1, %v4745_v32  ;;  %v11923_v32 = vld [vmem:[#allocation60_spill] sm:$0xff] }
 0x33d   : > { %8897 = vmatpush3.xpose.msk.msra.mxu1 %vm633_vm1, %v4931_v56  ;;  %v11924_v56 = vld [vmem:[#allocation65_spill] sm:$0xff] }
 0x33e   : > { %8824 = vmatmul.mubr.msk.f32.vlgmr.msra.gmra.mxu0 %vm633_vm1, %v11917_v24  ;;  %v4838_v41 = vpop.permute.xlu1 %4837 }
 0x33f   : > { %8834 = vmatpush3.xpose.msk.msra.mxu0 %vm633_vm1, %v11916_v2  ;;  %8837 = vmatprep.mubr.msk.f32.mxu0 %vm633_vm1, %v11918_v27  ;;  %v5204_v24 = vpop.permute.xlu0 %5203 }
 0x340   : > { %8835 = vmatprep.subr.msk.mxu0 %vm633_vm1, %v11919_v44 }
 0x342   : > { %v4834_v55 = vpop.permute.xlu1 %4833 }
 0x343   : > { %8836 = vmatpush3.xpose.msk.msra.mxu0 %vm633_vm1, %v11919_v44 }
 0x344   : > { %8847 = vmatprep.subr.msk.mxu0 %vm633_vm1, %v11920_v38 }
 0x346   : > { %8838 = vmatmul.mubr.msk.f32.vlgmr.msra.gmra.mxu0 %vm633_vm1, %v11921_v37  ;;  %v4929_v10 = vpop.permute.xlu1 %4928 }
 0x347   : > { %8848 = vmatpush3.xpose.msk.msra.mxu0 %vm633_vm1, %v11920_v38  ;;  %8851 = vmatprep.mubr.msk.f32.mxu0 %vm633_vm1, %v11922_v57 }
 0x348   : > { %8849 = vmatprep.subr.msk.mxu0 %vm633_vm1, %v11923_v32  ;;  %8898 = vmatprep.subr.msk.mxu1 %vm633_vm1, %v4929_v10 }
 0x349   : > { %8899 = vmatpush3.xpose.msk.msra.mxu1 %vm633_vm1, %v4929_v10 }
 0x34a   : > { %8910 = vmatprep.subr.msk.mxu1 %vm633_vm1, %v5113_v46  ;;  %v4925_v9 = vpop.permute.xlu1 %4924 }
 0x34b   : > { %8850 = vmatpush3.xpose.msk.msra.mxu0 %vm633_vm1, %v11923_v32  ;;  %8900 = vmatprep.mubr.msk.f32.mxu1 %vm633_vm1, %v4925_v9 }
 0x34c   : > { %8861 = vmatprep.subr.msk.mxu0 %vm633_vm1, %v11924_v56  ;;  %8901 = vmatmul.mubr.msk.f32.vlgmr.msra.gmra.mxu1 %vm633_vm1, %v4927_v15 }
 0x34d   : > { %8911 = vmatpush3.xpose.msk.msra.mxu1 %vm633_vm1, %v5113_v46 }
 0x34e   : > { %8852 = vmatmul.mubr.msk.f32.vlgmr.msra.gmra.mxu0 %vm633_vm1, %v11925_v16  ;;  %v5020_v54 = vpop.permute.xlu1 %5019 }
 0x34f   : > { %8862 = vmatpush3.xpose.msk.msra.mxu0 %vm633_vm1, %v11924_v56  ;;  %8865 = vmatprep.mubr.msk.f32.mxu0 %vm633_vm1, %v10653_v40  ;;  %v5109_v40 = vpop.permute.xlu0 %5108 }
 0x350   : > { %8863 = vmatprep.subr.msk.mxu0 %vm633_vm1, %v11926_v22 }
 0x352   : > { %v5016_v2 = vpop.permute.xlu1 %5015 }
 0x353   : > { %8864 = vmatpush3.xpose.msk.msra.mxu0 %vm633_vm1, %v11926_v22 }
 0x354   : > { %8875 = vmatprep.subr.msk.mxu0 %vm633_vm1, %v10609_v60 }
 0x356   : > { %8866 = vmatmul.mubr.msk.f32.vlgmr.msra.gmra.mxu0 %vm633_vm1, %v10585_v48  ;;  %v5111_v27 = vpop.permute.xlu1 %5110 }
 0x357   : > { %8876 = vmatpush3.xpose.msk.msra.mxu0 %vm633_vm1, %v10609_v60  ;;  %8879 = vmatprep.mubr.msk.f32.mxu0 %vm633_vm1, %v4652_v4  ;;  %v5198_v60 = vpop.permute.xlu0 %5197 }
 0x358   : > { %8877 = vmatprep.subr.msk.mxu0 %vm633_vm1, %v10689_v59  ;;  %8912 = vmatprep.subr.msk.mxu1 %vm633_vm1, %v5111_v27 }
 0x359   : > { %8913 = vmatpush3.xpose.msk.msra.mxu1 %vm633_vm1, %v5111_v27  ;;  %v10841_v27 = vld [vmem:[%s11672_s4 + $0x18] sm:$0xff] }
 0x35a   : > { %v5107_v44 = vpop.permute.xlu1 %5106 }
 0x35b   : > { %8878 = vmatpush3.xpose.msk.msra.mxu0 %vm633_vm1, %v10689_v59  ;;  %8914 = vmatprep.mubr.msk.f32.mxu1 %vm633_vm1, %v5107_v44  ;;  %v5577_v4 = vpop.permute.xlu0 %5576 }
 0x35c   : > { %8889 = vmatprep.subr.msk.mxu0 %vm633_vm1, %v10669_v25  ;;  %8915 = vmatmul.mubr.msk.f32.vlgmr.msra.gmra.mxu1 %vm633_vm1, %v5109_v40 }
 0x35e   : > { %8880 = vmatmul.mubr.msk.f32.vlgmr.msra.gmra.mxu0 %vm633_vm1, %v10651_v53  ;;  %v5202_v48 = vpop.permute.xlu1 %5201 }
 0x35f   : > { %8890 = vmatpush3.xpose.msk.msra.mxu0 %vm633_vm1, %v10669_v25  ;;  %8893 = vmatprep.mubr.msk.f32.mxu0 %vm633_vm1, %v4834_v55  ;;  %v10792_v25 = vpop.permute.xlu0 %5752 }
 0x360   : > { %8891 = vmatprep.subr.msk.mxu0 %vm633_vm1, %v4838_v41 }
 0x362   : > { %v5200_v59 = vpop.permute.xlu1 %5199 }
 0x363   : > { %8892 = vmatpush3.xpose.msk.msra.mxu0 %vm633_vm1, %v4838_v41  ;;  %v10803_v41 = vpop.permute.xlu0 %5839 }
 0x364   : > { %8903 = vmatprep.subr.msk.mxu0 %vm633_vm1, %v10711_v42 }
 0x366   : > { %8894 = vmatmul.mubr.msk.f32.vlgmr.msra.gmra.mxu0 %vm633_vm1, %v10696_v61  ;;  %v5579_v53 = vpop.permute.xlu1 %5578 }
 0x367   : > { %8904 = vmatpush3.xpose.msk.msra.mxu0 %vm633_vm1, %v10711_v42  ;;  %8907 = vmatprep.mubr.msk.f32.mxu0 %vm633_vm1, %v5016_v2 }
 0x368   : > { %8905 = vmatprep.subr.msk.mxu0 %vm633_vm1, %v5020_v54  ;;  %8924 = vmatprep.subr.mxu1 %v5579_v53 }
 0x369   : > { %8925 = vmatpush3.msra.mxu1 %v5579_v53 }
 0x36a   : > { %8926 = vmatprep.subr.mxu1 %v5577_v4  ;;  %v5666_v61 = vpop.permute.xlu1 %5665 }
 0x36b   : > { %8906 = vmatpush3.xpose.msk.msra.mxu0 %vm633_vm1, %v5020_v54  ;;  %8927 = vmatpush3.msra.mxu1 %v5577_v4 }
 0x36c   : > { %8917 = vmatprep.subr.msk.mxu0 %vm633_vm1, %v5204_v24  ;;  %8938 = vmatprep.subr.mxu1 %v10792_v25 }
 0x36e   : > { %8908 = vmatmul.mubr.msk.f32.vlgmr.msra.gmra.mxu0 %vm633_vm1, %v5018_v20  ;;  %v5664_v42 = vpop.permute.xlu1 %5663 }
 0x36f   : > { %8918 = vmatpush3.xpose.msk.msra.mxu0 %vm633_vm1, %v5204_v24  ;;  %8921 = vmatprep.mubr.msk.f32.mxu0 %vm633_vm1, %v5198_v60 }
 0x370   : > { %8919 = vmatprep.subr.msk.mxu0 %vm633_vm1, %v5202_v48 }
 0x373   : > { %8920 = vmatpush3.xpose.msk.msra.mxu0 %vm633_vm1, %v5202_v48  ;;  %v10830_v54 = vpop.f32.mrf.mxu0  ;;  %v10848_v48 = vld [vmem:[%s11672_s4 + $0x10] sm:$0xff] }
 0x374   : > { %8931 = vmatprep.subr.mxu0 %v5666_v61  ;;  %11939 = vst [vmem:[#allocation31_spill] sm:$0xff] %v10830_v54  ;;  %v10946_v54 = vpop.permute.xlu1 %5750 }
 0x375   : > { %v10834_v2 = vpop.f32.mrf.mxu0 }
 0x376   : > { %8922 = vmatmul.mubr.msk.f32.vlgmr.msra.gmra.mxu0 %vm633_vm1, %v5200_v59  ;;  %11941 = vst [vmem:[#allocation8_spill] sm:$0xff] %v10834_v2 }
 0x377   : > { %8932 = vmatpush3.msra.mxu0 %v5666_v61 }
 0x378   : > { %8933 = vmatprep.subr.mxu0 %v5664_v42  ;;  %v10963_v11 = vpop.permute.xlu1 %5837 }
 0x379   : > { %8934 = vmatpush3.msra.mxu0 %v5664_v42 }
 0x37a   : > { %8945 = vmatprep.subr.mxu0 %v10803_v41  ;;  %v10843_v40 = vpop.f32.mrf.mxu0 }
 0x37b   : > { %11943 = vst [vmem:[#allocation35_spill] sm:$0xff] %v10843_v40 }
 0x37c   : > { %v10858_v61 = vpop.f32.mrf.mxu0 }
 0x37d   : > { %11944 = vst [vmem:[#allocation10_spill] sm:$0xff] %v10858_v61 }
 0x384   : > { %v10806_v15 = vpop.f32.mrf.mxu1 }
 0x385   : > { %11927 = vst [vmem:[#allocation15_spill] sm:$0xff] %v10806_v15 }
 0x386   : > { %v10808_v55 = vpop.f32.mrf.mxu1 }
 0x387   : > { %11928 = vst [vmem:[#allocation22_spill] sm:$0xff] %v10808_v55 }
 0x398   : > { %v10810_v38 = vpop.f32.mrf.mxu1 }
 0x399   : > { %11929 = vst [vmem:[#allocation5_spill] sm:$0xff] %v10810_v38 }
 0x39a   : > { %v10812_v37 = vpop.f32.mrf.mxu1 }
 0x39b   : > { %11930 = vst [vmem:[#allocation17_spill] sm:$0xff] %v10812_v37 }
 0x3b1   : > { %v10814_v10 = vpop.f32.mrf.mxu1 }
 0x3b2   : > { %11931 = vst [vmem:[#allocation19_spill] sm:$0xff] %v10814_v10 }
 0x3b3   : > { %v10816_v46 = vpop.f32.mrf.mxu1 }
 0x3b4   : > { %11932 = vst [vmem:[#allocation25_spill] sm:$0xff] %v10816_v46 }
 0x3b6   : > { %v10818_v57 = vpop.f32.mrf.mxu1 }
 0x3b7   : > { %11933 = vst [vmem:[#allocation6_spill] sm:$0xff] %v10818_v57 }
 0x3b8   : > { %v10820_v32 = vpop.f32.mrf.mxu1 }
 0x3b9   : > { %11934 = vst [vmem:[#allocation21_spill] sm:$0xff] %v10820_v32 }
 0x3bc   : > { %v10822_v9 = vpop.f32.mrf.mxu1 }
 0x3bd   : > { %11935 = vst [vmem:[#allocation23_spill] sm:$0xff] %v10822_v9 }
 0x3be   : > { %v10824_v56 = vpop.f32.mrf.mxu1 }
 0x3bf   : > { %11936 = vst [vmem:[#allocation27_spill] sm:$0xff] %v10824_v56 }
 0x3c0   : > { %v10826_v20 = vpop.f32.mrf.mxu1 }
 0x3c1   : > { %11937 = vst [vmem:[#allocation7_spill] sm:$0xff] %v10826_v20 }
 0x3c2   : > { %v10828_v16 = vpop.f32.mrf.mxu1 }
 0x3c3   : > { %11938 = vst [vmem:[#allocation26_spill] sm:$0xff] %v10828_v16 }
 0x3c6   : > { %v10832_v22 = vpop.f32.mrf.mxu1 }
 0x3c7   : > { %11940 = vst [vmem:[#allocation29_spill] sm:$0xff] %v10832_v22  ;;  %v10862_v22 = vpop.f32.mrf.mxu0 }
 0x3c8   : > { %v10836_v24 = vpop.f32.mrf.mxu1  ;;  %11945 = vst [vmem:[#allocation40_spill] sm:$0xff] %v10862_v22 }
 0x3c9   : > { %11942 = vst [vmem:[#allocation33_spill] sm:$0xff] %v10836_v24  ;;  %v10867_v20 = vpop.f32.mrf.mxu0 }
 0x3ca   : > { %11946 = vst [vmem:[#allocation34_spill] sm:$0xff] %v10867_v20 }
 0x3ce   : > { %v8818_v44 = vpop.f32.mrf.mxu1 }
 0x3cf   : > { %v10851_v60 = vadd.f32 %v8818_v44, %v10841_v27 }
 0x3d0   : > { %v3914_v59 = vpop.f32.mrf.mxu1 }
 0x3d1   : > { %v10854_v4 = vadd.f32 %v10848_v48, %v3914_v59  ;;  %v5291_v53 = vsel %vm303_vm0, %v10851_v60, -inf }
 0x3d2   : > { %5292 = vmax.xlane.f32.xlu1 %v5291_v53  ;;  %v10874_v53 = vpop.f32.mrf.mxu0 }
 0x3d3   : > { %v5288_v42 = vsel %vm303_vm0, %v10854_v4, -inf  ;;  %11947 = vst [vmem:[#allocation37_spill] sm:$0xff] %v10874_v53 }
 0x3d4   : > { %5289 = vmax.xlane.f32.xlu0 %v5288_v42  ;;  %v10878_v42 = vpop.f32.mrf.mxu0 }
 0x3d5   : > { %11948 = vst [vmem:[#allocation50_spill] sm:$0xff] %v10878_v42 }
 0x3d6   : > { %v8832_v24 = vpop.f32.mrf.mxu1  ;;  %v10883_v32 = vpop.f32.mrf.mxu0 }
 0x3d7   : > { %v10865_v44 = vadd.f32 %v8832_v24, %v10841_v27  ;;  %11949 = vst [vmem:[#allocation47_spill] sm:$0xff] %v10883_v32 }
 0x3d8   : > { %v4096_v59 = vpop.f32.mrf.mxu1 }
 0x3d9   : > { %v10870_v16 = vadd.f32 %v10848_v48, %v4096_v59  ;;  %v5303_v9 = vsel %vm303_vm0, %v10865_v44, -inf }
 0x3da   : > { %5304 = vmax.xlane.f32.xlu0 %v5303_v9 }
 0x3db   : > { %v5300_v56 = vsel %vm303_vm0, %v10870_v16, -inf }
 0x3dc   : > { %5301 = vmax.xlane.f32.xlu1 %v5300_v56  ;;  %v10892_v56 = vpop.f32.mrf.mxu0 }
 0x3dd   : > { %11950 = vst [vmem:[#allocation54_spill] sm:$0xff] %v10892_v56 }
 0x3de   : > { %v8846_v24 = vpop.f32.mrf.mxu1  ;;  %v10894_v53 = vpop.f32.mrf.mxu0 }
 0x3df   : > { %v10881_v57 = vadd.f32 %v8846_v24, %v10841_v27  ;;  %11951 = vst [vmem:[#allocation51_spill] sm:$0xff] %v10894_v53 }
 0x3e0   : > { %v4278_v59 = vpop.f32.mrf.mxu1  ;;  %v10899_v38 = vpop.f32.mrf.mxu0 }
 0x3e1   : > { %v10886_v10 = vadd.f32 %v10848_v48, %v4278_v59  ;;  %v5315_v46 = vsel %vm303_vm0, %v10881_v57, -inf  ;;  %11952 = vst [vmem:[#allocation57_spill] sm:$0xff] %v10899_v38 }
 0x3e2   : > { %5316 = vmax.xlane.f32.xlu0 %v5315_v46  ;;  %v10903_v37 = vpop.f32.mrf.mxu0 }
 0x3e3   : > { %v5312_v9 = vsel %vm303_vm0, %v10886_v10, -inf  ;;  %11953 = vst [vmem:[#allocation11_spill] sm:$0xff] %v10903_v37 }
 0x3e4   : > { %5313 = vmax.xlane.f32.xlu1 %v5312_v9  ;;  %v10905_v46 = vpop.f32.mrf.mxu0 }
 0x3e5   : > { %11954 = vst [vmem:[#allocation61_spill] sm:$0xff] %v10905_v46 }
 0x3e6   : > { %v8860_v24 = vpop.f32.mrf.mxu1  ;;  %v10907_v22 = vpop.f32.mrf.mxu0 }
 0x3e7   : > { %11955 = vst [vmem:[#allocation59_spill] sm:$0xff] %v10907_v22  ;;  %v10919_v38 = vadd.f32 %v8860_v24, %v10841_v27 }
 0x3e8   : > { %v4460_v42 = vpop.f32.mrf.mxu1  ;;  %v10909_v9 = vpop.f32.mrf.mxu0 }
 0x3e9   : > { %v10897_v32 = vadd.f32 %v10848_v48, %v4460_v42  ;;  %11956 = vst [vmem:[#allocation66_spill] sm:$0xff] %v10909_v9 }
 0x3eb   : > { %v5324_v59 = vsel %vm303_vm0, %v10897_v32, -inf }
 0x3ec   : > { %5325 = vmax.xlane.f32.xlu1 %v5324_v59 }
 0x3ee   : > { %v8874_v46 = vpop.f32.mrf.mxu1 }
 0x3ef   : > { %v10942_v40 = vadd.f32 %v8874_v46, %v10841_v27 }
 0x3f0   : > { %v4642_v9 = vpop.f32.mrf.mxu1 }
 0x3f6   : > { %v10911_v53 = vpop.f32.mrf.mxu0 }
 0x3f7   : > { %11957 = vst [vmem:[#allocation53_spill] sm:$0xff] %v10911_v53  ;;  %v5327_v53 = vsel %vm303_vm0, %v10919_v38, -inf }
 0x3f8   : > { %v10913_v56 = vpop.f32.mrf.mxu0 }
 0x3f9   : > { %11958 = vst [vmem:[#allocation64_spill] sm:$0xff] %v10913_v56 }
 0x3fc   : > { %v8888_v55 = vpop.f32.mrf.mxu1 }
 0x3fe   : > { %v8825_v42 = vpop.f32.mrf.mxu0 }
 0x3ff   : > { %v10916_v20 = vadd.f32 %v8825_v42, %v10841_v27 }
 0x400   : > { %v4005_v37 = vpop.f32.mrf.mxu0 }
 0x401   : > { %v5297_v59 = vsel %vm303_vm0, %v10916_v20, -inf  ;;  %v10924_v22 = vadd.f32 %v10848_v48, %v4005_v37  ;;  %v10937_v37 = vadd.f32 %v10848_v48, %v4642_v9 }
 0x402   : > { %5298 = vmax.xlane.f32.xlu0 %v5297_v59 }
 0x403   : > { %v5294_v59 = vsel %vm303_vm0, %v10924_v22, -inf }
 0x406   : > { %5328 = vmax.xlane.f32.xlu0 %v5327_v53  ;;  %v8839_v56 = vpop.f32.mrf.mxu0 }
 0x407   : > { %v10929_v15 = vadd.f32 %v8839_v56, %v10841_v27 }
 0x408   : > { %v4187_v42 = vpop.f32.mrf.mxu0 }
 0x409   : > { %v10932_v24 = vadd.f32 %v10848_v48, %v4187_v42  ;;  %v5309_v56 = vsel %vm303_vm0, %v10929_v15, -inf  ;;  %v4824_v42 = vpop.f32.mrf.mxu1 }
 0x40a   : > { %5295 = vmax.xlane.f32.xlu0 %v5294_v59  ;;  %v5336_v59 = vsel %vm303_vm0, %v10937_v37, -inf }
 0x40b   : > { %v5306_v53 = vsel %vm303_vm0, %v10932_v24, -inf }
 0x40c   : > { %5307 = vmax.xlane.f32.xlu1 %v5306_v53  ;;  %v8902_v9 = vpop.f32.mrf.mxu1  ;;  %v5339_v53 = vsel %vm303_vm0, %v10942_v40, -inf }
 0x40d   : > { %v10985_v45 = vadd.f32 %v8902_v9, %v10841_v27 }
 0x40e   : > { %v8853_v61 = vpop.f32.mrf.mxu0  ;;  %5310 = vmax.xlane.f32.xlu0 %v5309_v56  ;;  %v10959_v56 = vadd.f32 %v10848_v48, %v4824_v42  ;;  %v5006_v35 = vpop.f32.mrf.mxu1 }
 0x40f   : > { %v10951_v51 = vadd.f32 %v8853_v61, %v10841_v27  ;;  %v10966_v61 = vadd.f32 %v8888_v55, %v10841_v27  ;;  %v10980_v55 = vpop.permute.xlu1 %5924 }
 0x410   : > { %v4369_v2 = vpop.f32.mrf.mxu0  ;;  %5337 = vmax.xlane.f32.xlu1 %v5336_v59  ;;  %v5348_v42 = vsel %vm303_vm0, %v10959_v56, -inf }
 0x411   : > { %v10954_v46 = vadd.f32 %v10848_v48, %v4369_v2  ;;  %v5321_v2 = vsel %vm303_vm0, %v10951_v51, -inf }
 0x412   : > { %5340 = vmax.xlane.f32.xlu0 %v5339_v53  ;;  %v10971_v53 = vadd.f32 %v10848_v48, %v5006_v35 }
 0x413   : > { %v5318_v49 = vsel %vm303_vm0, %v10954_v46, -inf  ;;  %v10989_v14 = vpop.permute.xlu1 %6011 }
 0x414   : > { %5319 = vmax.xlane.f32.xlu1 %v5318_v49  ;;  %v5351_v49 = vsel %vm303_vm0, %v10966_v61, -inf  ;;  %v5360_v6 = vsel %vm303_vm0, %v10971_v53, -inf }
 0x416   : > { %v8867_v59 = vpop.f32.mrf.mxu0  ;;  %5322 = vmax.xlane.f32.xlu0 %v5321_v2 }
 0x417   : > { %v10976_v5 = vadd.f32 %v8867_v59, %v10841_v27 }
 0x418   : > { %5349 = vmax.xlane.f32.xlu1 %v5348_v42  ;;  %v4551_v2 = vpop.f32.mrf.mxu0 }
 0x419   : > { %v5333_v42 = vsel %vm303_vm0, %v10976_v5, -inf }
 0x41a   : > { %5352 = vmax.xlane.f32.xlu0 %v5351_v49  ;;  %v10992_v49 = vadd.f32 %v10848_v48, %v4551_v2 }
 0x41c   : > { %5361 = vmax.xlane.f32.xlu1 %v5360_v6  ;;  %v8916_v35 = vpop.f32.mrf.mxu1  ;;  %v5363_v6 = vsel %vm303_vm0, %v10985_v45, -inf  ;;  %v5330_v2 = vsel %vm303_vm0, %v10992_v49, -inf }
 0x41d   : > { %v11016_v12 = vadd.f32 %v8916_v35, %v10841_v27 }
 0x41e   : > { %v8881_v59 = vpop.f32.mrf.mxu0  ;;  %5334 = vmax.xlane.f32.xlu0 %v5333_v42  ;;  %v5188_v30 = vpop.f32.mrf.mxu1 }
 0x41f   : > { %v11000_v9 = vadd.f32 %v10848_v48, %v5188_v30  ;;  %v11005_v50 = vadd.f32 %v8881_v59, %v10841_v27  ;;  %v11013_v30 = vpop.permute.xlu0 %5926  ;;  %11961 = vst [vmem:[#allocation43_spill] sm:$0xff] %v11016_v12  ;;  %v5375_v35 = vsel %vm303_vm0, %v11016_v12, -inf }
 0x420   : > { %v4733_v39 = vpop.f32.mrf.mxu0 }
 0x421   : > { %v10995_v3 = vadd.f32 %v10848_v48, %v4733_v39  ;;  %11959 = vst [vmem:[#allocation68_spill] sm:$0xff] %v11000_v9  ;;  %11960 = vst [vmem:[#allocation67_spill] sm:$0xff] %v11005_v50  ;;  %v11009_v39 = vpop.permute.xlu1 %6098 }
 0x422   : > { %5364 = vmax.xlane.f32.xlu0 %v5363_v6  ;;  %v5372_v6 = vsel %vm303_vm0, %v11000_v9, -inf }
 0x423   : > { %v5342_v42 = vsel %vm303_vm0, %v10995_v3, -inf  ;;  %v11032_v52 = vpop.permute.xlu0 %6013 }
 0x424   : > { %5343 = vmax.xlane.f32.xlu1 %v5342_v42  ;;  %v5345_v42 = vsel %vm303_vm0, %v11005_v50, -inf }
 0x425   : > { %v11025_v58 = vpop.permute.xlu1 %6185 }
 0x426   : > { %v8895_v23 = vpop.f32.mrf.mxu0  ;;  %5331 = vmax.xlane.f32.xlu0 %v5330_v2  ;;  %11963 = vst [vmem:[#allocation48_spill] sm:$0xff] %v11025_v58 }
 0x427   : > { %v11038_v33 = vpop.permute.xlu0 %6100 }
 0x428   : > { %v4915_v36 = vpop.f32.mrf.mxu0  ;;  %5373 = vmax.xlane.f32.xlu1 %v5372_v6  ;;  %v11028_v6 = vadd.f32 %v8895_v23, %v10841_v27 }
 0x429   : > { %v11019_v59 = vadd.f32 %v10848_v48, %v4915_v36 }
 0x42a   : > { %5346 = vmax.xlane.f32.xlu0 %v5345_v42  ;;  %11964 = vst [vmem:[#allocation45_spill] sm:$0xff] %v11028_v6  ;;  %v5357_v36 = vsel %vm303_vm0, %v11028_v6, -inf  ;;  %v11036_v42 = vpop.permute.xlu1 %6272 }
 0x42b   : > { %11962 = vst [vmem:[#allocation39_spill] sm:$0xff] %v11019_v59  ;;  %v5354_v2 = vsel %vm303_vm0, %v11019_v59, -inf  ;;  %v11042_v28 = vpop.permute.xlu0 %6187 }
 0x42c   : > { %5355 = vmax.xlane.f32.xlu1 %v5354_v2 }
 0x42e   : > { %5376 = vmax.xlane.f32.xlu0 %v5375_v35  ;;  %v11040_v2 = vpop.permute.xlu1 %6359 }
 0x42f   : > { %11965 = vst [vmem:[#allocation55_spill] sm:$0xff] %v11040_v2  ;;  %v11048_v35 = vpop.permute.xlu0 %6274 }
 0x432   : > { %5358 = vmax.xlane.f32.xlu0 %v5357_v36  ;;  %v11046_v23 = vpop.permute.xlu1 %6448 }
 0x433   : > { %v11052_v43 = vpop.permute.xlu0 %6361 }
 0x434   : > { %11966 = vst [vmem:[#allocation52_spill] sm:$0xff] %v11052_v43 }
 0x436   : > { %v11050_v31 = vpop.permute.xlu1 %6446 }
 0x437   : > { %v11058_v6 = vpop.permute.xlu0 %6535 }
 0x438   : > { %11968 = vst [vmem:[#allocation56_spill] sm:$0xff] %v11058_v6 }
 0x43a   : > { %v11056_v36 = vpop.permute.xlu1 %6533 }
 0x43b   : > { %11967 = vst [vmem:[#allocation58_spill] sm:$0xff] %v11056_v36  ;;  %v11062_v17 = vpop.permute.xlu0 %6622 }
 0x43c   : > { %11970 = vst [vmem:[#allocation60_spill] sm:$0xff] %v11062_v17 }
 0x43d   : > { %6794 = vrot.lane.b32.xlu1 %v9698_v63, %s9449_s13  ;;  %v8909_v63 = vpop.f32.mrf.mxu0 }
 0x43e   : > { %v11060_v2 = vpop.permute.xlu1 %6620 }
 0x43f   : > { %11969 = vst [vmem:[#allocation62_spill] sm:$0xff] %v11060_v2  ;;  %v5097_v13 = vpop.f32.mrf.mxu0  ;;  %v11066_v59 = vpop.permute.xlu0 %6709 }
 0x440   : > { %11972 = vst [vmem:[#allocation63_spill] sm:$0xff] %v11066_v59  ;;  %v11069_v43 = vadd.f32 %v10848_v48, %v5097_v13  ;;  %v11079_v59 = vadd.f32 %v8909_v63, %v10841_v27 }
 0x441   : > { %v8923_v58 = vpop.f32.mrf.mxu0 }
 0x442   : > { %v11064_v12 = vpop.permute.xlu1 %6707 }
 0x443   : > { %11971 = vst [vmem:[#allocation65_spill] sm:$0xff] %v11064_v12  ;;  %v5279_v36 = vpop.f32.mrf.mxu0  ;;  %v5366_v12 = vsel %vm303_vm0, %v11069_v43, -inf }
 0x444   : > { %v11074_v17 = vadd.f32 %v10848_v48, %v5279_v36  ;;  %v11085_v48 = vadd.f32 %v8923_v58, %v10841_v27 }
 0x448   : > { %6796 = vrot.lane.b32.xlu0 %v9692_v62, %s9449_s13 }
 0x45b   : > { %v5293_v50 = vpop.xlane.xlu1 %5292 }
 0x45c   : > { %v5385_v62 = vsub.f32 %v10851_v60, %v5293_v50 }
 0x45d   : > { %v5290_v26 = vpop.xlane.xlu0 %5289 }
 0x45e   : > { %v5384_v6 = vsub.f32 %v10854_v4, %v5290_v26  ;;  %v5418_v2 = vmul.f32 1.442695, %v5385_v62  ;;  %v5378_v26 = vsel %vm303_vm0, %v11074_v17, -inf }
 0x460   : > { %v5416_v9 = vmul.f32 1.442695, %v5384_v6 }
 0x461   : > { %5367 = vmax.xlane.f32.xlu1 %v5366_v12  ;;  %v5369_v12 = vsel %vm303_vm0, %v11079_v59, -inf }
 0x462   : > { %9229 = vpow2.f32 %v5416_v9 }
 0x463   : > { %9231 = vpow2.f32 %v5418_v2  ;;  %v5305_v13 = vpop.xlane.xlu0 %5304 }
 0x464   : > { %v5389_v50 = vsub.f32 %v10865_v44, %v5305_v13  ;;  %v5381_v44 = vsel %vm303_vm0, %v11085_v48, -inf }
 0x465   : > { %v5302_v60 = vpop.xlane.xlu1 %5301  ;;  %5379 = vmax.xlane.f32.xlu1 %v5378_v26 }
 0x466   : > { %v5388_v4 = vsub.f32 %v10870_v16, %v5302_v60  ;;  %v5426_v6 = vmul.f32 1.442695, %v5389_v50 }
 0x467   : > { %5370 = vmax.xlane.f32.xlu0 %v5369_v12 }
 0x468   : > { %v5424_v9 = vmul.f32 1.442695, %v5388_v4 }
 0x46a   : > { %9233 = vpow2.f32 %v5424_v9 }
 0x46b   : > { %9235 = vpow2.f32 %v5426_v6  ;;  %v5317_v2 = vpop.xlane.xlu0 %5316  ;;  %5382 = vmax.xlane.f32.xlu0 %v5381_v44 }
 0x46c   : > { %v5393_v36 = vsub.f32 %v10881_v57, %v5317_v2 }
 0x46d   : > { %v5314_v63 = vpop.xlane.xlu1 %5313 }
 0x46e   : > { %v5392_v58 = vsub.f32 %v10886_v10, %v5314_v63  ;;  %v5434_v16 = vmul.f32 1.442695, %v5393_v36 }
 0x46f   : > { %v11094_v27 = vpop.eup %9229 }
 0x470   : > { %v11096_v62 = vpop.eup %9231  ;;  %v5432_v13 = vmul.f32 1.442695, %v5392_v58  ;;  %8928 = vmatprep.mubr.msk.f32.mxu1 %vm303_vm0, %v11094_v27 }
 0x471   : > { %8929 = vmatmul.mubr.msk.f32.vlgmr.msra.gmra.mxu1 %vm303_vm0, %v11096_v62 }
 0x472   : > { %9237 = vpow2.f32 %v5432_v13  ;;  %8939 = vmatpush3.msra.mxu1 %v10792_v25 }
 0x473   : > { %9239 = vpow2.f32 %v5434_v16  ;;  %8940 = vmatprep.subr.mxu1 %v10946_v54 }
 0x474   : > { %8941 = vmatpush3.msra.mxu1 %v10946_v54 }
 0x475   : > { %8952 = vmatprep.subr.mxu1 %v11013_v30  ;;  %v5326_v10 = vpop.xlane.xlu1 %5325 }
 0x476   : > { %v5396_v57 = vsub.f32 %v10897_v32, %v5326_v10  ;;  %6881 = vrot.lane.b32.xlu1 %v9706_v1, %s9449_s13 }
 0x477   : > { %v11109_v50 = vpop.eup %9233 }
 0x478   : > { %v11111_v26 = vpop.eup %9235  ;;  %v5440_v60 = vmul.f32 1.442695, %v5396_v57  ;;  %8942 = vmatprep.mubr.msk.f32.mxu1 %vm303_vm0, %v11109_v50  ;;  %v2253_v57 = vsel %vm303_vm0, %v10329_v19, 0.0  ;;  %v2256_v19 = vsel %vm303_vm0, %v10350_v21, 0.0 }
 0x479   : > { %8943 = vmatmul.mubr.msk.f32.vlgmr.msra.gmra.mxu1 %vm303_vm0, %v11111_v26 }
 0x47a   : > { %9241 = vpow2.f32 %v5440_v60  ;;  %8953 = vmatpush3.msra.mxu1 %v11013_v30 }
 0x47b   : > { %8954 = vmatprep.subr.mxu1 %v10980_v55 }
 0x47c   : > { %8955 = vmatpush3.msra.mxu1 %v10980_v55 }
 0x47d   : > { %8966 = vmatprep.subr.mxu1 %v11038_v33 }
 0x47f   : > { %v11121_v1 = vpop.eup %9237 }
 0x480   : > { %v11123_v25 = vpop.eup %9239  ;;  %8956 = vmatprep.mubr.msk.f32.mxu1 %vm303_vm0, %v11121_v1 }
 0x481   : > { %8957 = vmatmul.mubr.msk.f32.vlgmr.msra.gmra.mxu1 %vm303_vm0, %v11123_v25  ;;  %6883 = vrot.lane.b32.xlu0 %v9700_v0, %s9449_s13 }
 0x482   : > { %8967 = vmatpush3.msra.mxu1 %v11038_v33 }
 0x483   : > { %8968 = vmatprep.subr.mxu1 %v11009_v39 }
 0x484   : > { %8969 = vmatpush3.msra.mxu1 %v11009_v39 }
 0x485   : > { %8980 = vmatprep.subr.mxu1 %v11048_v35 }
 0x487   : > { %v11135_v32 = vpop.eup %9241 }
 0x488   : > { %8970 = vmatprep.mubr.msk.f32.mxu1 %vm303_vm0, %v11135_v32 }
 0x48b   : > { %v5299_v54 = vpop.xlane.xlu0 %5298 }
 0x48c   : > { %v5387_v4 = vsub.f32 %v10916_v20, %v5299_v54  ;;  %v2244_v54 = vsel %vm303_vm0, %v10305_v29, 0.0 }
 0x48e   : > { %v5422_v6 = vmul.f32 1.442695, %v5387_v4 }
 0x48f   : > { %v5329_v55 = vpop.xlane.xlu0 %5328 }
 0x490   : > { %v5397_v30 = vsub.f32 %v10919_v38, %v5329_v55  ;;  %v2250_v38 = vsel %vm303_vm0, %v10327_v34, 0.0 }
 0x492   : > { %v5442_v0 = vmul.f32 1.442695, %v5397_v30 }
 0x493   : > { %v5296_v12 = vpop.xlane.xlu0 %5295 }
 0x494   : > { %9243 = vpow2.f32 %v5442_v0  ;;  %v5386_v33 = vsub.f32 %v10924_v22, %v5296_v12 }
 0x495   : > { %v5308_v39 = vpop.xlane.xlu1 %5307 }
 0x496   : > { %v5420_v9 = vmul.f32 1.442695, %v5386_v33  ;;  %v5390_v44 = vsub.f32 %v10932_v24, %v5308_v39  ;;  %v2259_v33 = vsel %vm303_vm0, %v10354_v7, 0.0 }
 0x497   : > { %v5311_v2 = vpop.xlane.xlu0 %5310 }
 0x498   : > { %9245 = vpow2.f32 %v5420_v9  ;;  %v5428_v36 = vmul.f32 1.442695, %v5390_v44  ;;  %v5391_v63 = vsub.f32 %v10929_v15, %v5311_v2  ;;  %v5495_v2 = vsel %vm303_vm0, %v11111_v26, 0.0 }
 0x499   : > { %9247 = vpow2.f32 %v5422_v6  ;;  %v5338_v58 = vpop.xlane.xlu1 %5337 }
 0x49a   : > { %9249 = vpow2.f32 %v5428_v36  ;;  %v5430_v20 = vmul.f32 1.442695, %v5391_v63  ;;  %v5400_v16 = vsub.f32 %v10937_v37, %v5338_v58  ;;  %2251 = vadd.xlane.f32.xlu1 %v2250_v38  ;;  %v5492_v38 = vsel %vm303_vm0, %v11109_v50, 0.0 }
 0x49b   : > { %v5341_v22 = vpop.xlane.xlu0 %5340 }
 0x49c   : > { %9251 = vpow2.f32 %v5430_v20  ;;  %v5448_v13 = vmul.f32 1.442695, %v5400_v16  ;;  %v5401_v24 = vsub.f32 %v10942_v40, %v5341_v22  ;;  %v11973_v16 = vld [vmem:[#allocation68_spill] sm:$0xff] }
 0x49d   : > { %v5320_v10 = vpop.xlane.xlu1 %5319 }
 0x49e   : > { %9253 = vpow2.f32 %v5448_v13  ;;  %v5450_v15 = vmul.f32 1.442695, %v5401_v24  ;;  %v5394_v60 = vsub.f32 %v10954_v46, %v5320_v10  ;;  %2254 = vadd.xlane.f32.xlu1 %v2253_v57  ;;  %v11974_v13 = vld [vmem:[#allocation70_spill] sm:$0xff]  ;;  %v11975_v57 = vld [vmem:[#allocation60_spill] sm:$0xff] }
 0x49f   : > { %v5323_v34 = vpop.xlane.xlu0 %5322 }
 0x4a0   : > { %9255 = vpow2.f32 %v5450_v15  ;;  %v5436_v37 = vmul.f32 1.442695, %v5394_v60  ;;  %v5395_v55 = vsub.f32 %v10951_v51, %v5323_v34  ;;  %2245 = vadd.xlane.f32.xlu0 %v2244_v54  ;;  %v2247_v51 = vsel %vm303_vm0, %v10310_v47, 0.0  ;;  %v11976_v15 = vld [vmem:[#allocation67_spill] sm:$0xff] }
 0x4a1   : > { %v11154_v30 = vpop.eup %9243  ;;  %v5350_v40 = vpop.xlane.xlu1 %5349  ;;  %v5507_v34 = vsel %vm303_vm0, %v11123_v25, 0.0 }
 0x4a2   : > { %9257 = vpow2.f32 %v5436_v37  ;;  %v5438_v4 = vmul.f32 1.442695, %v5395_v55  ;;  %v5404_v46 = vsub.f32 %v10959_v56, %v5350_v40  ;;  %2257 = vadd.xlane.f32.xlu1 %v2256_v19  ;;  %8971 = vmatmul.mubr.msk.f32.vlgmr.msra.gmra.mxu1 %vm303_vm0, %v11154_v30  ;;  %v11977_v37 = vld [vmem:[#allocation48_spill] sm:$0xff]  ;;  %v11978_v40 = vld [vmem:[#allocation39_spill] sm:$0xff] }
 0x4a3   : > { %8981 = vmatpush3.msra.mxu1 %v11048_v35  ;;  %v5353_v29 = vpop.xlane.xlu0 %5352 }
 0x4a4   : > { %9259 = vpow2.f32 %v5438_v4  ;;  %v5456_v0 = vmul.f32 1.442695, %v5404_v46  ;;  %8982 = vmatprep.subr.mxu1 %v11036_v42  ;;  %v5405_v21 = vsub.f32 %v10966_v61, %v5353_v29  ;;  %2248 = vadd.xlane.f32.xlu0 %v2247_v51  ;;  %v11979_v4 = vld [vmem:[#allocation71_spill] sm:$0xff]  ;;  %v11980_v51 = vld [vmem:[#allocation52_spill] sm:$0xff] }
 0x4a5   : > { %v11166_v12 = vpop.eup %9245  ;;  %8983 = vmatpush3.msra.mxu1 %v11036_v42  ;;  %v5362_v56 = vpop.xlane.xlu1 %5361  ;;  %v5483_v42 = vsel %vm303_vm0, %v11096_v62, 0.0  ;;  %v2271_v46 = vsel %vm303_vm0, %v11979_v4, 0.0 }
 0x4a6   : > { %v11171_v35 = vpop.eup %9247  ;;  %9261 = vpow2.f32 %v5456_v0  ;;  %v5458_v6 = vmul.f32 1.442695, %v5405_v21  ;;  %v5408_v47 = vsub.f32 %v10971_v53, %v5362_v56  ;;  %8994 = vmatprep.subr.mxu1 %v11046_v23  ;;  %2260 = vadd.xlane.f32.xlu1 %v2259_v33  ;;  %v2262_v53 = vsel %vm303_vm0, %v10376_v18, 0.0  ;;  %v11981_v0 = vld [vmem:[#allocation43_spill] sm:$0xff]  ;;  %v11982_v33 = vld [vmem:[#allocation62_spill] sm:$0xff] }
 0x4a7   : > { %v11175_v39 = vpop.eup %9249  ;;  %8935 = vmatprep.mubr.msk.f32.mxu0 %vm303_vm0, %v11166_v12  ;;  %v5335_v61 = vpop.xlane.xlu0 %5334  ;;  %v5504_v56 = vsel %vm303_vm0, %v11121_v1, 0.0 }
 0x4a8   : > { %9263 = vpow2.f32 %v5458_v6  ;;  %v5464_v7 = vmul.f32 1.442695, %v5408_v47  ;;  %8936 = vmatmul.mubr.msk.f32.vlgmr.msra.gmra.mxu0 %vm303_vm0, %v11171_v35  ;;  %5484 = vadd.xlane.f32.xlu0 %v5483_v42  ;;  %v5399_v36 = vsub.f32 %v10976_v5, %v5335_v61  ;;  %v11983_v47 = vld [vmem:[#allocation72_spill] sm:$0xff] }
 0x4a9   : > { %v11183_v9 = vpop.eup %9251  ;;  %8946 = vmatpush3.msra.mxu0 %v10803_v41  ;;  %8949 = vmatprep.mubr.msk.f32.mxu0 %vm303_vm0, %v11175_v39  ;;  %v2274_v61 = vsel %vm303_vm0, %v11983_v47, 0.0  ;;  %v12000_v47 = vld [vmem:[#allocation41_spill] sm:$0xff] }
 0x4aa   : > { %9265 = vpow2.f32 %v5464_v7  ;;  %8947 = vmatprep.subr.mxu0 %v10963_v11  ;;  %2263 = vadd.xlane.f32.xlu1 %v2262_v53  ;;  %v5446_v20 = vmul.f32 1.442695, %v5399_v36  ;;  %v11984_v7 = vld [vmem:[#allocation45_spill] sm:$0xff]  ;;  %v5489_v53 = vsel %vm303_vm0, %v11171_v35, 0.0 }
 0x4ab   : > { %v11191_v62 = vpop.eup %9253  ;;  %8948 = vmatpush3.msra.mxu0 %v10963_v11  ;;  %v5365_v44 = vpop.xlane.xlu0 %5364 }
 0x4ac   : > { %8959 = vmatprep.subr.mxu0 %v11032_v52  ;;  %8950 = vmatmul.mubr.msk.f32.vlgmr.msra.gmra.mxu0 %vm303_vm0, %v11183_v9  ;;  %v5409_v41 = vsub.f32 %v10985_v45, %v5365_v44  ;;  %v2265_v45 = vsel %vm303_vm0, %v10380_v8, 0.0 }
 0x4ad   : > { %v11200_v18 = vpop.eup %9255  ;;  %8960 = vmatpush3.msra.mxu0 %v11032_v52  ;;  %5496 = vadd.xlane.f32.xlu0 %v5495_v2  ;;  %v5344_v63 = vpop.xlane.xlu1 %5343  ;;  %v11985_v2 = vld [vmem:[#allocation9_spill] sm:$0xff] }
 0x4ae   : > { %v5466_v11 = vmul.f32 1.442695, %v5409_v41  ;;  %8961 = vmatprep.subr.mxu0 %v10989_v14  ;;  %8984 = vmatprep.mubr.msk.f32.mxu1 %vm303_vm0, %v11191_v62  ;;  %v5402_v26 = vsub.f32 %v10995_v3, %v5344_v63  ;;  %v2277_v36 = vsel %vm303_vm0, %v11985_v2, 0.0 }
 0x4af   : > { %v11209_v58 = vpop.eup %9257  ;;  %8962 = vmatpush3.msra.mxu0 %v10989_v14  ;;  %2266 = vadd.xlane.f32.xlu1 %v2265_v45  ;;  %v5332_v5 = vpop.xlane.xlu0 %5331 }
 0x4b0   : > { %9267 = vpow2.f32 %v5466_v11  ;;  %8973 = vmatprep.subr.mxu0 %v11042_v28  ;;  %8985 = vmatmul.mubr.msk.f32.vlgmr.msra.gmra.mxu1 %vm303_vm0, %v11200_v18  ;;  %v5398_v52 = vsub.f32 %v10992_v49, %v5332_v5  ;;  %v2268_v49 = vsel %vm303_vm0, %v11974_v13, 0.0  ;;  %v5452_v50 = vmul.f32 1.442695, %v5402_v26  ;;  %v11986_v5 = vld [vmem:[#allocation38_spill] sm:$0xff] }
 0x4b1   : > { %v11219_v8 = vpop.eup %9259  ;;  %8995 = vmatpush3.msra.mxu1 %v11046_v23  ;;  %5493 = vadd.xlane.f32.xlu0 %v5492_v38  ;;  %v5374_v3 = vpop.xlane.xlu1 %5373  ;;  %v5519_v11 = vsel %vm303_vm0, %v11154_v30, 0.0 }
 0x4b2   : > { %8996 = vmatprep.subr.mxu1 %v11050_v31  ;;  %v5444_v14 = vmul.f32 1.442695, %v5398_v52  ;;  %8963 = vmatprep.mubr.msk.f32.mxu0 %vm303_vm0, %v11209_v58  ;;  %v5412_v22 = vsub.f32 %v11973_v16, %v5374_v3  ;;  %v2280_v52 = vsel %vm303_vm0, %v11986_v5, 0.0  ;;  %v11988_v16 = vld [vmem:[#allocation24_spill] sm:$0xff] }
 0x4b3   : > { %v11228_v24 = vpop.eup %9261  ;;  %8997 = vmatpush3.msra.mxu1 %v11050_v31  ;;  %2269 = vadd.xlane.f32.xlu1 %v2268_v49  ;;  %v5347_v23 = vpop.xlane.xlu0 %5346  ;;  %v5516_v49 = vsel %vm303_vm0, %v11135_v32, 0.0  ;;  %v5501_v32 = vsel %vm303_vm0, %v11183_v9, 0.0  ;;  %v5480_v9 = vsel %vm303_vm0, %v11094_v27, 0.0  ;;  %v5513_v27 = vsel %vm303_vm0, %v11219_v8, 0.0 }
 0x4b4   : > { %9269 = vpow2.f32 %v5444_v14  ;;  %v5472_v10 = vmul.f32 1.442695, %v5412_v22  ;;  %9008 = vmatprep.subr.mxu1 %v11975_v57  ;;  %8964 = vmatmul.mubr.msk.f32.vlgmr.msra.gmra.mxu0 %vm303_vm0, %v11219_v8  ;;  %v5403_v60 = vsub.f32 %v11976_v15, %v5347_v23  ;;  %v11987_v14 = vld [vmem:[#allocation55_spill] sm:$0xff]  ;;  %v2283_v22 = vsel %vm303_vm0, %v11988_v16, 0.0  ;;  %v11990_v23 = vld [vmem:[#allocation58_spill] sm:$0xff] }
 0x4b5   : > { %v11237_v54 = vpop.eup %9263  ;;  %9271 = vpow2.f32 %v5446_v20  ;;  %8974 = vmatpush3.msra.mxu0 %v11042_v28  ;;  %5508 = vadd.xlane.f32.xlu0 %v5507_v34  ;;  %v5356_v31 = vpop.xlane.xlu1 %5355  ;;  %v5486_v20 = vsel %vm303_vm0, %v11166_v12, 0.0  ;;  %v11989_v12 = vld [vmem:[#allocation56_spill] sm:$0xff]  ;;  %v11992_v15 = vld [vmem:[#allocation63_spill] sm:$0xff] }
 0x4b6   : > { %9273 = vpow2.f32 %v5472_v10  ;;  %8975 = vmatprep.subr.mxu0 %v11977_v37  ;;  %v5454_v55 = vmul.f32 1.442695, %v5403_v60  ;;  %8998 = vmatprep.mubr.msk.f32.mxu1 %vm303_vm0, %v11228_v24  ;;  %v5406_v19 = vsub.f32 %v11978_v40, %v5356_v31  ;;  %v11991_v10 = vld [vmem:[#allocation28_spill] sm:$0xff]  ;;  %v5498_v40 = vsel %vm303_vm0, %v11175_v39, 0.0 }
 0x4b7   : > { %v11246_v25 = vpop.eup %9265  ;;  %9275 = vpow2.f32 %v5452_v50  ;;  %8976 = vmatpush3.msra.mxu0 %v11977_v37  ;;  %2272 = vadd.xlane.f32.xlu1 %v2271_v46  ;;  %v5377_v28 = vpop.xlane.xlu0 %5376  ;;  %v11993_v34 = vld [vmem:[#allocation12_spill] sm:$0xff]  ;;  %v11994_v37 = vld [vmem:[#allocation65_spill] sm:$0xff]  ;;  %v5528_v46 = vsel %vm303_vm0, %v11191_v62, 0.0 }
 0x4b8   : > { %9277 = vpow2.f32 %v5454_v55  ;;  %v5460_v29 = vmul.f32 1.442695, %v5406_v19  ;;  %8987 = vmatprep.subr.mxu0 %v11980_v51  ;;  %8999 = vmatmul.mubr.msk.f32.vlgmr.msra.gmra.mxu1 %vm303_vm0, %v11237_v54  ;;  %v5413_v21 = vsub.f32 %v11981_v0, %v5377_v28  ;;  %v2289_v31 = vsel %vm303_vm0, %v11993_v34, 0.0  ;;  %v11995_v19 = vld [vmem:[#allocation14_spill] sm:$0xff]  ;;  %v11998_v0 = vld [vmem:[#allocation32_spill] sm:$0xff] }
 0x4b9   : > { %9009 = vmatpush3.msra.mxu1 %v11975_v57  ;;  %5505 = vadd.xlane.f32.xlu0 %v5504_v56  ;;  %v6795_v35 = vpop.permute.xlu1 %6794  ;;  %v2286_v57 = vsel %vm303_vm0, %v11991_v10, 0.0  ;;  %v5531_v55 = vsel %vm303_vm0, %v11200_v18, 0.0  ;;  %v2292_v4 = vsel %vm303_vm0, %v11995_v19, 0.0  ;;  %v11996_v18 = vld [vmem:[#allocation42_spill] sm:$0xff]  ;;  %v2301_v62 = vsel %vm303_vm0, %v11998_v0, 0.0 }
 0x4ba   : > { %9279 = vpow2.f32 %v5460_v29  ;;  %9010 = vmatprep.subr.mxu1 %v11982_v33  ;;  %v5474_v6 = vmul.f32 1.442695, %v5413_v21  ;;  %9012 = vmatprep.mubr.msk.f32.mxu1 %vm303_vm0, %v11246_v25  ;;  %v2295_v28 = vsel %vm303_vm0, %v11996_v18, 0.0  ;;  %v11997_v29 = vld [vmem:[#allocation16_spill] sm:$0xff]  ;;  %v5510_v21 = vsel %vm303_vm0, %v11209_v58, 0.0  ;;  %v11999_v56 = vld [vmem:[#allocation30_spill] sm:$0xff] }
 0x4bb   : > { %9011 = vmatpush3.msra.mxu1 %v11982_v33  ;;  %2275 = vadd.xlane.f32.xlu1 %v2274_v61  ;;  %v5359_v42 = vpop.xlane.xlu0 %5358  ;;  %v2298_v39 = vsel %vm303_vm0, %v11997_v29, 0.0  ;;  %v2304_v8 = vsel %vm303_vm0, %v11999_v56, 0.0  ;;  %v5540_v33 = vsel %vm303_vm0, %v11228_v24, 0.0 }
 0x4bc   : > { %9281 = vpow2.f32 %v5474_v6  ;;  %v5407_v1 = vsub.f32 %v11984_v7, %v5359_v42  ;;  %v8110_v7 = vld [vmem:[%s11670_s2 + $0x8] sm:$0xff] }
 0x4bd   : > { %v11265_v44 = vpop.eup %9267  ;;  %5490 = vadd.xlane.f32.xlu0 %v5489_v53  ;;  %v12001_v53 = vld [vmem:[#allocation36_spill] sm:$0xff] }
 0x4be   : > { %v5462_v41 = vmul.f32 1.442695, %v5407_v1  ;;  %9013 = vmatmul.mubr.msk.f32.vlgmr.msra.gmra.mxu1 %vm303_vm0, %v11265_v44  ;;  %v2310_v24 = vsel %vm303_vm0, %v12001_v53, 0.0 }
 0x4bf   : > { %2278 = vadd.xlane.f32.xlu1 %v2277_v36  ;;  %v6797_v63 = vpop.permute.xlu0 %6796 }
 0x4c0   : > { %9283 = vpow2.f32 %v5462_v41  ;;  %9022 = vmatprep.subr.mxu1 %v6797_v63 }
 0x4c1   : > { %v11273_v45 = vpop.eup %9269  ;;  %5520 = vadd.xlane.f32.xlu0 %v5519_v11  ;;  %9023 = vmatpush3.msra.mxu1 %v6797_v63  ;;  %v12002_v11 = vld [vmem:[#allocation46_spill] sm:$0xff] }
 0x4c2   : > { %v11275_v26 = vpop.eup %9271  ;;  %8977 = vmatprep.mubr.msk.f32.mxu0 %vm303_vm0, %v11273_v45  ;;  %9024 = vmatprep.subr.mxu1 %v6795_v35  ;;  %v5522_v5 = vsel %vm303_vm0, %v11273_v45, 0.0 }
 0x4c3   : > { %v11281_v38 = vpop.eup %9273  ;;  %2281 = vadd.xlane.f32.xlu1 %v2280_v52  ;;  %8978 = vmatmul.mubr.msk.f32.vlgmr.msra.gmra.mxu0 %vm303_vm0, %v11275_v26  ;;  %v5525_v42 = vsel %vm303_vm0, %v11275_v26, 0.0 }
 0x4c4   : > { %v11285_v30 = vpop.eup %9275  ;;  %8988 = vmatpush3.msra.mxu0 %v11980_v51  ;;  %9025 = vmatpush3.msra.mxu1 %v6795_v35  ;;  %v5543_v51 = vsel %vm303_vm0, %v11237_v54, 0.0  ;;  %v2307_v54 = vsel %vm303_vm0, %v12000_v47, 0.0  ;;  %v2313_v35 = vsel %vm303_vm0, %v12002_v11, 0.0  ;;  %v5564_v34 = vsel %vm303_vm0, %v11281_v38, 0.0 }
 0x4c5   : > { %v11290_v3 = vpop.eup %9277  ;;  %5487 = vadd.xlane.f32.xlu0 %v5486_v20  ;;  %8989 = vmatprep.subr.mxu0 %v11987_v14 }
 0x4c6   : > { %8991 = vmatprep.mubr.msk.f32.mxu0 %vm303_vm0, %v11285_v30  ;;  %9026 = vmatprep.mubr.msk.f32.mxu1 %vm303_vm0, %v11281_v38  ;;  %v12008_v38 = vld [vmem:[#allocation20_spill] sm:$0xff] }
 0x4c7   : > { %v11299_v13 = vpop.eup %9279  ;;  %8990 = vmatpush3.msra.mxu0 %v11987_v14  ;;  %2284 = vadd.xlane.f32.xlu1 %v2283_v22  ;;  %v12004_v22 = vld [vmem:[#allocation3_spill] sm:$0xff] }
 0x4c8   : > { %9001 = vmatprep.subr.mxu0 %v11989_v12  ;;  %8992 = vmatmul.mubr.msk.f32.vlgmr.msra.gmra.mxu0 %vm303_vm0, %v11290_v3  ;;  %v2319_v45 = vsel %vm303_vm0, %v12004_v22, 0.0  ;;  %v5546_v19 = vsel %vm303_vm0, %v11299_v13, 0.0 }
 0x4c9   : > { %v11307_v50 = vpop.eup %9281  ;;  %9002 = vmatpush3.msra.mxu0 %v11989_v12  ;;  %5517 = vadd.xlane.f32.xlu0 %v5516_v49  ;;  %v12005_v49 = vld [vmem:[#allocation44_spill] sm:$0xff] }
 0x4ca   : > { %9003 = vmatprep.subr.mxu0 %v11990_v23  ;;  %9005 = vmatprep.mubr.msk.f32.mxu0 %vm303_vm0, %v11299_v13  ;;  %v5567_v29 = vsel %vm303_vm0, %v11307_v50, 0.0 }
 0x4cb   : > { %9004 = vmatpush3.msra.mxu0 %v11990_v23  ;;  %2287 = vadd.xlane.f32.xlu1 %v2286_v57  ;;  %v2322_v23 = vsel %vm303_vm0, %v12005_v49, 0.0  ;;  %v12006_v57 = vld [vmem:[#allocation4_spill] sm:$0xff] }
 0x4cc   : > { %9015 = vmatprep.subr.mxu0 %v11992_v15  ;;  %9027 = vmatmul.mubr.msk.f32.vlgmr.msra.gmra.mxu1 %vm303_vm0, %v11307_v50 }
 0x4cd   : > { %v11321_v60 = vpop.eup %9283  ;;  %5502 = vadd.xlane.f32.xlu0 %v5501_v32  ;;  %9036 = vmatprep.subr.mxu1 %v8110_v7 }
 0x4ce   : > { %9006 = vmatmul.mubr.msk.f32.vlgmr.msra.gmra.mxu0 %vm303_vm0, %v11321_v60  ;;  %9037 = vmatpush3.msra.mxu1 %v8110_v7 }
 0x4cf   : > { %2290 = vadd.xlane.f32.xlu1 %v2289_v31  ;;  %9016 = vmatpush3.msra.mxu0 %v11992_v15  ;;  %v2325_v15 = vsel %vm303_vm0, %v12006_v57, 0.0 }
 0x4d0   : > { %9017 = vmatprep.subr.mxu0 %v11994_v37 }
 0x4d1   : > { %5532 = vadd.xlane.f32.xlu0 %v5531_v55  ;;  %9018 = vmatpush3.msra.mxu0 %v11994_v37  ;;  %v12007_v37 = vld [vmem:[#allocation18_spill] sm:$0xff] }
 0x4d2   : > { %v2328_v55 = vsel %vm303_vm0, %v12007_v37, 0.0  ;;  %v12020_v37 = vld [vmem:[#allocation5_spill] sm:$0xff] }
 0x4d3   : > { %5481 = vadd.xlane.f32.xlu1 %v5480_v9  ;;  %v5549_v9 = vsel %vm303_vm0, %v11321_v60, 0.0 }
 0x4d5   : > { %5499 = vadd.xlane.f32.xlu0 %v5498_v40  ;;  %v2331_v40 = vsel %vm303_vm0, %v12008_v38, 0.0 }
 0x4d7   : > { %2293 = vadd.xlane.f32.xlu1 %v2292_v4  ;;  %v12009_v4 = vld [vmem:[#allocation49_spill] sm:$0xff] }
 0x4d9   : > { %5529 = vadd.xlane.f32.xlu0 %v5528_v46  ;;  %v2334_v46 = vsel %vm303_vm0, %v12009_v4, 0.0 }
 0x4db   : > { %2296 = vadd.xlane.f32.xlu1 %v2295_v28  ;;  %v12010_v28 = vld [vmem:[#allocation13_spill] sm:$0xff] }
 0x4dc   : > { %v2337_v60 = vsel %vm303_vm0, %v12010_v28, 0.0 }
 0x4dd   : > { %5514 = vadd.xlane.f32.xlu0 %v5513_v27 }
 0x4df   : > { %2299 = vadd.xlane.f32.xlu1 %v2298_v39 }
 0x4e1   : > { %5544 = vadd.xlane.f32.xlu0 %v5543_v51 }
 0x4e3   : > { %2302 = vadd.xlane.f32.xlu1 %v2301_v62 }
 0x4e5   : > { %5511 = vadd.xlane.f32.xlu0 %v5510_v21 }
 0x4e7   : > { %2305 = vadd.xlane.f32.xlu1 %v2304_v8 }
 0x4e9   : > { %5541 = vadd.xlane.f32.xlu0 %v5540_v33 }
 0x4ea   : > { %v5368_v6 = vpop.xlane.xlu1 %5367 }
 0x4eb   : > { %v5410_v61 = vsub.f32 %v11069_v43, %v5368_v6  ;;  %2308 = vadd.xlane.f32.xlu1 %v2307_v54  ;;  %v5555_v43 = vsel %vm303_vm0, %v11265_v44, 0.0  ;;  %v12003_v44 = vld [vmem:[#allocation2_spill] sm:$0xff] }
 0x4ec   : > { %v2316_v20 = vsel %vm303_vm0, %v12003_v44, 0.0 }
 0x4ed   : > { %v5468_v58 = vmul.f32 1.442695, %v5410_v61  ;;  %5526 = vadd.xlane.f32.xlu0 %v5525_v42  ;;  %v12011_v61 = vld [vmem:[#allocation8_spill] sm:$0xff] }
 0x4ee   : > { %v5380_v1 = vpop.xlane.xlu1 %5379 }
 0x4ef   : > { %9285 = vpow2.f32 %v5468_v58  ;;  %v5414_v41 = vsub.f32 %v11074_v17, %v5380_v1  ;;  %2311 = vadd.xlane.f32.xlu1 %v2310_v24  ;;  %v12012_v24 = vld [vmem:[#allocation31_spill] sm:$0xff] }
 0x4f0   : > { %v5371_v2 = vpop.xlane.xlu0 %5370 }
 0x4f1   : > { %5556 = vadd.xlane.f32.xlu0 %v5555_v43  ;;  %v5411_v36 = vsub.f32 %v11079_v59, %v5371_v2  ;;  %v5476_v63 = vmul.f32 1.442695, %v5414_v41  ;;  %v5552_v59 = vsel %vm303_vm0, %v11246_v25, 0.0  ;;  %v5534_v25 = vsel %vm303_vm0, %v11285_v30, 0.0  ;;  %v3828_v30 = vld [vmem:[%s11670_s2] sm:$0xff] }
 0x4f2   : > { %v12013_v2 = vld [vmem:[#allocation10_spill] sm:$0xff] }
 0x4f3   : > { %v5470_v26 = vmul.f32 1.442695, %v5411_v36  ;;  %2314 = vadd.xlane.f32.xlu1 %v2313_v35 }
 0x4f4   : > { %v5383_v52 = vpop.xlane.xlu0 %5382 }
 0x4f5   : > { %9287 = vpow2.f32 %v5470_v26  ;;  %5523 = vadd.xlane.f32.xlu0 %v5522_v5  ;;  %v5415_v17 = vsub.f32 %v11085_v48, %v5383_v52  ;;  %v5537_v48 = vsel %vm303_vm0, %v11290_v3, 0.0  ;;  %v6882_v3 = vpop.permute.xlu1 %6881  ;;  %v12014_v26 = vld [vmem:[#allocation35_spill] sm:$0xff] }
 0x4f6   : > { %9289 = vpow2.f32 %v5476_v63 }
 0x4f7   : > { %v5478_v14 = vmul.f32 1.442695, %v5415_v17  ;;  %2317 = vadd.xlane.f32.xlu1 %v2316_v20  ;;  %v12015_v17 = vld [vmem:[#allocation22_spill] sm:$0xff] }
 0x4f8   : > { %v6884_v16 = vpop.permute.xlu0 %6883 }
 0x4f9   : > { %9291 = vpow2.f32 %v5478_v14  ;;  %5553 = vadd.xlane.f32.xlu0 %v5552_v59  ;;  %9029 = vmatprep.subr.mxu0 %v6884_v16 }
 0x4fb   : > { %2320 = vadd.xlane.f32.xlu1 %v2319_v45  ;;  %v12017_v45 = vld [vmem:[#allocation34_spill] sm:$0xff] }
 0x4fc   : > { %v9286_v12 = vpop.eup %9285 }
 0x4fd   : > { %5538 = vadd.xlane.f32.xlu0 %v5537_v48  ;;  %9019 = vmatprep.mubr.msk.f32.mxu0 %vm303_vm0, %v9286_v12  ;;  %v5558_v27 = vsel %vm303_vm0, %v9286_v12, 0.0 }
 0x4ff   : > { %2323 = vadd.xlane.f32.xlu1 %v2322_v23 }
 0x501   : > { %5535 = vadd.xlane.f32.xlu0 %v5534_v25  ;;  %v12018_v25 = vld [vmem:[#allocation40_spill] sm:$0xff] }
 0x502   : > { %v9288_v10 = vpop.eup %9287 }
 0x503   : > { %v9290_v32 = vpop.eup %9289  ;;  %2326 = vadd.xlane.f32.xlu1 %v2325_v15  ;;  %9020 = vmatmul.mubr.msk.f32.vlgmr.msra.gmra.mxu0 %vm303_vm0, %v9288_v10  ;;  %v5561_v18 = vsel %vm303_vm0, %v9288_v10, 0.0 }
 0x504   : > { %9030 = vmatpush3.msra.mxu0 %v6884_v16  ;;  %9033 = vmatprep.mubr.msk.f32.mxu0 %vm303_vm0, %v9290_v32  ;;  %v5570_v13 = vsel %vm303_vm0, %v9290_v32, 0.0  ;;  %v12016_v16 = vld [vmem:[#allocation15_spill] sm:$0xff]  ;;  %v12019_v32 = vld [vmem:[#allocation17_spill] sm:$0xff] }
 0x505   : > { %5565 = vadd.xlane.f32.xlu0 %v5564_v34  ;;  %9031 = vmatprep.subr.mxu0 %v6882_v3 }
 0x506   : > { %v9292_v31 = vpop.eup %9291  ;;  %9032 = vmatpush3.msra.mxu0 %v6882_v3 }
 0x507   : > { %2329 = vadd.xlane.f32.xlu1 %v2328_v55  ;;  %9034 = vmatmul.mubr.msk.f32.vlgmr.msra.gmra.mxu0 %vm303_vm0, %v9292_v31  ;;  %v5573_v39 = vsel %vm303_vm0, %v9292_v31, 0.0 }
 0x508   : > { %9086 = vmatprep.subr.mxu0 %v3828_v30 }
 0x509   : > { %5550 = vadd.xlane.f32.xlu0 %v5549_v9  ;;  %9087 = vmatpush3.msra.mxu0 %v3828_v30 }
 0x50b   : > { %2332 = vadd.xlane.f32.xlu1 %v2331_v40 }
 0x50d   : > { %5547 = vadd.xlane.f32.xlu0 %v5546_v19  ;;  %v12021_v19 = vld [vmem:[#allocation50_spill] sm:$0xff] }
 0x50f   : > { %2335 = vadd.xlane.f32.xlu1 %v2334_v46 }
 0x511   : > { %5562 = vadd.xlane.f32.xlu0 %v5561_v18 }
 0x513   : > { %2338 = vadd.xlane.f32.xlu1 %v2337_v60  ;;  %v12022_v60 = vld [vmem:[#allocation37_spill] sm:$0xff] }
 0x515   : > { %5559 = vadd.xlane.f32.xlu0 %v5558_v27 }
 0x519   : > { %5568 = vadd.xlane.f32.xlu0 %v5567_v29 }
 0x51d   : > { %5571 = vadd.xlane.f32.xlu0 %v5570_v13 }
 0x521   : > { %5574 = vadd.xlane.f32.xlu0 %v5573_v39 }
 0x523   : > { %v2252_v51 = vpop.xlane.xlu1 %2251 }
 0x527   : > { %v2255_v0 = vpop.xlane.xlu1 %2254 }
 0x529   : > { %v2246_v62 = vpop.xlane.xlu0 %2245 }
 0x52a   : > { %9293 = vrcp.f32 %v2246_v62 }
 0x52b   : > { %v2258_v21 = vpop.xlane.xlu1 %2257  ;;  %9295 = vrcp.f32 %v2252_v51  ;;  %v12023_v51 = vld [vmem:[#allocation25_spill] sm:$0xff] }
 0x52d   : > { %v2249_v56 = vpop.xlane.xlu0 %2248 }
 0x52e   : > { %9297 = vrcp.f32 %v2249_v56 }
 0x52f   : > { %v2261_v8 = vpop.xlane.xlu1 %2260  ;;  %9299 = vrcp.f32 %v2255_v0 }
 0x530   : > { %9301 = vrcp.f32 %v2258_v21 }
 0x531   : > { %v11416_v33 = vpop.xlane.xlu0 %5484  ;;  %9303 = vrcp.f32 %v2261_v8  ;;  %v12024_v8 = vld [vmem:[#allocation19_spill] sm:$0xff] }
 0x533   : > { %v2264_v50 = vpop.xlane.xlu1 %2263 }
 0x534   : > { %9305 = vrcp.f32 %v2264_v50 }
 0x536   : > { %v11418_v6 = vpop.xlane.xlu0 %5496 }
 0x537   : > { %v9294_v47 = vpop.eup %9293 }
 0x538   : > { %v2267_v54 = vpop.xlane.xlu1 %2266  ;;  %v3796_v42 = vmul.f32 %v9294_v47, %v12011_v61  ;;  %v9296_v58 = vpop.eup %9295 }
 0x539   : > { %9307 = vrcp.f32 %v2267_v54  ;;  %v3798_v36 = vmul.f32 %v9296_v58, %v12013_v2 }
 0x53a   : > { %v11421_v7 = vpop.xlane.xlu0 %5493  ;;  %9088 = vmatprep.mubr.msk.f32.mxu0 %vm633_vm1, %v3796_v42 }
 0x53b   : > { %v9298_v1 = vpop.eup %9297 }
 0x53c   : > { %v2270_v53 = vpop.xlane.xlu1 %2269  ;;  %v3797_v41 = vmul.f32 %v9298_v1, %v12012_v24  ;;  %v9300_v43 = vpop.eup %9299 }
 0x53d   : > { %9309 = vrcp.f32 %v2270_v53  ;;  %v9302_v63 = vpop.eup %9301  ;;  %v3799_v5 = vmul.f32 %v9300_v43, %v12014_v26  ;;  %v8930_v1 = vpop.f32.mrf.mxu1 }
 0x53e   : > { %v11426_v11 = vpop.xlane.xlu0 %5508  ;;  %9089 = vmatmul.mubr.msk.f32.vlgmr.msra.gmra.mxu0 %vm633_vm1, %v3797_v41  ;;  %v9304_v52 = vpop.eup %9303  ;;  %v3800_v44 = vmul.f32 %v9302_v63, %v12015_v17 }
 0x53f   : > { %9091 = vmatprep.mubr.msk.f32.mxu0 %vm633_vm1, %v3798_v36  ;;  %v3801_v22 = vmul.f32 %v9304_v52, %v12016_v16  ;;  %v5654_v63 = vpop.f32.mrf.mxu1 }
 0x540   : > { %v2273_v35 = vpop.xlane.xlu1 %2272 }
 0x541   : > { %9311 = vrcp.f32 %v2273_v35  ;;  %v9306_v20 = vpop.eup %9305  ;;  %v8944_v17 = vpop.f32.mrf.mxu1 }
 0x542   : > { %v11432_v14 = vpop.xlane.xlu0 %5505  ;;  %9092 = vmatmul.mubr.msk.f32.gmra.mxu0 %vm633_vm1, %v3799_v5  ;;  %v3802_v12 = vmul.f32 %v9306_v20, %v12017_v45 }
 0x543   : > { %9094 = vmatprep.mubr.msk.f32.mxu0 %vm633_vm1, %v3800_v44 }
 0x544   : > { %v2276_v59 = vpop.xlane.xlu1 %2275 }
 0x545   : > { %9313 = vrcp.f32 %v2276_v59 }
 0x546   : > { %v9308_v48 = vpop.eup %9307  ;;  %v5491_v49 = vpop.xlane.xlu0 %5490  ;;  %9095 = vmatmul.mubr.msk.f32.gmra.mxu0 %vm633_vm1, %v3801_v22 }
 0x547   : > { %9097 = vmatprep.mubr.msk.f32.mxu0 %vm633_vm1, %v3802_v12  ;;  %v3803_v10 = vmul.f32 %v9308_v48, %v12018_v25  ;;  %v12027_v48 = vld [vmem:[#allocation21_spill] sm:$0xff] }
 0x548   : > { %v2279_v23 = vpop.xlane.xlu1 %2278 }
 0x549   : > { %9315 = vrcp.f32 %v2279_v23  ;;  %v5828_v23 = vpop.f32.mrf.mxu1 }
 0x54a   : > { %v9310_v57 = vpop.eup %9309  ;;  %v11441_v15 = vpop.xlane.xlu0 %5520  ;;  %9098 = vmatmul.mubr.msk.f32.gmra.mxu0 %vm633_vm1, %v3803_v10 }
 0x54b   : > { %v3804_v3 = vmul.f32 %v9310_v57, %v12019_v32 }
 0x54c   : > { %v2282_v34 = vpop.xlane.xlu1 %2281 }
 0x54d   : > { %9317 = vrcp.f32 %v2282_v34  ;;  %9100 = vmatprep.mubr.msk.f32.mxu0 %vm633_vm1, %v3804_v3 }
 0x54e   : > { %v9312_v30 = vpop.eup %9311  ;;  %v5488_v31 = vpop.xlane.xlu0 %5487 }
 0x54f   : > { %v3805_v55 = vmul.f32 %v9312_v30, %v12020_v37  ;;  %v8958_v30 = vpop.f32.mrf.mxu1 }
 0x550   : > { %v2285_v9 = vpop.xlane.xlu1 %2284 }
 0x551   : > { %9319 = vrcp.f32 %v2285_v9  ;;  %9101 = vmatmul.mubr.msk.f32.gmra.mxu0 %vm633_vm1, %v3805_v55 }
 0x552   : > { %v9314_v38 = vpop.eup %9313  ;;  %v11448_v40 = vpop.xlane.xlu0 %5517 }
 0x553   : > { %v3806_v4 = vmul.f32 %v9314_v38, %v12021_v19 }
 0x554   : > { %v2288_v46 = vpop.xlane.xlu1 %2287 }
 0x555   : > { %9321 = vrcp.f32 %v2288_v46  ;;  %9103 = vmatprep.mubr.msk.f32.mxu0 %vm633_vm1, %v3806_v4 }
 0x556   : > { %v9316_v18 = vpop.eup %9315  ;;  %v5503_v28 = vpop.xlane.xlu0 %5502 }
 0x557   : > { %v3807_v27 = vmul.f32 %v9316_v18, %v12022_v60  ;;  %v12029_v60 = vld [vmem:[#allocation57_spill] sm:$0xff] }
 0x558   : > { %v2291_v29 = vpop.xlane.xlu1 %2290 }
 0x559   : > { %9323 = vrcp.f32 %v2291_v29  ;;  %9104 = vmatmul.mubr.msk.f32.gmra.mxu0 %vm633_vm1, %v3807_v27 }
 0x55a   : > { %v9318_v13 = vpop.eup %9317  ;;  %v11454_v39 = vpop.xlane.xlu0 %5532  ;;  %9325 = vrcp.f32 %v11416_v33  ;;  %v12025_v33 = vld [vmem:[#allocation54_spill] sm:$0xff] }
 0x55b   : > { %v3808_v0 = vmul.f32 %v9318_v13, %v12023_v51 }
 0x55c   : > { %v5482_v62 = vpop.xlane.xlu1 %5481 }
 0x55d   : > { %9327 = vrcp.f32 %v5482_v62  ;;  %9106 = vmatprep.mubr.msk.f32.mxu0 %vm633_vm1, %v3808_v0 }
 0x55e   : > { %v9320_v21 = vpop.eup %9319  ;;  %v5500_v56 = vpop.xlane.xlu0 %5499  ;;  %9329 = vrcp.f32 %v5488_v31  ;;  %v12028_v31 = vld [vmem:[#allocation6_spill] sm:$0xff] }
 0x55f   : > { %v3809_v50 = vmul.f32 %v9320_v21, %v12024_v8  ;;  %9331 = vrcp.f32 %v11421_v7  ;;  %v12026_v7 = vld [vmem:[#allocation47_spill] sm:$0xff] }
 0x560   : > { %v2294_v47 = vpop.xlane.xlu1 %2293  ;;  %v12030_v8 = vld [vmem:[#allocation51_spill] sm:$0xff] }
 0x561   : > { %9333 = vrcp.f32 %v2294_v47  ;;  %9107 = vmatmul.mubr.msk.f32.gmra.mxu0 %vm633_vm1, %v3809_v50 }
 0x562   : > { %v9322_v54 = vpop.eup %9321  ;;  %9335 = vrcp.f32 %v5491_v49  ;;  %v11462_v61 = vpop.xlane.xlu0 %5529 }
 0x563   : > { %v3810_v42 = vmul.f32 %v9322_v54, %v12025_v33  ;;  %9337 = vrcp.f32 %v11418_v6 }
 0x564   : > { %v2297_v58 = vpop.xlane.xlu1 %2296 }
 0x565   : > { %9339 = vrcp.f32 %v2297_v58  ;;  %9109 = vmatprep.mubr.msk.f32.mxu0 %vm633_vm1, %v3810_v42 }
 0x566   : > { %v9324_v53 = vpop.eup %9323  ;;  %v5515_v24 = vpop.xlane.xlu0 %5514  ;;  %9341 = vrcp.f32 %v5500_v56 }
 0x567   : > { %v3811_v41 = vmul.f32 %v9324_v53, %v12026_v7  ;;  %9343 = vrcp.f32 %v11432_v14  ;;  %v9326_v36 = vpop.eup %9325 }
 0x568   : > { %v2300_v43 = vpop.xlane.xlu1 %2299  ;;  %v8937_v2 = vpop.f32.mrf.mxu0  ;;  %v7033_v20 = vmul.f32 %v9326_v36, %v8930_v1 }
 0x569   : > { %9345 = vrcp.f32 %v2300_v43  ;;  %9110 = vmatmul.mubr.msk.f32.gmra.mxu0 %vm633_vm1, %v3811_v41  ;;  %v12031_v41 = vld [vmem:[#allocation27_spill] sm:$0xff] }
 0x56a   : > { %v9328_v6 = vpop.eup %9327  ;;  %9347 = vrcp.f32 %v5503_v28  ;;  %v5741_v35 = vpop.f32.mrf.mxu0 }
 0x56b   : > { %v11470_v26 = vpop.xlane.xlu0 %5544  ;;  %v7032_v5 = vmul.f32 %v9328_v6, %v5654_v63  ;;  %v9330_v52 = vpop.eup %9329  ;;  %9349 = vrcp.f32 %v11426_v11 }
 0x56c   : > { %v2303_v44 = vpop.xlane.xlu1 %2302  ;;  %v9332_v14 = vpop.eup %9331  ;;  %v7034_v59 = vmul.f32 %v9330_v52, %v5741_v35  ;;  %v12032_v52 = vld [vmem:[#allocation23_spill] sm:$0xff] }
 0x56d   : > { %9351 = vrcp.f32 %v2303_v44  ;;  %9038 = vmatprep.mubr.msk.f32.mxu1 %vm633_vm1, %v7032_v5  ;;  %v8951_v22 = vpop.f32.mrf.mxu0  ;;  %v7036_v57 = vmul.f32 %v9332_v14, %v5828_v23 }
 0x56e   : > { %v9334_v16 = vpop.eup %9333  ;;  %9039 = vmatmul.mubr.msk.f32.vlgmr.msra.gmra.mxu1 %vm633_vm1, %v7033_v20 }
 0x56f   : > { %v5512_v45 = vpop.xlane.xlu0 %5511  ;;  %v9336_v12 = vpop.eup %9335  ;;  %9041 = vmatprep.mubr.msk.f32.mxu1 %vm633_vm1, %v7034_v59  ;;  %v3812_v49 = vmul.f32 %v9334_v16, %v12027_v48 }
 0x570   : > { %9353 = vrcp.f32 %v5512_v45  ;;  %v7035_v11 = vmul.f32 %v9336_v12, %v8937_v2  ;;  %v2306_v25 = vpop.xlane.xlu1 %2305  ;;  %v9338_v10 = vpop.eup %9337 }
 0x571   : > { %9355 = vrcp.f32 %v5515_v24  ;;  %9112 = vmatprep.mubr.msk.f32.mxu0 %vm633_vm1, %v3812_v49  ;;  %v5915_v3 = vpop.f32.mrf.mxu0  ;;  %v7037_v38 = vmul.f32 %v9338_v10, %v8944_v17  ;;  %v12034_v10 = vld [vmem:[#allocation11_spill] sm:$0xff] }
 0x572   : > { %9357 = vrcp.f32 %v2306_v25  ;;  %v9340_v32 = vpop.eup %9339  ;;  %9042 = vmatmul.mubr.msk.f32.gmra.mxu1 %vm633_vm1, %v7035_v11 }
 0x573   : > { %v11479_v34 = vpop.xlane.xlu0 %5541  ;;  %9359 = vrcp.f32 %v11448_v40  ;;  %9044 = vmatprep.mubr.msk.f32.mxu1 %vm633_vm1, %v7036_v57  ;;  %v3813_v37 = vmul.f32 %v9340_v32, %v12028_v31  ;;  %v9342_v55 = vpop.eup %9341 }
 0x574   : > { %v2309_v9 = vpop.xlane.xlu1 %2308  ;;  %v9344_v19 = vpop.eup %9343  ;;  %v7038_v4 = vmul.f32 %v9342_v55, %v5915_v3 }
 0x575   : > { %9361 = vrcp.f32 %v2309_v9  ;;  %9113 = vmatmul.mubr.msk.f32.gmra.mxu0 %vm633_vm1, %v3813_v37  ;;  %v6002_v40 = vpop.f32.mrf.mxu1  ;;  %v8965_v13 = vpop.f32.mrf.mxu0 }
 0x576   : > { %v9346_v46 = vpop.eup %9345  ;;  %9363 = vrcp.f32 %v11441_v15  ;;  %9045 = vmatmul.mubr.msk.f32.gmra.mxu1 %vm633_vm1, %v7037_v38  ;;  %v7040_v62 = vmul.f32 %v9344_v19, %v6002_v40  ;;  %v12035_v38 = vld [vmem:[#allocation26_spill] sm:$0xff]  ;;  %v12036_v40 = vld [vmem:[#allocation7_spill] sm:$0xff] }
 0x577   : > { %v5527_v18 = vpop.xlane.xlu0 %5526  ;;  %v9348_v28 = vpop.eup %9347  ;;  %9047 = vmatprep.mubr.msk.f32.mxu1 %vm633_vm1, %v7038_v4  ;;  %v3814_v27 = vmul.f32 %v9346_v46, %v12029_v60 }
 0x578   : > { %v7039_v29 = vmul.f32 %v9348_v28, %v8951_v22  ;;  %v2312_v51 = vpop.xlane.xlu1 %2311  ;;  %v9350_v0 = vpop.eup %9349  ;;  %v12033_v22 = vld [vmem:[#allocation61_spill] sm:$0xff] }
 0x579   : > { %9365 = vrcp.f32 %v2312_v51  ;;  %9115 = vmatprep.mubr.msk.f32.mxu0 %vm633_vm1, %v3814_v27  ;;  %v8972_v56 = vpop.f32.mrf.mxu1  ;;  %v6089_v54 = vpop.f32.mrf.mxu0  ;;  %v7041_v42 = vmul.f32 %v9350_v0, %v8958_v30 }
 0x57a   : > { %v9352_v21 = vpop.eup %9351  ;;  %9048 = vmatmul.mubr.msk.f32.gmra.mxu1 %vm633_vm1, %v7039_v29  ;;  %9367 = vrcp.f32 %v11462_v61 }
 0x57b   : > { %v11491_v15 = vpop.xlane.xlu0 %5556  ;;  %9050 = vmatprep.mubr.msk.f32.mxu1 %vm633_vm1, %v7040_v62  ;;  %v3815_v50 = vmul.f32 %v9352_v21, %v12030_v8  ;;  %v6176_v24 = vpop.f32.mrf.mxu1 }
 0x57c   : > { %v2315_v33 = vpop.xlane.xlu1 %2314 }
 0x57d   : > { %v9354_v47 = vpop.eup %9353  ;;  %9369 = vrcp.f32 %v2315_v33  ;;  %9116 = vmatmul.mubr.msk.f32.gmra.mxu0 %vm633_vm1, %v3815_v50  ;;  %v8986_v16 = vpop.f32.mrf.mxu1 }
 0x57e   : > { %v9356_v58 = vpop.eup %9355  ;;  %v7042_v1 = vmul.f32 %v9354_v47, %v6089_v54  ;;  %9371 = vrcp.f32 %v5527_v18  ;;  %9051 = vmatmul.mubr.msk.f32.gmra.mxu1 %vm633_vm1, %v7041_v42 }
 0x57f   : > { %v9358_v53 = vpop.eup %9357  ;;  %v5524_v7 = vpop.xlane.xlu0 %5523  ;;  %v7043_v2 = vmul.f32 %v9356_v58, %v8965_v13 }
 0x580   : > { %9373 = vrcp.f32 %v5524_v7  ;;  %9053 = vmatprep.mubr.msk.f32.mxu1 %vm633_vm1, %v7042_v1  ;;  %v3816_v43 = vmul.f32 %v9358_v53, %v12031_v41  ;;  %v9360_v61 = vpop.eup %9359  ;;  %v2318_v36 = vpop.xlane.xlu1 %2317  ;;  %v12038_v7 = vld [vmem:[#allocation59_spill] sm:$0xff] }
 0x581   : > { %v7044_v63 = vmul.f32 %v9360_v61, %v6176_v24  ;;  %9375 = vrcp.f32 %v2318_v36  ;;  %v6350_v25 = vpop.f32.mrf.mxu1  ;;  %v12039_v36 = vld [vmem:[#allocation33_spill] sm:$0xff] }
 0x582   : > { %9118 = vmatprep.mubr.msk.f32.mxu0 %vm633_vm1, %v3816_v43  ;;  %v9362_v6 = vpop.eup %9361  ;;  %9054 = vmatmul.mubr.msk.f32.gmra.mxu1 %vm633_vm1, %v7043_v2  ;;  %9377 = vrcp.f32 %v11454_v39 }
 0x583   : > { %v5554_v35 = vpop.xlane.xlu0 %5553  ;;  %v9364_v5 = vpop.eup %9363  ;;  %9056 = vmatprep.mubr.msk.f32.mxu1 %vm633_vm1, %v7044_v63  ;;  %v3817_v17 = vmul.f32 %v9362_v6, %v12032_v52 }
 0x584   : > { %v7045_v44 = vmul.f32 %v9364_v5, %v8972_v56  ;;  %v2321_v20 = vpop.xlane.xlu1 %2320  ;;  %v8979_v12 = vpop.f32.mrf.mxu0  ;;  %v12037_v56 = vld [vmem:[#allocation66_spill] sm:$0xff] }
 0x585   : > { %9379 = vrcp.f32 %v2321_v20  ;;  %9119 = vmatmul.mubr.msk.f32.gmra.mxu0 %vm633_vm1, %v3817_v17  ;;  %v9000_v0 = vpop.f32.mrf.mxu1  ;;  %v12040_v17 = vld [vmem:[#allocation29_spill] sm:$0xff] }
 0x586   : > { %v9366_v14 = vpop.eup %9365  ;;  %9057 = vmatmul.mubr.msk.f32.gmra.mxu1 %vm633_vm1, %v7045_v44  ;;  %9381 = vrcp.f32 %v11479_v34  ;;  %v6263_v3 = vpop.f32.mrf.mxu0 }
 0x587   : > { %v5539_v59 = vpop.xlane.xlu0 %5538  ;;  %v3818_v45 = vmul.f32 %v9366_v14, %v12033_v22  ;;  %v9368_v49 = vpop.eup %9367 }
 0x588   : > { %v2324_v48 = vpop.xlane.xlu1 %2323  ;;  %v7048_v9 = vmul.f32 %v9368_v49, %v6350_v25  ;;  %v8993_v27 = vpop.f32.mrf.mxu0 }
 0x589   : > { %9383 = vrcp.f32 %v2324_v48  ;;  %9121 = vmatprep.mubr.msk.f32.mxu0 %vm633_vm1, %v3818_v45  ;;  %v6524_v58 = vpop.f32.mrf.mxu1 }
 0x58a   : > { %v9370_v39 = vpop.eup %9369  ;;  %9385 = vrcp.f32 %v5539_v59  ;;  %v6437_v47 = vpop.f32.mrf.mxu0 }
 0x58b   : > { %v5536_v23 = vpop.xlane.xlu0 %5535  ;;  %v9372_v11 = vpop.eup %9371  ;;  %v3819_v57 = vmul.f32 %v9370_v39, %v12034_v10  ;;  %v12041_v39 = vld [vmem:[#allocation64_spill] sm:$0xff]  ;;  %v12042_v10 = vld [vmem:[#allocation53_spill] sm:$0xff] }
 0x58c   : > { %9387 = vrcp.f32 %v5536_v23  ;;  %v2327_v30 = vpop.xlane.xlu1 %2326  ;;  %v7047_v37 = vmul.f32 %v9372_v11, %v8979_v12  ;;  %v9014_v5 = vpop.f32.mrf.mxu1 }
 0x58d   : > { %v9374_v32 = vpop.eup %9373  ;;  %9389 = vrcp.f32 %v2327_v30  ;;  %9122 = vmatmul.mubr.msk.f32.gmra.mxu0 %vm633_vm1, %v3819_v57 }
 0x58e   : > { %v7046_v31 = vmul.f32 %v9374_v32, %v6263_v3  ;;  %v9376_v34 = vpop.eup %9375  ;;  %9391 = vrcp.f32 %v11470_v26  ;;  %v6698_v22 = vpop.f32.mrf.mxu1 }
 0x58f   : > { %v11513_v55 = vpop.xlane.xlu0 %5565  ;;  %v3820_v19 = vmul.f32 %v9376_v34, %v12035_v38  ;;  %v9378_v46 = vpop.eup %9377 }
 0x590   : > { %9059 = vmatprep.mubr.msk.f32.mxu1 %vm633_vm1, %v7046_v31  ;;  %v2330_v4 = vpop.xlane.xlu1 %2329  ;;  %v7049_v28 = vmul.f32 %v9378_v46, %v8986_v16  ;;  %v9028_v34 = vpop.f32.mrf.mxu1 }
 0x591   : > { %9060 = vmatmul.mubr.msk.f32.gmra.mxu1 %vm633_vm1, %v7047_v37  ;;  %9393 = vrcp.f32 %v2330_v4  ;;  %9124 = vmatprep.mubr.msk.f32.mxu0 %vm633_vm1, %v3820_v19 }
 0x592   : > { %9062 = vmatprep.mubr.msk.f32.mxu1 %vm633_vm1, %v7048_v9  ;;  %v9380_v18 = vpop.eup %9379  ;;  %9395 = vrcp.f32 %v5554_v35 }
 0x593   : > { %v5551_v26 = vpop.xlane.xlu0 %5550  ;;  %v3821_v60 = vmul.f32 %v9380_v18, %v12036_v40  ;;  %v9382_v13 = vpop.eup %9381 }
 0x594   : > { %v2333_v29 = vpop.xlane.xlu1 %2332  ;;  %v7052_v24 = vmul.f32 %v9382_v13, %v6524_v58  ;;  %v6872_v18 = vpop.f32.mrf.mxu1 }
 0x595   : > { %9063 = vmatmul.mubr.msk.f32.gmra.mxu1 %vm633_vm1, %v7049_v28  ;;  %9397 = vrcp.f32 %v2333_v29  ;;  %9125 = vmatmul.mubr.msk.f32.gmra.mxu0 %vm633_vm1, %v3821_v60 }
 0x596   : > { %v9384_v51 = vpop.eup %9383  ;;  %9399 = vrcp.f32 %v5551_v26 }
 0x597   : > { %v5548_v62 = vpop.xlane.xlu0 %5547  ;;  %v9386_v21 = vpop.eup %9385  ;;  %v3822_v8 = vmul.f32 %v9384_v51, %v12037_v56 }
 0x598   : > { %9401 = vrcp.f32 %v5548_v62  ;;  %v2336_v54 = vpop.xlane.xlu1 %2335  ;;  %v7051_v1 = vmul.f32 %v9386_v21, %v8993_v27 }
 0x599   : > { %v9388_v50 = vpop.eup %9387  ;;  %9403 = vrcp.f32 %v2336_v54  ;;  %9127 = vmatprep.mubr.msk.f32.mxu0 %vm633_vm1, %v3822_v8 }
 0x59a   : > { %v7050_v33 = vmul.f32 %v9388_v50, %v6437_v47  ;;  %v9390_v42 = vpop.eup %9389  ;;  %9405 = vrcp.f32 %v11491_v15  ;;  %v9007_v15 = vpop.f32.mrf.mxu0 }
 0x59b   : > { %v9392_v53 = vpop.eup %9391  ;;  %v3823_v41 = vmul.f32 %v9390_v42, %v12038_v7  ;;  %v5563_v45 = vpop.xlane.xlu0 %5562 }
 0x59c   : > { %9065 = vmatprep.mubr.msk.f32.mxu1 %vm633_vm1, %v7050_v33  ;;  %v2339_v43 = vpop.xlane.xlu1 %2338  ;;  %v7053_v2 = vmul.f32 %v9392_v53, %v9000_v0  ;;  %v6611_v14 = vpop.f32.mrf.mxu0  ;;  %v11554_v33 = vld [vmem:[%s11671_s3] ss:$0 sm:$0xff] }
 0x59d   : > { %9066 = vmatmul.mubr.msk.f32.gmra.mxu1 %vm633_vm1, %v7051_v1  ;;  %9407 = vrcp.f32 %v2339_v43  ;;  %9128 = vmatmul.mubr.msk.f32.gmra.mxu0 %vm633_vm1, %v3823_v41 }
 0x59e   : > { %9068 = vmatprep.mubr.msk.f32.mxu1 %vm633_vm1, %v7052_v24  ;;  %v9394_v61 = vpop.eup %9393  ;;  %9409 = vrcp.f32 %v11513_v55 }
 0x59f   : > { %v3824_v63 = vmul.f32 %v9394_v61, %v12039_v36  ;;  %v9396_v6 = vpop.eup %9395  ;;  %v5560_v32 = vpop.xlane.xlu0 %5559 }
 0x5a0   : > { %v7056_v49 = vmul.f32 %v9396_v6, %v6698_v22  ;;  %9411 = vrcp.f32 %v5560_v32 }
 0x5a1   : > { %9069 = vmatmul.mubr.msk.f32.gmra.mxu1 %vm633_vm1, %v7053_v2  ;;  %9130 = vmatprep.mubr.msk.f32.mxu0 %vm633_vm1, %v3824_v63  ;;  %9413 = vrcp.f32 %v5563_v45 }
 0x5a2   : > { %v9398_v35 = vpop.eup %9397 }
 0x5a3   : > { %v9400_v52 = vpop.eup %9399  ;;  %v3825_v44 = vmul.f32 %v9398_v35, %v12040_v17  ;;  %v5569_v3 = vpop.xlane.xlu0 %5568 }
 0x5a4   : > { %v7055_v12 = vmul.f32 %v9400_v52, %v9007_v15  ;;  %9415 = vrcp.f32 %v5569_v3 }
 0x5a5   : > { %v9402_v20 = vpop.eup %9401  ;;  %9131 = vmatmul.mubr.msk.f32.gmra.mxu0 %vm633_vm1, %v3825_v44 }
 0x5a6   : > { %v7054_v59 = vmul.f32 %v9402_v20, %v6611_v14  ;;  %v9404_v16 = vpop.eup %9403 }
 0x5a7   : > { %v9406_v48 = vpop.eup %9405  ;;  %v3826_v23 = vmul.f32 %v9404_v16, %v12041_v39  ;;  %v5572_v30 = vpop.xlane.xlu0 %5571 }
 0x5a8   : > { %9071 = vmatprep.mubr.msk.f32.mxu1 %vm633_vm1, %v7054_v59  ;;  %v7057_v25 = vmul.f32 %v9406_v48, %v9014_v5  ;;  %9417 = vrcp.f32 %v5572_v30 }
 0x5a9   : > { %9072 = vmatmul.mubr.msk.f32.gmra.mxu1 %vm633_vm1, %v7055_v12  ;;  %9133 = vmatprep.mubr.msk.f32.mxu0 %vm633_vm1, %v3826_v23 }
 0x5aa   : > { %9074 = vmatprep.mubr.msk.f32.mxu1 %vm633_vm1, %v7056_v49  ;;  %v9408_v11 = vpop.eup %9407 }
 0x5ab   : > { %v3827_v57 = vmul.f32 %v9408_v11, %v12042_v10  ;;  %v5575_v31 = vpop.xlane.xlu0 %5574  ;;  %v9410_v9 = vpop.eup %9409 }
 0x5ac   : > { %9419 = vrcp.f32 %v5575_v31  ;;  %v7060_v55 = vmul.f32 %v9410_v9, %v6872_v18 }
 0x5ad   : > { %9075 = vmatmul.mubr.msk.f32.gmra.mxu1 %vm633_vm1, %v7057_v25  ;;  %9134 = vmatmul.mubr.msk.f32.gmra.mxu0 %vm633_vm1, %v3827_v57  ;;  %v9412_v38 = vpop.eup %9411 }
 0x5ae   : > { %v9414_v4 = vpop.eup %9413 }
 0x5b1   : > { %v9416_v40 = vpop.eup %9415 }
 0x5b2   : > { %v7061_v29 = vmul.f32 %v9416_v40, %v9028_v34 }
 0x5b5   : > { %v9418_v27 = vpop.eup %9417 }
 0x5b9   : > { %v9420_v51 = vpop.eup %9419 }
 0x5c3   : > { %v9021_v37 = vpop.f32.mrf.mxu0 }
 0x5c4   : > { %v7059_v28 = vmul.f32 %v9414_v4, %v9021_v37 }
 0x5c5   : > { %v6785_v19 = vpop.f32.mrf.mxu0 }
 0x5c6   : > { %v7058_v46 = vmul.f32 %v9412_v38, %v6785_v19 }
 0x5c7   : > { %v9035_v26 = vpop.f32.mrf.mxu0 }
 0x5c8   : > { %9077 = vmatprep.mubr.msk.f32.mxu1 %vm633_vm1, %v7058_v46  ;;  %v7063_v0 = vmul.f32 %v9420_v51, %v9035_v26 }
 0x5c9   : > { %v6959_v60 = vpop.f32.mrf.mxu0  ;;  %9078 = vmatmul.mubr.msk.f32.gmra.mxu1 %vm633_vm1, %v7059_v28 }
 0x5ca   : > { %9080 = vmatprep.mubr.msk.f32.mxu1 %vm633_vm1, %v7060_v55  ;;  %v7062_v13 = vmul.f32 %v9418_v27, %v6959_v60 }
 0x5cd   : > { %9081 = vmatmul.mubr.msk.f32.gmra.mxu1 %vm633_vm1, %v7061_v29 }
 0x5ce   : > { %9083 = vmatprep.mubr.msk.f32.mxu1 %vm633_vm1, %v7062_v13 }
 0x5d1   : > { %9084 = vmatmul.mubr.msk.f32.gmra.mxu1 %vm633_vm1, %v7063_v0 }
 0x5fe   : > { %v9090_v62 = vpop.f32.mrf.mxu0 }
 0x600   : > { %v7549_v21 = vpop.f32.mrf.mxu0 }
 0x602   : > { %v9093_v56 = vpop.f32.mrf.mxu0 }
 0x604   : > { %v7559_v8 = vpop.f32.mrf.mxu0 }
 0x606   : > { %v9096_v50 = vpop.f32.mrf.mxu0 }
 0x608   : > { %v7569_v47 = vpop.f32.mrf.mxu0 }
 0x60a   : > { %v9099_v24 = vpop.f32.mrf.mxu0 }
 0x60c   : > { %v7579_v63 = vpop.f32.mrf.mxu0 }
 0x611   : > { %v9102_v5 = vpop.f32.mrf.mxu0 }
 0x613   : > { %v7589_v16 = vpop.f32.mrf.mxu0 }
 0x619   : > { %v9105_v48 = vpop.f32.mrf.mxu0 }
 0x61b   : > { %v7599_v57 = vpop.f32.mrf.mxu0 }
 0x621   : > { %v9108_v31 = vpop.f32.mrf.mxu0 }
 0x623   : > { %v7609_v46 = vpop.f32.mrf.mxu0 }
 0x629   : > { %v9111_v55 = vpop.f32.mrf.mxu0 }
 0x62b   : > { %v7619_v60 = vpop.f32.mrf.mxu0 }
 0x62e   : > { %v9040_v54 = vpop.f32.mrf.mxu1 }
 0x62f   : > { %v7555_v42 = vadd.f32 %v9090_v62, %v9040_v54 }
 0x630   : > { %v7228_v58 = vpop.f32.mrf.mxu1 }
 0x631   : > { %v7716_v1 = vadd.f32 %v11554_v33, %v7555_v42  ;;  %v7550_v53 = vadd.f32 %v7549_v21, %v7228_v58 }
 0x632   : > { %v9043_v7 = vpop.f32.mrf.mxu1 }
 0x633   : > { %7748 = vst.msk [vmem:[%s11561_s6 + $0x8] sm:$0xff] %vm303_vm0, %v7716_v1  ;;  %v7715_v41 = vadd.f32 %v11554_v33, %v7550_v53  ;;  %v7565_v43 = vadd.f32 %v9093_v56, %v9043_v7 }
 0x634   : > { %v7238_v61 = vpop.f32.mrf.mxu1 }
 0x635   : > { %7747 = vst.msk [vmem:[%s11561_s6] sm:$0xff] %vm303_vm0, %v7715_v41  ;;  %v7718_v2 = vadd.f32 %v11554_v33, %v7565_v43  ;;  %v7560_v36 = vadd.f32 %v7559_v8, %v7238_v61  ;;  %v9114_v13 = vpop.f32.mrf.mxu0 }
 0x636   : > { %v9046_v15 = vpop.f32.mrf.mxu1 }
 0x637   : > { %7750 = vst.msk [vmem:[%s11561_s6 + $0x18] sm:$0xff] %vm303_vm0, %v7718_v2  ;;  %v7717_v6 = vadd.f32 %v11554_v33, %v7560_v36  ;;  %v7575_v35 = vadd.f32 %v9096_v50, %v9046_v15  ;;  %v7629_v50 = vpop.f32.mrf.mxu0 }
 0x638   : > { %v7248_v52 = vpop.f32.mrf.mxu1 }
 0x639   : > { %7749 = vst.msk [vmem:[%s11561_s6 + $0x10] sm:$0xff] %vm303_vm0, %v7717_v6  ;;  %v7720_v17 = vadd.f32 %v11554_v33, %v7575_v35  ;;  %v7570_v44 = vadd.f32 %v7569_v47, %v7248_v52 }
 0x63a   : > { %v9049_v20 = vpop.f32.mrf.mxu1 }
 0x63b   : > { %7752 = vst.msk [vmem:[%s11561_s6 + $0x28] sm:$0xff] %vm303_vm0, %v7720_v17  ;;  %v7719_v14 = vadd.f32 %v11554_v33, %v7570_v44  ;;  %v7585_v59 = vadd.f32 %v9099_v24, %v9049_v20 }
 0x63c   : > { %v7258_v22 = vpop.f32.mrf.mxu1 }
 0x63d   : > { %7751 = vst.msk [vmem:[%s11561_s6 + $0x20] sm:$0xff] %vm303_vm0, %v7719_v14  ;;  %v7722_v45 = vadd.f32 %v11554_v33, %v7585_v59  ;;  %v7580_v12 = vadd.f32 %v7579_v63, %v7258_v22  ;;  %v9117_v58 = vpop.f32.mrf.mxu0 }
 0x63e   : > { %v9052_v49 = vpop.f32.mrf.mxu1 }
 0x63f   : > { %7754 = vst.msk [vmem:[%s11561_s6 + $0x38] sm:$0xff] %vm303_vm0, %v7722_v45  ;;  %v7721_v39 = vadd.f32 %v11554_v33, %v7580_v12  ;;  %v7595_v23 = vadd.f32 %v9102_v5, %v9052_v49  ;;  %v7639_v53 = vpop.f32.mrf.mxu0 }
 0x640   : > { %v7268_v11 = vpop.f32.mrf.mxu1 }
 0x641   : > { %7753 = vst.msk [vmem:[%s11561_s6 + $0x30] sm:$0xff] %vm303_vm0, %v7721_v39  ;;  %v7724_v25 = vadd.f32 %v11554_v33, %v7595_v23  ;;  %v7590_v10 = vadd.f32 %v7589_v16, %v7268_v11 }
 0x642   : > { %v9055_v32 = vpop.f32.mrf.mxu1 }
 0x643   : > { %7756 = vst.msk [vmem:[%s11561_s6 + $0x48] sm:$0xff] %vm303_vm0, %v7724_v25  ;;  %v7723_v3 = vadd.f32 %v11554_v33, %v7590_v10  ;;  %v7605_v30 = vadd.f32 %v9105_v48, %v9055_v32 }
 0x644   : > { %v7278_v34 = vpop.f32.mrf.mxu1 }
 0x645   : > { %7755 = vst.msk [vmem:[%s11561_s6 + $0x40] sm:$0xff] %vm303_vm0, %v7723_v3  ;;  %v7726_v37 = vadd.f32 %v11554_v33, %v7605_v30  ;;  %v7600_v9 = vadd.f32 %v7599_v57, %v7278_v34  ;;  %v9120_v41 = vpop.f32.mrf.mxu0 }
 0x646   : > { %v9058_v38 = vpop.f32.mrf.mxu1 }
 0x647   : > { %7758 = vst.msk [vmem:[%s11561_s6 + $0x58] sm:$0xff] %vm303_vm0, %v7726_v37  ;;  %v7725_v19 = vadd.f32 %v11554_v33, %v7600_v9  ;;  %v7615_v4 = vadd.f32 %v9108_v31, %v9058_v38  ;;  %v7649_v6 = vpop.f32.mrf.mxu0 }
 0x648   : > { %v7288_v18 = vpop.f32.mrf.mxu1 }
 0x649   : > { %7757 = vst.msk [vmem:[%s11561_s6 + $0x50] sm:$0xff] %vm303_vm0, %v7725_v19  ;;  %v7728_v28 = vadd.f32 %v11554_v33, %v7615_v4  ;;  %v7610_v26 = vadd.f32 %v7609_v46, %v7288_v18 }
 0x64b   : > { %7760 = vst.msk [vmem:[%s11561_s6 + $0x68] sm:$0xff] %vm303_vm0, %v7728_v28  ;;  %v7727_v40 = vadd.f32 %v11554_v33, %v7610_v26 }
 0x64d   : > { %7759 = vst.msk [vmem:[%s11561_s6 + $0x60] sm:$0xff] %vm303_vm0, %v7727_v40  ;;  %v9123_v17 = vpop.f32.mrf.mxu0 }
 0x64f   : > { %v7659_v20 = vpop.f32.mrf.mxu0 }
 0x651   : > { %v9061_v27 = vpop.f32.mrf.mxu1 }
 0x652   : > { %v7625_v29 = vadd.f32 %v9111_v55, %v9061_v27 }
 0x653   : > { %v7298_v51 = vpop.f32.mrf.mxu1 }
 0x654   : > { %v7730_v0 = vadd.f32 %v11554_v33, %v7625_v29  ;;  %v7620_v62 = vadd.f32 %v7619_v60, %v7298_v51 }
 0x655   : > { %v9064_v21 = vpop.f32.mrf.mxu1  ;;  %v9126_v16 = vpop.f32.mrf.mxu0 }
 0x656   : > { %7762 = vst.msk [vmem:[%s11561_s6 + $0x78] sm:$0xff] %vm303_vm0, %v7730_v0  ;;  %v7729_v56 = vadd.f32 %v11554_v33, %v7620_v62  ;;  %v7635_v8 = vadd.f32 %v9114_v13, %v9064_v21 }
 0x657   : > { %v7308_v47 = vpop.f32.mrf.mxu1  ;;  %v7669_v23 = vpop.f32.mrf.mxu0 }
 0x658   : > { %7761 = vst.msk [vmem:[%s11561_s6 + $0x70] sm:$0xff] %vm303_vm0, %v7729_v56  ;;  %v7732_v54 = vadd.f32 %v11554_v33, %v7635_v8  ;;  %v7630_v42 = vadd.f32 %v7629_v50, %v7308_v47 }
 0x65a   : > { %7764 = vst.msk [vmem:[%s11561_s6 + $0x88] sm:$0xff] %vm303_vm0, %v7732_v54  ;;  %v7731_v1 = vadd.f32 %v11554_v33, %v7630_v42 }
 0x65c   : > { %7763 = vst.msk [vmem:[%s11561_s6 + $0x80] sm:$0xff] %vm303_vm0, %v7731_v1 }
 0x65d   : > { %v9067_v24 = vpop.f32.mrf.mxu1  ;;  %v9129_v32 = vpop.f32.mrf.mxu0 }
 0x65e   : > { %v7645_v7 = vadd.f32 %v9117_v58, %v9067_v24 }
 0x65f   : > { %v7318_v43 = vpop.f32.mrf.mxu1  ;;  %v7679_v3 = vpop.f32.mrf.mxu0 }
 0x660   : > { %v7734_v61 = vadd.f32 %v11554_v33, %v7645_v7  ;;  %v7640_v2 = vadd.f32 %v7639_v53, %v7318_v43 }
 0x661   : > { %v9070_v36 = vpop.f32.mrf.mxu1 }
 0x662   : > { %7766 = vst.msk [vmem:[%s11561_s6 + $0x98] sm:$0xff] %vm303_vm0, %v7734_v61  ;;  %v7733_v63 = vadd.f32 %v11554_v33, %v7640_v2  ;;  %v7655_v15 = vadd.f32 %v9120_v41, %v9070_v36 }
 0x663   : > { %v7328_v35 = vpop.f32.mrf.mxu1 }
 0x664   : > { %7765 = vst.msk [vmem:[%s11561_s6 + $0x90] sm:$0xff] %vm303_vm0, %v7733_v63  ;;  %v7736_v5 = vadd.f32 %v11554_v33, %v7655_v15  ;;  %v7650_v52 = vadd.f32 %v7649_v6, %v7328_v35 }
 0x665   : > { %v9132_v30 = vpop.f32.mrf.mxu0 }
 0x666   : > { %7768 = vst.msk [vmem:[%s11561_s6 + $0xa8] sm:$0xff] %vm303_vm0, %v7736_v5  ;;  %v7735_v44 = vadd.f32 %v11554_v33, %v7650_v52 }
 0x667   : > { %v7689_v19 = vpop.f32.mrf.mxu0 }
 0x668   : > { %7767 = vst.msk [vmem:[%s11561_s6 + $0xa0] sm:$0xff] %vm303_vm0, %v7735_v44 }
 0x669   : > { %v9073_v14 = vpop.f32.mrf.mxu1 }
 0x66a   : > { %v7665_v59 = vadd.f32 %v9123_v17, %v9073_v14 }
 0x66b   : > { %v7338_v22 = vpop.f32.mrf.mxu1 }
 0x66c   : > { %v7738_v45 = vadd.f32 %v11554_v33, %v7665_v59  ;;  %v7660_v12 = vadd.f32 %v7659_v20, %v7338_v22 }
 0x66d   : > { %v9076_v48 = vpop.f32.mrf.mxu1  ;;  %v9135_v28 = vpop.f32.mrf.mxu0 }
 0x66e   : > { %7770 = vst.msk [vmem:[%s11561_s6 + $0xb8] sm:$0xff] %vm303_vm0, %v7738_v45  ;;  %v7737_v49 = vadd.f32 %v11554_v33, %v7660_v12  ;;  %v7675_v39 = vadd.f32 %v9126_v16, %v9076_v48 }
 0x66f   : > { %v7348_v11 = vpop.f32.mrf.mxu1  ;;  %v7699_v13 = vpop.f32.mrf.mxu0 }
 0x670   : > { %7769 = vst.msk [vmem:[%s11561_s6 + $0xb0] sm:$0xff] %vm303_vm0, %v7737_v49  ;;  %v7740_v25 = vadd.f32 %v11554_v33, %v7675_v39  ;;  %v7670_v10 = vadd.f32 %v7669_v23, %v7348_v11 }
 0x672   : > { %7772 = vst.msk [vmem:[%s11561_s6 + $0xc8] sm:$0xff] %vm303_vm0, %v7740_v25  ;;  %v7739_v57 = vadd.f32 %v11554_v33, %v7670_v10 }
 0x674   : > { %7771 = vst.msk [vmem:[%s11561_s6 + $0xc0] sm:$0xff] %vm303_vm0, %v7739_v57 }
 0x689   : > { %v9079_v31 = vpop.f32.mrf.mxu1 }
 0x68a   : > { %v7685_v34 = vadd.f32 %v9129_v32, %v9079_v31 }
 0x68b   : > { %v7358_v37 = vpop.f32.mrf.mxu1 }
 0x68c   : > { %v7742_v9 = vadd.f32 %v11554_v33, %v7685_v34  ;;  %v7680_v38 = vadd.f32 %v7679_v3, %v7358_v37 }
 0x68d   : > { %v9082_v4 = vpop.f32.mrf.mxu1 }
 0x68e   : > { %7774 = vst.msk [vmem:[%s11561_s6 + $0xd8] sm:$0xff] %vm303_vm0, %v7742_v9  ;;  %v7741_v46 = vadd.f32 %v11554_v33, %v7680_v38  ;;  %v7695_v18 = vadd.f32 %v9132_v30, %v9082_v4 }
 0x68f   : > { %v7368_v26 = vpop.f32.mrf.mxu1 }
 0x690   : > { %7773 = vst.msk [vmem:[%s11561_s6 + $0xd0] sm:$0xff] %vm303_vm0, %v7741_v46  ;;  %v7744_v40 = vadd.f32 %v11554_v33, %v7695_v18  ;;  %v7690_v55 = vadd.f32 %v7689_v19, %v7368_v26 }
 0x691   : > { %v9085_v60 = vpop.f32.mrf.mxu1 }
 0x692   : > { %7776 = vst.msk [vmem:[%s11561_s6 + $0xe8] sm:$0xff] %vm303_vm0, %v7744_v40  ;;  %v7743_v27 = vadd.f32 %v11554_v33, %v7690_v55  ;;  %v7705_v29 = vadd.f32 %v9135_v28, %v9085_v60 }
 0x693   : > { %v7378_v51 = vpop.f32.mrf.mxu1 }
 0x694   : > { %7775 = vst.msk [vmem:[%s11561_s6 + $0xe0] sm:$0xff] %vm303_vm0, %v7743_v27  ;;  %v7746_v0 = vadd.f32 %v11554_v33, %v7705_v29  ;;  %v7700_v62 = vadd.f32 %v7699_v13, %v7378_v51 }
 0x696   : > { %7778 = vst.msk [vmem:[%s11561_s6 + $0xf8] sm:$0xff] %vm303_vm0, %v7746_v0  ;;  %v7745_v21 = vadd.f32 %v11554_v33, %v7700_v62 }
 0x698   : > { %7777 = vst.msk [vmem:[%s11561_s6 + $0xf0] sm:$0xff] %vm303_vm0, %v7745_v21 }
 0x699 PF: > { %s15_s20 = sadd.s32 1, %s9443_s20   ;;  %s12043_s18 = smov %s9439_s19 }
 0x69a   : > { %p12_p5 = scmp.ge.s32.totalorder %s15_s20, 4   ;;  %s12044_s19 = smov %s12046_s21 }
 0x69c   :  { %14 = sbr.rel (!%p12_p5) target bundleno = 2 (0x2), region = 72 }

</bundles_post_ra>
